<compile_context>
chip_gen: v6e
topology: v6e:2x2x1
jax: 0.10.0
libtpu: 0.0.40
codegen_flags: <defaults>
</compile_context>

<pallas_src>
import jax
import jax.numpy as jnp
from jax.experimental import pallas as pl
from jax.experimental.pallas import tpu as pltpu


def _round_up(x, m):
    return ((x + m - 1) // m) * m


def _pick_b_tile(num_rows, lane_width, itemsize):
    """Rows per grid step.

    Targets ~4 MiB for the dominant (emb) block so the ~0.35us/grid-step
    overhead is amortised, with a ~512 KiB floor, shrinking until there are
    >=8 grid steps when the batch is big enough (pipeline depth + megacore
    sharding on v7x).  Multiples of 256 satisfy both the f32 (8,128) and
    bf16 (16,128) sublane tiling rules.
    """
    row_bytes = _round_up(lane_width, 128) * itemsize      # VMEM bytes per block row
    bt = max(256, (4 << 20) // row_bytes // 256 * 256)     # ~4 MiB block
    floor = min(bt, max(256, _round_up(-(-(512 << 10) // row_bytes), 256)))
    while bt > floor and -(-num_rows // bt) < 8:
        bt = max(_round_up(bt // 2, 256), floor)
    # Safety: keep double-buffered (emb + out) blocks under ~24 MiB (v7x VMEM).
    while bt > 256 and 2 * bt * (row_bytes + 512) > (24 << 20):
        bt = max(_round_up(bt // 2, 256), 256)
    return min(bt, _round_up(num_rows, 256))


def _fm_kernel(emb_ref, ssel_ref, out_ref):
    # emb_ref : (bt, F*D)  native dtype VMEM — embeddings, fields along lanes
    # ssel_ref: (F*D, D)   f32 VMEM       — 0/1 field-sum selector (resident)
    # out_ref : (bt, 1)    f32 VMEM       — 0.5 * (|sum_f e|^2 - sum_f |e|^2)
    e = emb_ref[...].astype(jnp.float32)

    # sum_{f,d} e^2 needs no field structure -> exact full-lane VPU/XLU reduce.
    sum_sq = jnp.sum(e * e, axis=1, keepdims=True)                 # (bt, 1)

    # sum_f e via one small MXU matmul against the resident 0/1 selector.
    # Split into a bf16-exact hi part + f32 residual so the result is
    # f32-accurate even if the MXU rounds f32 operands to bf16.
    sel = ssel_ref[...]
    e_hi = e.astype(jnp.bfloat16).astype(jnp.float32)
    e_lo = e - e_hi
    s = (jnp.dot(e_hi, sel, preferred_element_type=jnp.float32)
         + jnp.dot(e_lo, sel, preferred_element_type=jnp.float32))  # (bt, D)

    out_ref[...] = 0.5 * (jnp.sum(s * s, axis=1, keepdims=True) - sum_sq)


def fm_layer_v2(lr_w, feature_emb, bias, *, b_tile=None):
    """lr_w: (B, F) gathered per-field LR weights, feature_emb: (B, F, D),
    bias: (1, 1).  Returns (B, 1) f32 = FM pairwise interaction + LR part."""
    B, F, D = feature_emb.shape
    FD = F * D

    # Lane-dense layout: fields contiguous along lanes.  Keep the native dtype
    # (bf16 stays bf16 on the wire); the kernel upcasts in-register.
    emb = feature_emb.reshape(B, FD)

    if b_tile is None:
        bt = _pick_b_tile(B, FD, emb.dtype.itemsize)
    else:
        bt = max(_round_up(int(b_tile), 256), 256)
    num_tiles = pl.cdiv(B, bt)              # partial last block instead of jnp.pad

    # 0/1 field-sum selector S[f*D + d, d] = 1; resident in VMEM across steps.
    ssel = (jnp.arange(FD, dtype=jnp.int32)[:, None] % D
            == jnp.arange(D, dtype=jnp.int32)[None, :]).astype(jnp.float32)

    # Explicit scoped-VMEM budget from the actual (lane-padded) block sizes.
    row_bytes = _round_up(FD, 128) * emb.dtype.itemsize
    vmem_limit = int(min(
        max(2 * (bt * row_bytes + bt * 128 * 4 + _round_up(FD, 8) * 128 * 4)
            + (2 << 20), 16 << 20),
        32 << 20))

    dot_sum = pl.pallas_call(
        _fm_kernel,
        out_shape=jax.ShapeDtypeStruct((B, 1), jnp.float32),
        grid=(num_tiles,),
        in_specs=[
            # If xprof shows exposed DMA waits on v7x, add
            # pipeline_mode=pl.Buffered(3) to this (dominant) spec only.
            pl.BlockSpec((bt, FD), lambda i: (i, 0)),
            pl.BlockSpec((FD, D), lambda i: (0, 0)),   # same block every step
        ],
        out_specs=pl.BlockSpec((bt, 1), lambda i: (i, 0)),
        compiler_params=pltpu.CompilerParams(
            dimension_semantics=("parallel",),   # batch tiles shard across TCs
            vmem_limit_bytes=vmem_limit,
        ),
    )(emb, ssel)

    # LR part (row sum of gathered per-field weights + bias) stays in XLA:
    # ~1/D of the emb HBM traffic; a (bt, F) VMEM block would pad F to 128
    # lanes for nothing.
    lr_out = jnp.sum(lr_w.astype(jnp.float32), axis=-1, keepdims=True)
    lr_out = lr_out + jnp.asarray(bias, jnp.float32).reshape(1, 1)
    return dot_sum + lr_out


def reference(lr_w, feature_emb, bias):
    sum_f = jnp.sum(feature_emb, axis=1)
    dot_sum = 0.5 * jnp.sum(sum_f ** 2 - jnp.sum(feature_emb ** 2, axis=1),
                            axis=-1, keepdims=True)
    lr_out = jnp.sum(lr_w, axis=-1, keepdims=True) + bias[0, 0]
    return dot_sum + lr_out


if __name__ == "__main__":
    key = jax.random.PRNGKey(0)
    F, D, VOCAB = 4, 16, 100

    # B=3000: multi-step grid with a partial last block (no wrapper pad).
    # B=2048: exact tile multiple.  B=8: tiny-batch / single-partial-block path.
    for B in (3000, 2048, 8):
        key, k_emb, k_tbl, k_x = jax.random.split(key, 4)

        # Inputs to forward(X, feature_emb)
        X = jax.random.randint(k_x, (B, F), 0, VOCAB, dtype=jnp.int32)
        feature_emb = jax.random.normal(k_emb, (B, F, D), dtype=jnp.float32)

        # LR_Layer parameters: per-field 1-dim embedding table + bias.
        lr_tables = 0.01 * jax.random.normal(k_tbl, (F, VOCAB), dtype=jnp.float32)
        bias = jnp.zeros((1, 1), dtype=jnp.float32)

        # Glue: LR_Layer's embedding lookup (gather) in plain JAX -> (B, F).
        lr_w = lr_tables[jnp.arange(F)[None, :], X]

        out = jax.block_until_ready(fm_layer_v2(lr_w, feature_emb, bias))
        ref = reference(lr_w, feature_emb, bias)
        assert out.shape == (B, 1)
        assert jnp.allclose(out, ref, atol=1e-3, rtol=1e-3), (
            B, float(jnp.max(jnp.abs(out - ref))))

    print("KERNEL_OK")
</pallas_src>

<mosaic_0001>
module attributes {stable_mosaic.version = 11 : i64} {
  func.func @_fm_kernel(%arg0: i32, %arg1: memref<1024x64xf32, #tpu.memory_space<vmem>>, %arg2: memref<64x16xf32, #tpu.memory_space<vmem>>, %arg3: memref<1024x1xf32, #tpu.memory_space<vmem>>) attributes {dimension_semantics = [#tpu.dimension_semantics<parallel>], iteration_bounds = array<i64: 3>, scalar_prefetch = 0 : i64, scratch_operands = 0 : i64, tpu.core_type = #tpu.core_type<tc>, window_params = [{transform_indices = @transform_0, window_bounds = array<i64: 1024, 64>}, {pipeline_mode = #tpu.pipeline_mode<synchronous>, transform_indices = @transform_1, window_bounds = array<i64: 64, 16>}, {transform_indices = @transform_2, window_bounds = array<i64: 1024, 1>}]} {
    %c0 = arith.constant 0 : index
    %c0_0 = arith.constant 0 : index
    %0 = vector.load %arg1[%c0, %c0_0] : memref<1024x64xf32, #tpu.memory_space<vmem>>, vector<1024x64xf32>
    %1 = arith.mulf %0, %0 : vector<1024x64xf32>
    %cst = arith.constant dense<0.000000e+00> : vector<1024xf32>
    %2 = vector.multi_reduction <add>, %1, %cst [1] : vector<1024x64xf32> to vector<1024xf32>
    %3 = vector.shape_cast %2 : vector<1024xf32> to vector<1024x1xf32>
    %c0_1 = arith.constant 0 : index
    %c0_2 = arith.constant 0 : index
    %4 = vector.load %arg2[%c0_1, %c0_2] : memref<64x16xf32, #tpu.memory_space<vmem>>, vector<64x16xf32>
    %5 = arith.truncf %0 : vector<1024x64xf32> to vector<1024x64xbf16>
    %6 = arith.extf %5 : vector<1024x64xbf16> to vector<1024x64xf32>
    %7 = arith.subf %0, %6 : vector<1024x64xf32>
    %cst_3 = arith.constant dense<0.000000e+00> : vector<1024x16xf32>
    %8 = tpu.matmul %6, %4, %cst_3 {dimension_numbers = #tpu.dot_dimension_numbers<[1], [0], [0], [1], [0, 0, 1, 1], [], []>} : vector<1024x64xf32>, vector<64x16xf32>, vector<1024x16xf32> -> vector<1024x16xf32>
    %cst_4 = arith.constant dense<0.000000e+00> : vector<1024x16xf32>
    %9 = tpu.matmul %7, %4, %cst_4 {dimension_numbers = #tpu.dot_dimension_numbers<[1], [0], [0], [1], [0, 0, 1, 1], [], []>} : vector<1024x64xf32>, vector<64x16xf32>, vector<1024x16xf32> -> vector<1024x16xf32>
    %10 = arith.addf %8, %9 : vector<1024x16xf32>
    %11 = arith.mulf %10, %10 : vector<1024x16xf32>
    %cst_5 = arith.constant dense<0.000000e+00> : vector<1024xf32>
    %12 = vector.multi_reduction <add>, %11, %cst_5 [1] : vector<1024x16xf32> to vector<1024xf32>
    %13 = vector.shape_cast %12 : vector<1024xf32> to vector<1024x1xf32>
    %14 = arith.subf %13, %3 : vector<1024x1xf32>
    %cst_6 = arith.constant 5.000000e-01 : f32
    %15 = vector.broadcast %cst_6 : f32 to vector<1024x1xf32>
    %16 = arith.mulf %15, %14 : vector<1024x1xf32>
    %c0_7 = arith.constant 0 : index
    %c0_8 = arith.constant 0 : index
    %17 = vector.load %arg3[%c0_7, %c0_8] : memref<1024x1xf32, #tpu.memory_space<vmem>>, vector<1024x1xf32>
    tpu.vector_store %arg3[%c0_7, %c0_8], %16 {strides = array<i32>} : memref<1024x1xf32, #tpu.memory_space<vmem>>, vector<1024x1xf32>,
    return
  }
  func.func @transform_0(%arg0: i32) -> (i32, i32) {
    %c0_i32 = arith.constant 0 : i32
    %c0_i32_0 = arith.constant 0 : i32
    return %arg0, %c0_i32 : i32, i32
  }
  func.func @transform_1(%arg0: i32) -> (i32, i32) {
    %c0_i32 = arith.constant 0 : i32
    %c0_i32_0 = arith.constant 0 : i32
    %c0_i32_1 = arith.constant 0 : i32
    return %c0_i32, %c0_i32_0 : i32, i32
  }
  func.func @transform_2(%arg0: i32) -> (i32, i32) {
    %c0_i32 = arith.constant 0 : i32
    %c0_i32_0 = arith.constant 0 : i32
    return %arg0, %c0_i32 : i32, i32
  }
}

</mosaic_0001>

<bundles_post_ra>
// kernel: tpu_custom_call.1
= control target key start
LH: loop header
LB: loop body
LE: loop exit
PB: predicated region body
PF: predicated region fallthrough
CT: control target
= control target key end

     0   :  { %s5840_s9 = smov 0   ;;  %s5842_s10 = smov 0   ;;  %s8948_s0 = inlined_call_operand.vmem [shape: f32[3000,64], index: 0, kind: input, shape index: {}]   ;;  %s8949_s1 = inlined_call_operand.vmem [shape: f32[64,16], index: 1, kind: input, shape index: {}]   ;;  %s8950_s2 = inlined_call_operand.vmem [shape: f32[3000,1], index: 2, kind: output, shape index: {}]  }
   0x1   :  { %s5844_s11 = smov 0  }
   0x2 LB: > { %s5853_s12 = sadd.s32 4294967295, %s5791_s11   ;;  %s5855_s13 = sadd.s32 1, %s5791_s11   ;;  %s5791_s11 = sphi %s5844_s11, %s9171_s11   ;;  %s5787_s10 = sphi %s5842_s10, %s9170_s10   ;;  %s5783_s9 = sphi %s5840_s9, %s9169_s9  }
   0x3   : > { %s63_s14 = ssub.s32 %s5791_s11, %s5855_s13  ;;  %s66_s15 = sadd.s32 1, %s5787_s10 }
   0x4   : > { %p64_p0 = scmp.eq.s32.totalorder %s63_s14, 0  ;;  %p76_p1 = scmp.ne.s32.totalorder %s5787_s10, %s5783_s9 }
   0x5   : > { %p77_p2 = scmp.eq.s32.totalorder %s5853_s12, 2  ;;  %p4681_p3 = scmp.ge.s32.totalorder %s5791_s11, 1 }
   0x6   : > { %s5863_s16 = scalar_select %p64_p0, %s5787_s10, %s66_s15  }
   0x7   : > { %p5865_p4 = por %p77_p2, %p76_p1  ;;  %p121_p5 = scmp.lt.s32.totalorder %s5791_s11, 4 }
   0x9   : > { %p122_p6 = pnand %p4681_p3, %p121_p5 }
   0xb   : > { %125 = sbr.rel (%p122_p6) target bundleno = 742 (0x2e6), region = 28 }
  0x10   : > { %s5870_s18 = sshll.u32 %s5853_s12, 7  ;;  %v813_v0 = vld [vmem:[%s8949_s1 + $0x38] sm:$0xff]  ;;  %v812_v1 = vld [vmem:[%s8949_s1 + $0x30] sm:$0xff]  ;;  %v811_v2 = vld [vmem:[%s8949_s1 + $0x28] sm:$0xff]  ;;  %vm421_vm0 = vcmask 523264   ;;  %vm3440_vm1 = vcmask 130048  }
  0x11   : > { %p151_p7 = scmp.lt.s32.totalorder %s5870_s18, 374  ;;  %5233 = vmatprep.subr.mxu0 %v813_v0  ;;  %5441 = vmatprep.subr.mxu1 %v813_v0  ;;  %v810_v3 = vld [vmem:[%s8949_s1 + $0x20] sm:$0xff]  ;;  %v809_v4 = vld [vmem:[%s8949_s1 + $0x18] sm:$0xff]  ;;  %v808_v17 = vld [vmem:[%s8949_s1 + $0x10] sm:$0xff]  ;;  %s143_s19 = sand.u32 1, %s5783_s9   ;;  %vm4081_vm2 = vcmask 7168  }
  0x12   : > { %5234 = vmatpush3.msra.mxu0 %v813_v0  ;;  %5442 = vmatpush3.msra.mxu1 %v813_v0  ;;  %v807_v24 = vld [vmem:[%s8949_s1 + $0x8] sm:$0xff]  ;;  %v806_v31 = vld [vmem:[%s8949_s1] sm:$0xff]  ;;  %s4682_s20 = sshll.u32 %s143_s19, 10  ;;  %s4218_s21 = ssub.s32 (%p5865_p4), 375, %s5870_s18 }
  0x13   : > { %s152_s25 = scalar_select %p151_p7, %s5870_s18, 374  ;;  %5235 = vmatprep.subr.mxu0 %v812_v1  ;;  %5443 = vmatprep.subr.mxu1 %v812_v1 }
  0x14   : > { %5236 = vmatpush3.msra.mxu0 %v812_v1  ;;  %5444 = vmatpush3.msra.mxu1 %v812_v1  ;;  %s8076_s9 = scalar_lea.vmem [#allocation2], %s4682_s20   ;;  %s4958_s22 = sshll.u32 (%p5865_p4), %s5853_s12, 10 }
  0x15   : > { %s4684_s28 = sshll.u32 %s152_s25, 3  ;;  %5237 = vmatprep.subr.mxu0 %v811_v2  ;;  %5445 = vmatprep.subr.mxu1 %v811_v2  ;;  %p4219_p8 = scmp.lt.s32.totalorder (%p5865_p4), %s4218_s21, 128 }
  0x16   : > { %s5889_s3 = scalar_lea.vmem %s8948_s0, %s4684_s28  ;;  %5238 = vmatpush3.msra.mxu0 %v811_v2  ;;  %5446 = vmatpush3.msra.mxu1 %v811_v2  ;;  %s8749_s25 = scalar_lea.vmem (%p5865_p4), %s8950_s2, %s4958_s22  }
  0x17   : > { %v5895_v5 = vld [vmem:[%s5889_s3 + $0x10] sm:$0xff]  ;;  %v5898_v6 = vld [vmem:[%s5889_s3] sm:$0xff]  ;;  %v5901_v7 = vld [vmem:[%s5889_s3 + $0x18] sm:$0xff]  ;;  %5239 = vmatprep.subr.mxu0 %v810_v3  ;;  %5447 = vmatprep.subr.mxu1 %v810_v3 }
  0x18   : > { %v295_v8 = vmul.f32 %v5895_v5, %v5895_v5  ;;  %v293_v9 = vmul.f32 %v5898_v6, %v5898_v6  ;;  %v296_v10 = vmul.f32 %v5901_v7, %v5901_v7  ;;  %v5910_v11 = vld [vmem:[%s5889_s3 + $0x8] sm:$0xff]  ;;  %5240 = vmatpush3.msra.mxu0 %v810_v3  ;;  %v5918_v14 = vld [vmem:[%s5889_s3 + $0x20] sm:$0xff]  ;;  %5448 = vmatpush3.msra.mxu1 %v810_v3  ;;  %v5932_v22 = vld [vmem:[%s5889_s3 + $0x38] sm:$0xff] }
  0x19   : > { %v294_v12 = vmul.f32 %v5910_v11, %v5910_v11  ;;  %v5915_v13 = vld [vmem:[%s5889_s3 + $0x28] sm:$0xff]  ;;  %5241 = vmatprep.subr.mxu0 %v809_v4  ;;  %5449 = vmatprep.subr.mxu1 %v809_v4  ;;  %v297_v21 = vmul.f32 %v5918_v14, %v5918_v14  ;;  %v5935_v23 = vld [vmem:[%s5889_s3 + $0x30] sm:$0xff]  ;;  %v300_v27 = vmul.f32 %v5932_v22, %v5932_v22  ;;  %v5950_v30 = vld [vmem:[%s5889_s3 + $0x40] sm:$0xff] }
  0x1a   : > { %v428_v15 = vsel %vm421_vm0, %v295_v8, 0.0  ;;  %v422_v16 = vsel %vm421_vm0, %v293_v9, 0.0  ;;  %v431_v18 = vsel %vm421_vm0, %v296_v10, 0.0  ;;  %v298_v20 = vmul.f32 %v5915_v13, %v5915_v13  ;;  %5242 = vmatpush3.msra.mxu0 %v809_v4  ;;  %5450 = vmatpush3.msra.mxu1 %v809_v4  ;;  %v5947_v29 = vld [vmem:[%s5889_s3 + $0x48] sm:$0xff]  ;;  %v5962_v36 = vld [vmem:[%s5889_s3 + $0x58] sm:$0xff]  ;;  %v5965_v37 = vld [vmem:[%s5889_s3 + $0x50] sm:$0xff] }
  0x1b   : > { %429 = vadd.xlane.f32.xlu1 %v428_v15  ;;  %423 = vadd.xlane.f32.xlu0 %v422_v16  ;;  %v425_v19 = vsel %vm421_vm0, %v294_v12, 0.0  ;;  %v434_v26 = vsel %vm421_vm0, %v297_v21, 0.0  ;;  %v299_v28 = vmul.f32 %v5935_v23, %v5935_v23  ;;  %v443_v32 = vsel %vm421_vm0, %v300_v27, 0.0  ;;  %v5974_v42 = vld [vmem:[%s5889_s3 + $0x68] sm:$0xff]  ;;  %v5977_v43 = vld [vmem:[%s5889_s3 + $0x60] sm:$0xff]  ;;  %v5986_v48 = vld [vmem:[%s5889_s3 + $0x78] sm:$0xff] }
  0x1c   : > { %5243 = vmatprep.subr.mxu0 %v808_v17  ;;  %5451 = vmatprep.subr.mxu1 %v808_v17  ;;  %v437_v25 = vsel %vm421_vm0, %v298_v20, 0.0  ;;  %v302_v34 = vmul.f32 %v5947_v29, %v5947_v29  ;;  %v301_v35 = vmul.f32 %v5950_v30, %v5950_v30  ;;  %v304_v40 = vmul.f32 %v5962_v36, %v5962_v36  ;;  %v5989_v49 = vld [vmem:[%s5889_s3 + $0x70] sm:$0xff]  ;;  %v6000_v55 = vld [vmem:[%s5889_s3 + $0x88] sm:$0xff]  ;;  %v6003_v56 = vld [vmem:[%s5889_s3 + $0x80] sm:$0xff] }
  0x1d   : > { %5244 = vmatpush3.msra.mxu0 %v808_v17  ;;  %5452 = vmatpush3.msra.mxu1 %v808_v17  ;;  %v440_v33 = vsel %vm421_vm0, %v299_v28, 0.0  ;;  %v303_v41 = vmul.f32 %v5965_v37, %v5965_v37  ;;  %v306_v46 = vmul.f32 %v5974_v42, %v5974_v42  ;;  %v305_v47 = vmul.f32 %v5977_v43, %v5977_v43  ;;  %v6016_v3 = vld [vmem:[%s5889_s3 + $0x98] sm:$0xff]  ;;  %v6019_v4 = vld [vmem:[%s5889_s3 + $0x90] sm:$0xff]  ;;  %v6041_v20 = vld [vmem:[%s5889_s3 + $0xa0] sm:$0xff] }
  0x1e   : > { %5245 = vmatprep.subr.mxu0 %v807_v24  ;;  %5453 = vmatprep.subr.mxu1 %v807_v24  ;;  %v449_v38 = vsel %vm421_vm0, %v302_v34, 0.0  ;;  %v446_v39 = vsel %vm421_vm0, %v301_v35, 0.0  ;;  %v455_v44 = vsel %vm421_vm0, %v304_v40, 0.0  ;;  %v815_v50 = vpack.c.bf16 %v5901_v7, %v5895_v5 }
  0x1f   : > { %432 = vadd.xlane.f32.xlu1 %v431_v18  ;;  %426 = vadd.xlane.f32.xlu0 %v425_v19  ;;  %v452_v45 = vsel %vm421_vm0, %v303_v41, 0.0  ;;  %v461_v51 = vsel %vm421_vm0, %v306_v46, 0.0  ;;  %v458_v52 = vsel %vm421_vm0, %v305_v47, 0.0  ;;  %v308_v53 = vmul.f32 %v5986_v48, %v5986_v48 }
  0x20   : > { %5246 = vmatpush3.msra.mxu0 %v807_v24  ;;  %5454 = vmatpush3.msra.mxu1 %v807_v24  ;;  %v307_v54 = vmul.f32 %v5989_v49, %v5989_v49  ;;  %v814_v57 = vpack.c.bf16 %v5910_v11, %v5898_v6  ;;  %v880_v58 = vunpack.c.l.bf16 %v815_v50  ;;  %v816_v59 = vpack.c.bf16 %v5915_v13, %v5918_v14 }
  0x21   : > { %5247 = vmatprep.subr.mxu0 %v806_v31  ;;  %5455 = vmatprep.subr.mxu1 %v806_v31  ;;  %v467_v62 = vsel %vm421_vm0, %v308_v53, 0.0  ;;  %v310_v0 = vmul.f32 %v6000_v55, %v6000_v55  ;;  %v309_v1 = vmul.f32 %v6003_v56, %v6003_v56  ;;  %v881_v2 = vunpack.c.h.bf16 %v815_v50 }
  0x22   : > { %5248 = vmatpush3.msra.mxu0 %v806_v31  ;;  %5456 = vmatpush3.msra.mxu1 %v806_v31  ;;  %v878_v60 = vunpack.c.l.bf16 %v814_v57  ;;  %v879_v61 = vunpack.c.h.bf16 %v814_v57  ;;  %v464_v63 = vsel %vm421_vm0, %v307_v54, 0.0  ;;  %v882_v10 = vunpack.c.l.bf16 %v816_v59  ;;  %v6057_v31 = vld [vmem:[%s5889_s3 + $0xb8] sm:$0xff] }
  0x23   : > { %438 = vadd.xlane.f32.xlu1 %v437_v25  ;;  %435 = vadd.xlane.f32.xlu0 %v434_v26  ;;  %v817_v12 = vpack.c.bf16 %v5932_v22, %v5935_v23  ;;  %v1008_v15 = vsub.f32 %v5895_v5, %v880_v58  ;;  %v473_v16 = vsel %vm421_vm0, %v310_v0, 0.0  ;;  %v312_v17 = vmul.f32 %v6016_v3, %v6016_v3  ;;  %v6038_v5 = vld [vmem:[%s5889_s3 + $0xa8] sm:$0xff]  ;;  %v6097_v57 = vld [vmem:[%s5889_s3 + $0xd8] sm:$0xff] }
  0x24   : > { %v1006_v8 = vsub.f32 %v5898_v6, %v878_v60  ;;  %5457 = vmatprep.mubr.msk.f32.mxu1 %vm421_vm0, %v878_v60  ;;  %v1007_v9 = vsub.f32 %v5910_v11, %v879_v61  ;;  %v470_v6 = vsel %vm421_vm0, %v309_v1, 0.0  ;;  %v311_v11 = vmul.f32 %v6019_v4, %v6019_v4 }
  0x25   : > { %5458 = vmatmul.mubr.msk.f32.vlgmr.msra.gmra.mxu1 %vm421_vm0, %v879_v61  ;;  %v1009_v18 = vsub.f32 %v5901_v7, %v881_v2  ;;  %v883_v19 = vunpack.c.h.bf16 %v816_v59  ;;  %v1010_v21 = vsub.f32 %v5918_v14, %v882_v10  ;;  %v884_v24 = vunpack.c.l.bf16 %v817_v12 }
  0x26   : > { %5249 = vmatprep.mubr.msk.f32.mxu0 %vm421_vm0, %v1006_v8  ;;  %5460 = vmatprep.mubr.msk.f32.mxu1 %vm421_vm0, %v880_v58  ;;  %v818_v25 = vpack.c.bf16 %v5947_v29, %v5950_v30  ;;  %v479_v7 = vsel %vm421_vm0, %v312_v17, 0.0  ;;  %v476_v26 = vsel %vm421_vm0, %v311_v11, 0.0  ;;  %v314_v27 = vmul.f32 %v6038_v5, %v6038_v5  ;;  %v6100_v58 = vld [vmem:[%s5889_s3 + $0xd0] sm:$0xff]  ;;  %v6120_v8 = vld [vmem:[%s5889_s3 + $0xe0] sm:$0xff]  ;;  %v6137_v11 = vld [vmem:[%s5889_s3 + $0xf8] sm:$0xff] }
  0x27   : > { %444 = vadd.xlane.f32.xlu1 %v443_v32  ;;  %441 = vadd.xlane.f32.xlu0 %v440_v33  ;;  %v313_v14 = vmul.f32 %v6041_v20, %v6041_v20  ;;  %v885_v28 = vunpack.c.h.bf16 %v817_v12  ;;  %v6060_v32 = vld [vmem:[%s5889_s3 + $0xb0] sm:$0xff]  ;;  %v1011_v33 = vsub.f32 %v5915_v13, %v883_v19  ;;  %v1012_v34 = vsub.f32 %v5935_v23, %v884_v24 }
  0x28   : > { %5250 = vmatmul.mubr.msk.f32.vlgmr.msra.gmra.mxu0 %vm421_vm0, %v1007_v9  ;;  %v886_v35 = vunpack.c.l.bf16 %v818_v25  ;;  %v316_v41 = vmul.f32 %v6057_v31, %v6057_v31  ;;  %v315_v13 = vmul.f32 %v6060_v32, %v6060_v32  ;;  %v887_v23 = vunpack.c.h.bf16 %v818_v25 }
  0x29   : > { %5252 = vmatprep.mubr.msk.f32.mxu0 %vm421_vm0, %v1008_v15  ;;  %5461 = vmatmul.mubr.msk.f32.gmra.mxu1 %vm421_vm0, %v881_v2  ;;  %v482_v40 = vsel %vm421_vm0, %v313_v14, 0.0  ;;  %v1013_v46 = vsub.f32 %v5932_v22, %v885_v28  ;;  %v320_v1 = vmul.f32 %v6097_v57, %v6097_v57  ;;  %v6117_v2 = vld [vmem:[%s5889_s3 + $0xe8] sm:$0xff]  ;;  %v822_v15 = vpack.c.bf16 %v6000_v55, %v6003_v56 }
  0x2a   : > { %5463 = vmatprep.mubr.msk.f32.mxu1 %vm421_vm0, %v882_v10  ;;  %v1014_v47 = vsub.f32 %v5950_v30, %v886_v35  ;;  %v488_v53 = vsel %vm421_vm0, %v315_v13, 0.0  ;;  %v1015_v59 = vsub.f32 %v5947_v29, %v887_v23  ;;  %v319_v29 = vmul.f32 %v6100_v58, %v6100_v58  ;;  %v6157_v14 = vld [vmem:[%s5889_s3 + $0x108] sm:$0xff]  ;;  %v6177_v13 = vld [vmem:[%s5889_s3 + $0x118] sm:$0xff] }
  0x2b   : > { %450 = vadd.xlane.f32.xlu1 %v449_v38  ;;  %447 = vadd.xlane.f32.xlu0 %v446_v39  ;;  %v819_v38 = vpack.c.bf16 %v5962_v36, %v5965_v37  ;;  %v485_v39 = vsel %vm421_vm0, %v314_v27, 0.0  ;;  %v322_v17 = vmul.f32 %v6117_v2, %v6117_v2  ;;  %v823_v25 = vpack.c.bf16 %v6016_v3, %v6019_v4 }
  0x2c   : > { %5253 = vmatmul.mubr.msk.f32.gmra.mxu0 %vm421_vm0, %v1009_v18  ;;  %v6140_v18 = vld [vmem:[%s5889_s3 + $0xf0] sm:$0xff]  ;;  %v324_v27 = vmul.f32 %v6137_v11, %v6137_v11 }
  0x2d   : > { %5255 = vmatprep.mubr.msk.f32.mxu0 %vm421_vm0, %v1010_v21  ;;  %5464 = vmatmul.mubr.msk.f32.gmra.mxu1 %vm421_vm0, %v883_v19  ;;  %v888_v50 = vunpack.c.l.bf16 %v819_v38  ;;  %v889_v30 = vunpack.c.h.bf16 %v819_v38  ;;  %v824_v38 = vpack.c.bf16 %v6038_v5, %v6041_v20 }
  0x2e   : > { %5466 = vmatprep.mubr.msk.f32.mxu1 %vm421_vm0, %v884_v24  ;;  %v894_v24 = vunpack.c.l.bf16 %v822_v15 }
  0x2f   : > { %456 = vadd.xlane.f32.xlu1 %v455_v44  ;;  %453 = vadd.xlane.f32.xlu0 %v452_v45  ;;  %v6077_v44 = vld [vmem:[%s5889_s3 + $0xc8] sm:$0xff]  ;;  %v6080_v45 = vld [vmem:[%s5889_s3 + $0xc0] sm:$0xff]  ;;  %v1016_v60 = vsub.f32 %v5965_v37, %v888_v50  ;;  %v1017_v9 = vsub.f32 %v5962_v36, %v889_v30  ;;  %v321_v36 = vmul.f32 %v6120_v8, %v6120_v8 }
  0x30   : > { %5256 = vmatmul.mubr.msk.f32.gmra.mxu0 %vm421_vm0, %v1011_v33  ;;  %v318_v54 = vmul.f32 %v6077_v44, %v6077_v44  ;;  %v317_v22 = vmul.f32 %v6080_v45, %v6080_v45 }
  0x31   : > { %5258 = vmatprep.mubr.msk.f32.mxu0 %vm421_vm0, %v1012_v34  ;;  %5467 = vmatmul.mubr.msk.f32.gmra.mxu1 %vm421_vm0, %v885_v28  ;;  %v6160_v28 = vld [vmem:[%s5889_s3 + $0x100] sm:$0xff]  ;;  %v1022_v34 = vsub.f32 %v6003_v56, %v894_v24  ;;  %v897_v56 = vunpack.c.h.bf16 %v823_v25 }
  0x32   : > { %5469 = vmatprep.mubr.msk.f32.mxu1 %vm421_vm0, %v886_v35  ;;  %v494_v0 = vsel %vm421_vm0, %v317_v22, 0.0  ;;  %v896_v35 = vunpack.c.l.bf16 %v823_v25  ;;  %v6197_v22 = vld [vmem:[%s5889_s3 + $0x128] sm:$0xff]  ;;  %v828_v25 = vpack.c.bf16 %v6117_v2, %v6120_v8 }
  0x33   : > { %462 = vadd.xlane.f32.xlu1 %v461_v51  ;;  %459 = vadd.xlane.f32.xlu0 %v458_v52  ;;  %v820_v51 = vpack.c.bf16 %v5974_v42, %v5977_v43  ;;  %v491_v52 = vsel %vm421_vm0, %v316_v41, 0.0  ;;  %v326_v41 = vmul.f32 %v6157_v14, %v6157_v14 }
  0x34   : > { %5259 = vmatmul.mubr.msk.f32.gmra.mxu0 %vm421_vm0, %v1013_v46 }
  0x35   : > { %v890_v61 = vunpack.c.l.bf16 %v820_v51  ;;  %5261 = vmatprep.mubr.msk.f32.mxu0 %vm421_vm0, %v1014_v47  ;;  %5470 = vmatmul.mubr.msk.f32.gmra.mxu1 %vm421_vm0, %v887_v23  ;;  %v891_v37 = vunpack.c.h.bf16 %v820_v51  ;;  %v6180_v23 = vld [vmem:[%s5889_s3 + $0x110] sm:$0xff]  ;;  %v1024_v47 = vsub.f32 %v6019_v4, %v896_v35  ;;  %v825_v51 = vpack.c.bf16 %v6057_v31, %v6060_v32 }
  0x36   : > { %5472 = vmatprep.mubr.msk.f32.mxu1 %vm421_vm0, %v888_v50  ;;  %v898_v50 = vunpack.c.l.bf16 %v824_v38  ;;  %v899_v4 = vunpack.c.h.bf16 %v824_v38  ;;  %v829_v38 = vpack.c.bf16 %v6137_v11, %v6140_v18 }
  0x37   : > { %468 = vadd.xlane.f32.xlu1 %v467_v62  ;;  %465 = vadd.xlane.f32.xlu0 %v464_v63  ;;  %v821_v62 = vpack.c.bf16 %v5986_v48, %v5989_v49  ;;  %v497_v63 = vsel %vm421_vm0, %v318_v54, 0.0  ;;  %v1018_v10 = vsub.f32 %v5977_v43, %v890_v61  ;;  %v1019_v19 = vsub.f32 %v5974_v42, %v891_v37 }
  0x38   : > { %5262 = vmatmul.mubr.msk.f32.gmra.mxu0 %vm421_vm0, %v1015_v59  ;;  %v323_v42 = vmul.f32 %v6140_v18, %v6140_v18  ;;  %v328_v54 = vmul.f32 %v6177_v13, %v6177_v13  ;;  %v1025_v59 = vsub.f32 %v6016_v3, %v897_v56 }
  0x39   : > { %v892_v12 = vunpack.c.l.bf16 %v821_v62  ;;  %5264 = vmatprep.mubr.msk.f32.mxu0 %vm421_vm0, %v1016_v60  ;;  %5473 = vmatmul.mubr.msk.f32.gmra.mxu1 %vm421_vm0, %v889_v30  ;;  %v893_v43 = vunpack.c.h.bf16 %v821_v62  ;;  %v6200_v30 = vld [vmem:[%s5889_s3 + $0x120] sm:$0xff]  ;;  %v1026_v60 = vsub.f32 %v6041_v20, %v898_v50  ;;  %v826_v62 = vpack.c.bf16 %v6077_v44, %v6080_v45 }
  0x3a   : > { %5475 = vmatprep.mubr.msk.f32.mxu1 %vm421_vm0, %v890_v61  ;;  %v900_v61 = vunpack.c.l.bf16 %v825_v51  ;;  %v329_v3 = vmul.f32 %v6200_v30, %v6200_v30  ;;  %v901_v20 = vunpack.c.h.bf16 %v825_v51  ;;  %v830_v51 = vpack.c.bf16 %v6157_v14, %v6160_v28 }
  0x3b   : > { %474 = vadd.xlane.f32.xlu1 %v473_v16  ;;  %471 = vadd.xlane.f32.xlu0 %v470_v6  ;;  %v503_v16 = vsel %vm421_vm0, %v320_v1, 0.0  ;;  %v500_v6 = vsel %vm421_vm0, %v319_v29, 0.0  ;;  %v1020_v21 = vsub.f32 %v5989_v49, %v892_v12  ;;  %v895_v49 = vunpack.c.h.bf16 %v822_v15  ;;  %v6217_v29 = vld [vmem:[%s5889_s3 + $0x138] sm:$0xff] }
  0x3c   : > { %5265 = vmatmul.mubr.msk.f32.gmra.mxu0 %vm421_vm0, %v1017_v9  ;;  %v1021_v33 = vsub.f32 %v5986_v48, %v893_v43  ;;  %v325_v48 = vmul.f32 %v6160_v28, %v6160_v28  ;;  %v330_v1 = vmul.f32 %v6197_v22, %v6197_v22  ;;  %v1027_v9 = vsub.f32 %v6038_v5, %v899_v4 }
  0x3d   : > { %5267 = vmatprep.mubr.msk.f32.mxu0 %vm421_vm0, %v1018_v10  ;;  %5476 = vmatmul.mubr.msk.f32.gmra.mxu1 %vm421_vm0, %v891_v37  ;;  %v1023_v46 = vsub.f32 %v6000_v55, %v895_v49  ;;  %v327_v55 = vmul.f32 %v6180_v23, %v6180_v23  ;;  %v6220_v37 = vld [vmem:[%s5889_s3 + $0x130] sm:$0xff]  ;;  %v1028_v10 = vsub.f32 %v6060_v32, %v900_v61  ;;  %v903_v32 = vunpack.c.h.bf16 %v826_v62 }
  0x3e   : > { %5478 = vmatprep.mubr.msk.f32.mxu1 %vm421_vm0, %v892_v12  ;;  %v902_v12 = vunpack.c.l.bf16 %v826_v62  ;;  %v827_v15 = vpack.c.bf16 %v6097_v57, %v6100_v58  ;;  %v331_v5 = vmul.f32 %v6220_v37, %v6220_v37  ;;  %v831_v62 = vpack.c.bf16 %v6177_v13, %v6180_v23 }
  0x3f   : > { %480 = vadd.xlane.f32.xlu1 %v479_v7  ;;  %477 = vadd.xlane.f32.xlu0 %v476_v26  ;;  %v509_v7 = vsel %vm421_vm0, %v322_v17, 0.0  ;;  %v506_v26 = vsel %vm421_vm0, %v321_v36, 0.0  ;;  %v332_v17 = vmul.f32 %v6217_v29, %v6217_v29  ;;  %v6237_v36 = vld [vmem:[%s5889_s3 + $0x148] sm:$0xff] }
  0x40   : > { %5268 = vmatmul.mubr.msk.f32.gmra.mxu0 %vm421_vm0, %v1019_v19  ;;  %v1029_v19 = vsub.f32 %v6057_v31, %v901_v20 }
  0x41   : > { %5270 = vmatprep.mubr.msk.f32.mxu0 %vm421_vm0, %v1020_v21  ;;  %5479 = vmatmul.mubr.msk.f32.gmra.mxu1 %vm421_vm0, %v893_v43  ;;  %v6240_v43 = vld [vmem:[%s5889_s3 + $0x140] sm:$0xff]  ;;  %v1030_v21 = vsub.f32 %v6080_v45, %v902_v12  ;;  %v905_v45 = vunpack.c.h.bf16 %v827_v15 }
  0x42   : > { %5481 = vmatprep.mubr.msk.f32.mxu1 %vm421_vm0, %v894_v24  ;;  %v904_v24 = vunpack.c.l.bf16 %v827_v15  ;;  %v333_v31 = vmul.f32 %v6240_v43, %v6240_v43  ;;  %v832_v15 = vpack.c.bf16 %v6197_v22, %v6200_v30 }
  0x43   : > { %486 = vadd.xlane.f32.xlu1 %v485_v39  ;;  %483 = vadd.xlane.f32.xlu0 %v482_v40  ;;  %v515_v39 = vsel %vm421_vm0, %v324_v27, 0.0  ;;  %v512_v40 = vsel %vm421_vm0, %v323_v42, 0.0  ;;  %v334_v27 = vmul.f32 %v6237_v36, %v6237_v36  ;;  %v6257_v42 = vld [vmem:[%s5889_s3 + $0x158] sm:$0xff] }
  0x44   : > { %5271 = vmatmul.mubr.msk.f32.gmra.mxu0 %vm421_vm0, %v1021_v33  ;;  %v1031_v33 = vsub.f32 %v6077_v44, %v903_v32 }
  0x45   : > { %5273 = vmatprep.mubr.msk.f32.mxu0 %vm421_vm0, %v1022_v34  ;;  %5482 = vmatmul.mubr.msk.f32.gmra.mxu1 %vm421_vm0, %v895_v49  ;;  %v6260_v49 = vld [vmem:[%s5889_s3 + $0x150] sm:$0xff]  ;;  %v1032_v34 = vsub.f32 %v6100_v58, %v904_v24  ;;  %v907_v58 = vunpack.c.h.bf16 %v828_v25 }
  0x46   : > { %5484 = vmatprep.mubr.msk.f32.mxu1 %vm421_vm0, %v896_v35  ;;  %v906_v35 = vunpack.c.l.bf16 %v828_v25  ;;  %v335_v44 = vmul.f32 %v6260_v49, %v6260_v49  ;;  %v833_v25 = vpack.c.bf16 %v6217_v29, %v6220_v37 }
  0x47   : > { %492 = vadd.xlane.f32.xlu1 %v491_v52  ;;  %489 = vadd.xlane.f32.xlu0 %v488_v53  ;;  %v521_v52 = vsel %vm421_vm0, %v326_v41, 0.0  ;;  %v518_v53 = vsel %vm421_vm0, %v325_v48, 0.0  ;;  %v336_v41 = vmul.f32 %v6257_v42, %v6257_v42  ;;  %v6277_v48 = vld [vmem:[%s5889_s3 + $0x168] sm:$0xff] }
  0x48   : > { %5274 = vmatmul.mubr.msk.f32.gmra.mxu0 %vm421_vm0, %v1023_v46  ;;  %v1033_v46 = vsub.f32 %v6097_v57, %v905_v45 }
  0x49   : > { %5276 = vmatprep.mubr.msk.f32.mxu0 %vm421_vm0, %v1024_v47  ;;  %5485 = vmatmul.mubr.msk.f32.gmra.mxu1 %vm421_vm0, %v897_v56  ;;  %v6280_v56 = vld [vmem:[%s5889_s3 + $0x160] sm:$0xff]  ;;  %v1034_v47 = vsub.f32 %v6120_v8, %v906_v35  ;;  %v909_v8 = vunpack.c.h.bf16 %v829_v38 }
  0x4a   : > { %5487 = vmatprep.mubr.msk.f32.mxu1 %vm421_vm0, %v898_v50  ;;  %v908_v50 = vunpack.c.l.bf16 %v829_v38  ;;  %v337_v57 = vmul.f32 %v6280_v56, %v6280_v56  ;;  %v834_v38 = vpack.c.bf16 %v6237_v36, %v6240_v43 }
  0x4b   : > { %498 = vadd.xlane.f32.xlu1 %v497_v63  ;;  %495 = vadd.xlane.f32.xlu0 %v494_v0  ;;  %v527_v63 = vsel %vm421_vm0, %v328_v54, 0.0  ;;  %v524_v0 = vsel %vm421_vm0, %v327_v55, 0.0  ;;  %v338_v54 = vmul.f32 %v6277_v48, %v6277_v48  ;;  %v6297_v55 = vld [vmem:[%s5889_s3 + $0x178] sm:$0xff] }
  0x4c   : > { %5277 = vmatmul.mubr.msk.f32.gmra.mxu0 %vm421_vm0, %v1025_v59  ;;  %v1035_v59 = vsub.f32 %v6117_v2, %v907_v58 }
  0x4d   : > { %5279 = vmatprep.mubr.msk.f32.mxu0 %vm421_vm0, %v1026_v60  ;;  %5488 = vmatmul.mubr.msk.f32.gmra.mxu1 %vm421_vm0, %v899_v4  ;;  %v6300_v4 = vld [vmem:[%s5889_s3 + $0x170] sm:$0xff]  ;;  %v1036_v60 = vsub.f32 %v6140_v18, %v908_v50  ;;  %v911_v18 = vunpack.c.h.bf16 %v830_v51 }
  0x4e   : > { %5490 = vmatprep.mubr.msk.f32.mxu1 %vm421_vm0, %v900_v61  ;;  %v910_v61 = vunpack.c.l.bf16 %v830_v51  ;;  %v339_v2 = vmul.f32 %v6300_v4, %v6300_v4  ;;  %v835_v51 = vpack.c.bf16 %v6257_v42, %v6260_v49 }
  0x4f   : > { %504 = vadd.xlane.f32.xlu1 %v503_v16  ;;  %501 = vadd.xlane.f32.xlu0 %v500_v6  ;;  %v533_v16 = vsel %vm421_vm0, %v330_v1, 0.0  ;;  %v530_v6 = vsel %vm421_vm0, %v329_v3, 0.0  ;;  %v340_v1 = vmul.f32 %v6297_v55, %v6297_v55  ;;  %v6317_v3 = vld [vmem:[%s5889_s3 + $0x188] sm:$0xff] }
  0x50   : > { %5280 = vmatmul.mubr.msk.f32.gmra.mxu0 %vm421_vm0, %v1027_v9  ;;  %v1037_v9 = vsub.f32 %v6137_v11, %v909_v8 }
  0x51   : > { %5282 = vmatprep.mubr.msk.f32.mxu0 %vm421_vm0, %v1028_v10  ;;  %5491 = vmatmul.mubr.msk.f32.gmra.mxu1 %vm421_vm0, %v901_v20  ;;  %v6320_v20 = vld [vmem:[%s5889_s3 + $0x180] sm:$0xff]  ;;  %v1038_v10 = vsub.f32 %v6160_v28, %v910_v61  ;;  %v913_v28 = vunpack.c.h.bf16 %v831_v62 }
  0x52   : > { %5493 = vmatprep.mubr.msk.f32.mxu1 %vm421_vm0, %v902_v12  ;;  %v912_v12 = vunpack.c.l.bf16 %v831_v62  ;;  %v341_v11 = vmul.f32 %v6320_v20, %v6320_v20  ;;  %v836_v62 = vpack.c.bf16 %v6277_v48, %v6280_v56 }
  0x53   : > { %510 = vadd.xlane.f32.xlu1 %v509_v7  ;;  %507 = vadd.xlane.f32.xlu0 %v506_v26  ;;  %v539_v7 = vsel %vm421_vm0, %v332_v17, 0.0  ;;  %v536_v26 = vsel %vm421_vm0, %v331_v5, 0.0  ;;  %v342_v17 = vmul.f32 %v6317_v3, %v6317_v3  ;;  %v6337_v5 = vld [vmem:[%s5889_s3 + $0x198] sm:$0xff] }
  0x54   : > { %5283 = vmatmul.mubr.msk.f32.gmra.mxu0 %vm421_vm0, %v1029_v19  ;;  %v1039_v19 = vsub.f32 %v6157_v14, %v911_v18 }
  0x55   : > { %5285 = vmatprep.mubr.msk.f32.mxu0 %vm421_vm0, %v1030_v21  ;;  %5494 = vmatmul.mubr.msk.f32.gmra.mxu1 %vm421_vm0, %v903_v32  ;;  %v6340_v32 = vld [vmem:[%s5889_s3 + $0x190] sm:$0xff]  ;;  %v1040_v21 = vsub.f32 %v6180_v23, %v912_v12  ;;  %v915_v23 = vunpack.c.h.bf16 %v832_v15 }
  0x56   : > { %5496 = vmatprep.mubr.msk.f32.mxu1 %vm421_vm0, %v904_v24  ;;  %v914_v24 = vunpack.c.l.bf16 %v832_v15  ;;  %v343_v14 = vmul.f32 %v6340_v32, %v6340_v32  ;;  %v837_v15 = vpack.c.bf16 %v6297_v55, %v6300_v4 }
  0x57   : > { %516 = vadd.xlane.f32.xlu1 %v515_v39  ;;  %513 = vadd.xlane.f32.xlu0 %v512_v40  ;;  %v545_v39 = vsel %vm421_vm0, %v334_v27, 0.0  ;;  %v542_v40 = vsel %vm421_vm0, %v333_v31, 0.0  ;;  %v344_v27 = vmul.f32 %v6337_v5, %v6337_v5  ;;  %v6357_v31 = vld [vmem:[%s5889_s3 + $0x1a8] sm:$0xff] }
  0x58   : > { %5286 = vmatmul.mubr.msk.f32.gmra.mxu0 %vm421_vm0, %v1031_v33  ;;  %v1041_v33 = vsub.f32 %v6177_v13, %v913_v28 }
  0x59   : > { %5288 = vmatprep.mubr.msk.f32.mxu0 %vm421_vm0, %v1032_v34  ;;  %5497 = vmatmul.mubr.msk.f32.gmra.mxu1 %vm421_vm0, %v905_v45  ;;  %v6360_v45 = vld [vmem:[%s5889_s3 + $0x1a0] sm:$0xff]  ;;  %v1042_v34 = vsub.f32 %v6200_v30, %v914_v24  ;;  %v917_v30 = vunpack.c.h.bf16 %v833_v25 }
  0x5a   : > { %5499 = vmatprep.mubr.msk.f32.mxu1 %vm421_vm0, %v906_v35  ;;  %v916_v35 = vunpack.c.l.bf16 %v833_v25  ;;  %v345_v13 = vmul.f32 %v6360_v45, %v6360_v45  ;;  %v838_v25 = vpack.c.bf16 %v6317_v3, %v6320_v20 }
  0x5b   : > { %522 = vadd.xlane.f32.xlu1 %v521_v52  ;;  %519 = vadd.xlane.f32.xlu0 %v518_v53  ;;  %v551_v52 = vsel %vm421_vm0, %v336_v41, 0.0  ;;  %v548_v53 = vsel %vm421_vm0, %v335_v44, 0.0  ;;  %v346_v41 = vmul.f32 %v6357_v31, %v6357_v31  ;;  %v6377_v44 = vld [vmem:[%s5889_s3 + $0x1b8] sm:$0xff] }
  0x5c   : > { %5289 = vmatmul.mubr.msk.f32.gmra.mxu0 %vm421_vm0, %v1033_v46  ;;  %v1043_v46 = vsub.f32 %v6197_v22, %v915_v23 }
  0x5d   : > { %5291 = vmatprep.mubr.msk.f32.mxu0 %vm421_vm0, %v1034_v47  ;;  %5500 = vmatmul.mubr.msk.f32.gmra.mxu1 %vm421_vm0, %v907_v58  ;;  %v6380_v58 = vld [vmem:[%s5889_s3 + $0x1b0] sm:$0xff]  ;;  %v1044_v47 = vsub.f32 %v6220_v37, %v916_v35  ;;  %v919_v37 = vunpack.c.h.bf16 %v834_v38 }
  0x5e   : > { %5502 = vmatprep.mubr.msk.f32.mxu1 %vm421_vm0, %v908_v50  ;;  %v918_v50 = vunpack.c.l.bf16 %v834_v38  ;;  %v347_v22 = vmul.f32 %v6380_v58, %v6380_v58  ;;  %v839_v38 = vpack.c.bf16 %v6337_v5, %v6340_v32 }
  0x5f   : > { %528 = vadd.xlane.f32.xlu1 %v527_v63  ;;  %525 = vadd.xlane.f32.xlu0 %v524_v0  ;;  %v557_v63 = vsel %vm421_vm0, %v338_v54, 0.0  ;;  %v554_v0 = vsel %vm421_vm0, %v337_v57, 0.0  ;;  %v348_v54 = vmul.f32 %v6377_v44, %v6377_v44  ;;  %v6397_v57 = vld [vmem:[%s5889_s3 + $0x1c8] sm:$0xff] }
  0x60   : > { %5292 = vmatmul.mubr.msk.f32.gmra.mxu0 %vm421_vm0, %v1035_v59  ;;  %v1045_v59 = vsub.f32 %v6217_v29, %v917_v30 }
  0x61   : > { %5294 = vmatprep.mubr.msk.f32.mxu0 %vm421_vm0, %v1036_v60  ;;  %5503 = vmatmul.mubr.msk.f32.gmra.mxu1 %vm421_vm0, %v909_v8  ;;  %v6400_v8 = vld [vmem:[%s5889_s3 + $0x1c0] sm:$0xff]  ;;  %v1046_v60 = vsub.f32 %v6240_v43, %v918_v50  ;;  %v921_v43 = vunpack.c.h.bf16 %v835_v51 }
  0x62   : > { %5505 = vmatprep.mubr.msk.f32.mxu1 %vm421_vm0, %v910_v61  ;;  %v920_v61 = vunpack.c.l.bf16 %v835_v51  ;;  %v349_v29 = vmul.f32 %v6400_v8, %v6400_v8  ;;  %v840_v51 = vpack.c.bf16 %v6357_v31, %v6360_v45 }
  0x63   : > { %534 = vadd.xlane.f32.xlu1 %v533_v16  ;;  %531 = vadd.xlane.f32.xlu0 %v530_v6  ;;  %v563_v16 = vsel %vm421_vm0, %v340_v1, 0.0  ;;  %v560_v6 = vsel %vm421_vm0, %v339_v2, 0.0  ;;  %v350_v1 = vmul.f32 %v6397_v57, %v6397_v57  ;;  %v6417_v2 = vld [vmem:[%s5889_s3 + $0x1d8] sm:$0xff] }
  0x64   : > { %5295 = vmatmul.mubr.msk.f32.gmra.mxu0 %vm421_vm0, %v1037_v9  ;;  %v1047_v9 = vsub.f32 %v6237_v36, %v919_v37 }
  0x65   : > { %5297 = vmatprep.mubr.msk.f32.mxu0 %vm421_vm0, %v1038_v10  ;;  %5506 = vmatmul.mubr.msk.f32.gmra.mxu1 %vm421_vm0, %v911_v18  ;;  %v6420_v18 = vld [vmem:[%s5889_s3 + $0x1d0] sm:$0xff]  ;;  %v1048_v10 = vsub.f32 %v6260_v49, %v920_v61  ;;  %v923_v49 = vunpack.c.h.bf16 %v836_v62 }
  0x66   : > { %5508 = vmatprep.mubr.msk.f32.mxu1 %vm421_vm0, %v912_v12  ;;  %v922_v12 = vunpack.c.l.bf16 %v836_v62  ;;  %v351_v36 = vmul.f32 %v6420_v18, %v6420_v18  ;;  %v841_v62 = vpack.c.bf16 %v6377_v44, %v6380_v58 }
  0x67   : > { %540 = vadd.xlane.f32.xlu1 %v539_v7  ;;  %537 = vadd.xlane.f32.xlu0 %v536_v26  ;;  %v569_v7 = vsel %vm421_vm0, %v342_v17, 0.0  ;;  %v566_v26 = vsel %vm421_vm0, %v341_v11, 0.0  ;;  %v352_v17 = vmul.f32 %v6417_v2, %v6417_v2  ;;  %v6437_v11 = vld [vmem:[%s5889_s3 + $0x1e8] sm:$0xff] }
  0x68   : > { %5298 = vmatmul.mubr.msk.f32.gmra.mxu0 %vm421_vm0, %v1039_v19  ;;  %v1049_v19 = vsub.f32 %v6257_v42, %v921_v43 }
  0x69   : > { %5300 = vmatprep.mubr.msk.f32.mxu0 %vm421_vm0, %v1040_v21  ;;  %5509 = vmatmul.mubr.msk.f32.gmra.mxu1 %vm421_vm0, %v913_v28  ;;  %v6440_v28 = vld [vmem:[%s5889_s3 + $0x1e0] sm:$0xff]  ;;  %v1050_v21 = vsub.f32 %v6280_v56, %v922_v12  ;;  %v925_v56 = vunpack.c.h.bf16 %v837_v15 }
  0x6a   : > { %5511 = vmatprep.mubr.msk.f32.mxu1 %vm421_vm0, %v914_v24  ;;  %v924_v24 = vunpack.c.l.bf16 %v837_v15  ;;  %v353_v42 = vmul.f32 %v6440_v28, %v6440_v28  ;;  %v842_v15 = vpack.c.bf16 %v6397_v57, %v6400_v8 }
  0x6b   : > { %546 = vadd.xlane.f32.xlu1 %v545_v39  ;;  %543 = vadd.xlane.f32.xlu0 %v542_v40  ;;  %v575_v39 = vsel %vm421_vm0, %v344_v27, 0.0  ;;  %v572_v40 = vsel %vm421_vm0, %v343_v14, 0.0  ;;  %v354_v27 = vmul.f32 %v6437_v11, %v6437_v11  ;;  %v6457_v14 = vld [vmem:[%s5889_s3 + $0x1f8] sm:$0xff] }
  0x6c   : > { %5301 = vmatmul.mubr.msk.f32.gmra.mxu0 %vm421_vm0, %v1041_v33  ;;  %v1051_v33 = vsub.f32 %v6277_v48, %v923_v49 }
  0x6d   : > { %5303 = vmatprep.mubr.msk.f32.mxu0 %vm421_vm0, %v1042_v34  ;;  %5512 = vmatmul.mubr.msk.f32.gmra.mxu1 %vm421_vm0, %v915_v23  ;;  %v6460_v23 = vld [vmem:[%s5889_s3 + $0x1f0] sm:$0xff]  ;;  %v1052_v34 = vsub.f32 %v6300_v4, %v924_v24  ;;  %v927_v4 = vunpack.c.h.bf16 %v838_v25 }
  0x6e   : > { %5514 = vmatprep.mubr.msk.f32.mxu1 %vm421_vm0, %v916_v35  ;;  %v926_v35 = vunpack.c.l.bf16 %v838_v25  ;;  %v355_v48 = vmul.f32 %v6460_v23, %v6460_v23  ;;  %v843_v25 = vpack.c.bf16 %v6417_v2, %v6420_v18 }
  0x6f   : > { %552 = vadd.xlane.f32.xlu1 %v551_v52  ;;  %549 = vadd.xlane.f32.xlu0 %v548_v53  ;;  %v581_v52 = vsel %vm421_vm0, %v346_v41, 0.0  ;;  %v578_v53 = vsel %vm421_vm0, %v345_v13, 0.0  ;;  %v356_v41 = vmul.f32 %v6457_v14, %v6457_v14  ;;  %v6477_v13 = vld [vmem:[%s5889_s3 + $0x208] sm:$0xff] }
  0x70   : > { %5304 = vmatmul.mubr.msk.f32.gmra.mxu0 %vm421_vm0, %v1043_v46  ;;  %v1053_v46 = vsub.f32 %v6297_v55, %v925_v56 }
  0x71   : > { %5306 = vmatprep.mubr.msk.f32.mxu0 %vm421_vm0, %v1044_v47  ;;  %5515 = vmatmul.mubr.msk.f32.gmra.mxu1 %vm421_vm0, %v917_v30  ;;  %v6480_v30 = vld [vmem:[%s5889_s3 + $0x200] sm:$0xff]  ;;  %v1054_v47 = vsub.f32 %v6320_v20, %v926_v35  ;;  %v929_v20 = vunpack.c.h.bf16 %v839_v38 }
  0x72   : > { %5517 = vmatprep.mubr.msk.f32.mxu1 %vm421_vm0, %v918_v50  ;;  %v928_v50 = vunpack.c.l.bf16 %v839_v38  ;;  %v357_v55 = vmul.f32 %v6480_v30, %v6480_v30  ;;  %v844_v38 = vpack.c.bf16 %v6437_v11, %v6440_v28 }
  0x73   : > { %558 = vadd.xlane.f32.xlu1 %v557_v63  ;;  %555 = vadd.xlane.f32.xlu0 %v554_v0  ;;  %v587_v63 = vsel %vm421_vm0, %v348_v54, 0.0  ;;  %v584_v0 = vsel %vm421_vm0, %v347_v22, 0.0  ;;  %v358_v54 = vmul.f32 %v6477_v13, %v6477_v13  ;;  %v6497_v22 = vld [vmem:[%s5889_s3 + $0x218] sm:$0xff] }
  0x74   : > { %5307 = vmatmul.mubr.msk.f32.gmra.mxu0 %vm421_vm0, %v1045_v59  ;;  %v1055_v59 = vsub.f32 %v6317_v3, %v927_v4 }
  0x75   : > { %5309 = vmatprep.mubr.msk.f32.mxu0 %vm421_vm0, %v1046_v60  ;;  %5518 = vmatmul.mubr.msk.f32.gmra.mxu1 %vm421_vm0, %v919_v37  ;;  %v6500_v37 = vld [vmem:[%s5889_s3 + $0x210] sm:$0xff]  ;;  %v1056_v60 = vsub.f32 %v6340_v32, %v928_v50  ;;  %v931_v32 = vunpack.c.h.bf16 %v840_v51 }
  0x76   : > { %5520 = vmatprep.mubr.msk.f32.mxu1 %vm421_vm0, %v920_v61  ;;  %v930_v61 = vunpack.c.l.bf16 %v840_v51  ;;  %v359_v3 = vmul.f32 %v6500_v37, %v6500_v37 }
  0x77   : > { %564 = vadd.xlane.f32.xlu1 %v563_v16  ;;  %561 = vadd.xlane.f32.xlu0 %v560_v6  ;;  %v593_v16 = vsel %vm421_vm0, %v350_v1, 0.0  ;;  %v590_v6 = vsel %vm421_vm0, %v349_v29, 0.0  ;;  %v360_v1 = vmul.f32 %v6497_v22, %v6497_v22  ;;  %v6517_v29 = vld [vmem:[%s5889_s3 + $0x228] sm:$0xff] }
  0x78   : > { %5310 = vmatmul.mubr.msk.f32.gmra.mxu0 %vm421_vm0, %v1047_v9  ;;  %v1057_v9 = vsub.f32 %v6337_v5, %v929_v20 }
  0x79   : > { %5312 = vmatprep.mubr.msk.f32.mxu0 %vm421_vm0, %v1048_v10  ;;  %5521 = vmatmul.mubr.msk.f32.gmra.mxu1 %vm421_vm0, %v921_v43  ;;  %v6520_v43 = vld [vmem:[%s5889_s3 + $0x220] sm:$0xff]  ;;  %v1058_v10 = vsub.f32 %v6360_v45, %v930_v61  ;;  %v933_v45 = vunpack.c.h.bf16 %v841_v62 }
  0x7a   : > { %5523 = vmatprep.mubr.msk.f32.mxu1 %vm421_vm0, %v922_v12  ;;  %v932_v12 = vunpack.c.l.bf16 %v841_v62  ;;  %v361_v5 = vmul.f32 %v6520_v43, %v6520_v43  ;;  %v6608_v62 = vld [vmem:[%s5889_s3 + $0x260] sm:$0xff] }
  0x7b   : > { %570 = vadd.xlane.f32.xlu1 %v569_v7  ;;  %567 = vadd.xlane.f32.xlu0 %v566_v26  ;;  %v599_v7 = vsel %vm421_vm0, %v352_v17, 0.0  ;;  %v596_v26 = vsel %vm421_vm0, %v351_v36, 0.0  ;;  %v362_v17 = vmul.f32 %v6517_v29, %v6517_v29  ;;  %v6537_v36 = vld [vmem:[%s5889_s3 + $0x238] sm:$0xff] }
  0x7c   : > { %5313 = vmatmul.mubr.msk.f32.gmra.mxu0 %vm421_vm0, %v1049_v19  ;;  %v1059_v19 = vsub.f32 %v6357_v31, %v931_v32 }
  0x7d   : > { %5315 = vmatprep.mubr.msk.f32.mxu0 %vm421_vm0, %v1050_v21  ;;  %5524 = vmatmul.mubr.msk.f32.gmra.mxu1 %vm421_vm0, %v923_v49  ;;  %v6540_v49 = vld [vmem:[%s5889_s3 + $0x230] sm:$0xff]  ;;  %v1060_v21 = vsub.f32 %v6380_v58, %v932_v12  ;;  %v935_v58 = vunpack.c.h.bf16 %v842_v15 }
  0x7e   : > { %5526 = vmatprep.mubr.msk.f32.mxu1 %vm421_vm0, %v924_v24  ;;  %v934_v24 = vunpack.c.l.bf16 %v842_v15  ;;  %v363_v31 = vmul.f32 %v6540_v49, %v6540_v49 }
  0x7f   : > { %576 = vadd.xlane.f32.xlu1 %v575_v39  ;;  %573 = vadd.xlane.f32.xlu0 %v572_v40  ;;  %v605_v39 = vsel %vm421_vm0, %v354_v27, 0.0  ;;  %v602_v40 = vsel %vm421_vm0, %v353_v42, 0.0  ;;  %v364_v27 = vmul.f32 %v6537_v36, %v6537_v36  ;;  %v6557_v42 = vld [vmem:[%s5889_s3 + $0x248] sm:$0xff] }
  0x80   : > { %5316 = vmatmul.mubr.msk.f32.gmra.mxu0 %vm421_vm0, %v1051_v33  ;;  %v1061_v33 = vsub.f32 %v6377_v44, %v933_v45 }
  0x81   : > { %5318 = vmatprep.mubr.msk.f32.mxu0 %vm421_vm0, %v1052_v34  ;;  %5527 = vmatmul.mubr.msk.f32.gmra.mxu1 %vm421_vm0, %v925_v56  ;;  %v6560_v56 = vld [vmem:[%s5889_s3 + $0x240] sm:$0xff]  ;;  %v1062_v34 = vsub.f32 %v6400_v8, %v934_v24  ;;  %v635_v44 = vsel %vm421_vm0, %v364_v27, 0.0  ;;  %v366_v8 = vmul.f32 %v6557_v42, %v6557_v42  ;;  %v6653_v27 = vld [vmem:[%s5889_s3 + $0x288] sm:$0xff] }
  0x82   : > { %5529 = vmatprep.mubr.msk.f32.mxu1 %vm421_vm0, %v926_v35  ;;  %v936_v35 = vunpack.c.l.bf16 %v843_v25 }
  0x83   : > { %582 = vadd.xlane.f32.xlu1 %v581_v52  ;;  %579 = vadd.xlane.f32.xlu0 %v578_v53  ;;  %v611_v52 = vsel %vm421_vm0, %v356_v41, 0.0  ;;  %v608_v53 = vsel %vm421_vm0, %v355_v48, 0.0  ;;  %v632_v41 = vsel %vm421_vm0, %v363_v31, 0.0  ;;  %v365_v48 = vmul.f32 %v6560_v56, %v6560_v56  ;;  %v6656_v31 = vld [vmem:[%s5889_s3 + $0x280] sm:$0xff] }
  0x84   : > { %5319 = vmatmul.mubr.msk.f32.gmra.mxu0 %vm421_vm0, %v1053_v46  ;;  %v6581_v46 = vld [vmem:[%s5889_s3 + $0x258] sm:$0xff]  ;;  %v1064_v51 = vsub.f32 %v6420_v18, %v936_v35 }
  0x85   : > { %5321 = vmatprep.mubr.msk.f32.mxu0 %vm421_vm0, %v1054_v47  ;;  %5530 = vmatmul.mubr.msk.f32.gmra.mxu1 %vm421_vm0, %v927_v4  ;;  %v937_v4 = vunpack.c.h.bf16 %v843_v25  ;;  %v6584_v47 = vld [vmem:[%s5889_s3 + $0x250] sm:$0xff]  ;;  %v368_v18 = vmul.f32 %v6581_v46, %v6581_v46 }
  0x86   : > { %5532 = vmatprep.mubr.msk.f32.mxu1 %vm421_vm0, %v928_v50  ;;  %v1063_v50 = vsub.f32 %v6397_v57, %v935_v58  ;;  %v641_v57 = vsel %vm421_vm0, %v366_v8, 0.0  ;;  %v373_v8 = vmul.f32 %v6656_v31, %v6656_v31 }
  0x87   : > { %588 = vadd.xlane.f32.xlu1 %v587_v63  ;;  %585 = vadd.xlane.f32.xlu0 %v584_v0  ;;  %v617_v63 = vsel %vm421_vm0, %v358_v54, 0.0  ;;  %v614_v0 = vsel %vm421_vm0, %v357_v55, 0.0 }
  0x88   : > { %5322 = vmatmul.mubr.msk.f32.gmra.mxu0 %vm421_vm0, %v1055_v59  ;;  %v367_v59 = vmul.f32 %v6584_v47, %v6584_v47 }
  0x89   : > { %5324 = vmatprep.mubr.msk.f32.mxu0 %vm421_vm0, %v1056_v60  ;;  %5533 = vmatmul.mubr.msk.f32.gmra.mxu1 %vm421_vm0, %v929_v20  ;;  %v638_v20 = vsel %vm421_vm0, %v365_v48, 0.0  ;;  %v939_v60 = vunpack.c.h.bf16 %v844_v38 }
  0x8a   : > { %5535 = vmatprep.mubr.msk.f32.mxu1 %vm421_vm0, %v930_v61  ;;  %v6605_v61 = vld [vmem:[%s5889_s3 + $0x268] sm:$0xff] }
  0x8b   : > { %594 = vadd.xlane.f32.xlu1 %v593_v16  ;;  %591 = vadd.xlane.f32.xlu0 %v590_v6  ;;  %v623_v16 = vsel %vm421_vm0, %v360_v1, 0.0  ;;  %v620_v6 = vsel %vm421_vm0, %v359_v3, 0.0  ;;  %v846_v3 = vpack.c.bf16 %v6477_v13, %v6480_v30 }
  0x8c   : > { %5325 = vmatmul.mubr.msk.f32.gmra.mxu0 %vm421_vm0, %v1057_v9 }
  0x8d   : > { %5327 = vmatprep.mubr.msk.f32.mxu0 %vm421_vm0, %v1058_v10  ;;  %5536 = vmatmul.mubr.msk.f32.gmra.mxu1 %vm421_vm0, %v931_v32  ;;  %v644_v10 = vsel %vm421_vm0, %v367_v59, 0.0  ;;  %v662_v59 = vsel %vm421_vm0, %v373_v8, 0.0 }
  0x8e   : > { %5538 = vmatprep.mubr.msk.f32.mxu1 %vm421_vm0, %v932_v12  ;;  %v369_v12 = vmul.f32 %v6608_v62, %v6608_v62 }
  0x8f   : > { %600 = vadd.xlane.f32.xlu1 %v599_v7  ;;  %597 = vadd.xlane.f32.xlu0 %v596_v26  ;;  %v629_v7 = vsel %vm421_vm0, %v362_v17, 0.0  ;;  %v626_v26 = vsel %vm421_vm0, %v361_v5, 0.0  ;;  %v1067_v17 = vsub.f32 %v6437_v11, %v939_v60 }
  0x90   : > { %5328 = vmatmul.mubr.msk.f32.gmra.mxu0 %vm421_vm0, %v1059_v19  ;;  %v847_v19 = vpack.c.bf16 %v6497_v22, %v6500_v37  ;;  %v650_v25 = vsel %vm421_vm0, %v369_v12, 0.0 }
  0x91   : > { %5330 = vmatprep.mubr.msk.f32.mxu0 %vm421_vm0, %v1060_v21  ;;  %5539 = vmatmul.mubr.msk.f32.gmra.mxu1 %vm421_vm0, %v933_v45  ;;  %v942_v45 = vunpack.c.l.bf16 %v846_v3 }
  0x92   : > { %5541 = vmatprep.mubr.msk.f32.mxu1 %vm421_vm0, %v934_v24  ;;  %v945_v48 = vunpack.c.h.bf16 %v847_v19 }
  0x93   : > { %606 = vadd.xlane.f32.xlu1 %v605_v39  ;;  %603 = vadd.xlane.f32.xlu0 %v602_v40 }
  0x94   : > { %5331 = vmatmul.mubr.msk.f32.gmra.mxu0 %vm421_vm0, %v1061_v33  ;;  %v1070_v33 = vsub.f32 %v6480_v30, %v942_v45  ;;  %v374_v30 = vmul.f32 %v6653_v27, %v6653_v27 }
  0x95   : > { %5333 = vmatprep.mubr.msk.f32.mxu0 %vm421_vm0, %v1062_v34  ;;  %5542 = vmatmul.mubr.msk.f32.gmra.mxu1 %vm421_vm0, %v935_v58  ;;  %v944_v34 = vunpack.c.l.bf16 %v847_v19  ;;  %v6725_v19 = vld [vmem:[%s5889_s3 + $0x2b8] sm:$0xff] }
  0x96   : > { %5544 = vmatprep.mubr.msk.f32.mxu1 %vm421_vm0, %v936_v35  ;;  %v848_v35 = vpack.c.bf16 %v6517_v29, %v6520_v43 }
  0x97   : > { %612 = vadd.xlane.f32.xlu1 %v611_v52  ;;  %609 = vadd.xlane.f32.xlu0 %v608_v53  ;;  %v938_v52 = vunpack.c.l.bf16 %v844_v38  ;;  %v845_v53 = vpack.c.bf16 %v6457_v14, %v6460_v23 }
  0x98   : > { %5334 = vmatmul.mubr.msk.f32.gmra.mxu0 %vm421_vm0, %v1063_v50  ;;  %v6680_v50 = vld [vmem:[%s5889_s3 + $0x290] sm:$0xff] }
  0x99   : > { %v940_v1 = vunpack.c.l.bf16 %v845_v53  ;;  %5336 = vmatprep.mubr.msk.f32.mxu0 %vm421_vm0, %v1064_v51  ;;  %5545 = vmatmul.mubr.msk.f32.gmra.mxu1 %vm421_vm0, %v937_v4  ;;  %v941_v15 = vunpack.c.h.bf16 %v845_v53  ;;  %v946_v53 = vunpack.c.l.bf16 %v848_v35 }
  0x9a   : > { %5547 = vmatprep.mubr.msk.f32.mxu1 %vm421_vm0, %v938_v52 }
  0x9b   : > { %618 = vadd.xlane.f32.xlu1 %v617_v63  ;;  %615 = vadd.xlane.f32.xlu0 %v614_v0  ;;  %v1065_v63 = vsub.f32 %v6417_v2, %v937_v4  ;;  %v1066_v0 = vsub.f32 %v6440_v28, %v938_v52  ;;  %v647_v2 = vsel %vm421_vm0, %v368_v18, 0.0  ;;  %v370_v28 = vmul.f32 %v6605_v61, %v6605_v61  ;;  %v6677_v4 = vld [vmem:[%s5889_s3 + $0x298] sm:$0xff] }
  0x9c   : > { %v1068_v5 = vsub.f32 %v6460_v23, %v940_v1  ;;  %v1069_v58 = vsub.f32 %v6457_v14, %v941_v15  ;;  %v1072_v52 = vsub.f32 %v6500_v37, %v944_v34  ;;  %v376_v37 = vmul.f32 %v6677_v4, %v6677_v4 }
  0x9d   : > { %5337 = vmatmul.mubr.msk.f32.gmra.mxu0 %vm421_vm0, %v1065_v63  ;;  %5548 = vmatmul.mubr.msk.f32.gmra.mxu1 %vm421_vm0, %v939_v60  ;;  %v653_v11 = vsel %vm421_vm0, %v370_v28, 0.0  ;;  %v375_v60 = vmul.f32 %v6680_v50, %v6680_v50  ;;  %v947_v63 = vunpack.c.h.bf16 %v848_v35  ;;  %v850_v28 = vpack.c.bf16 %v6557_v42, %v6560_v56 }
  0x9e   : > { %5339 = vmatprep.mubr.msk.f32.mxu0 %vm421_vm0, %v1066_v0  ;;  %5550 = vmatprep.mubr.msk.f32.mxu1 %vm421_vm0, %v940_v1  ;;  %v6701_v0 = vld [vmem:[%s5889_s3 + $0x2a8] sm:$0xff]  ;;  %v6704_v1 = vld [vmem:[%s5889_s3 + $0x2a0] sm:$0xff] }
  0x9f   : > { %624 = vadd.xlane.f32.xlu1 %v623_v16  ;;  %621 = vadd.xlane.f32.xlu0 %v620_v6  ;;  %v6629_v16 = vld [vmem:[%s5889_s3 + $0x278] sm:$0xff]  ;;  %v6632_v6 = vld [vmem:[%s5889_s3 + $0x270] sm:$0xff] }
  0xa0   : > { %v372_v23 = vmul.f32 %v6629_v16, %v6629_v16 }
  0xa1   : > { %5340 = vmatmul.mubr.msk.f32.gmra.mxu0 %vm421_vm0, %v1067_v17  ;;  %5551 = vmatmul.mubr.msk.f32.gmra.mxu1 %vm421_vm0, %v941_v15  ;;  %v668_v17 = vsel %vm421_vm0, %v375_v60, 0.0  ;;  %v6773_v60 = vld [vmem:[%s5889_s3 + $0x2d8] sm:$0xff] }
  0xa2   : > { %5342 = vmatprep.mubr.msk.f32.mxu0 %vm421_vm0, %v1068_v5  ;;  %v659_v14 = vsel %vm421_vm0, %v372_v23, 0.0  ;;  %5553 = vmatprep.mubr.msk.f32.mxu1 %vm421_vm0, %v942_v45  ;;  %v377_v5 = vmul.f32 %v6704_v1, %v6704_v1 }
  0xa3   : > { %630 = vadd.xlane.f32.xlu1 %v629_v7  ;;  %627 = vadd.xlane.f32.xlu0 %v626_v26  ;;  %v371_v7 = vmul.f32 %v6632_v6, %v6632_v6  ;;  %v943_v26 = vunpack.c.h.bf16 %v846_v3  ;;  %v1073_v3 = vsub.f32 %v6497_v22, %v945_v48  ;;  %v671_v22 = vsel %vm421_vm0, %v376_v37, 0.0 }
  0xa4   : > { %v6569_v39 = vpop.xlane.xlu1 %429  ;;  %v6571_v40 = vpop.xlane.xlu0 %423 }
  0xa5   : > { %8952 = vst [vmem:[#allocation3_spill] sm:$0xff] %v6569_v39  ;;  %5343 = vmatmul.mubr.msk.f32.gmra.mxu0 %vm421_vm0, %v1069_v58  ;;  %v1071_v51 = vsub.f32 %v6477_v13, %v943_v26  ;;  %5554 = vmatmul.mubr.msk.f32.gmra.mxu1 %vm421_vm0, %v943_v26  ;;  %v665_v13 = vsel %vm421_vm0, %v374_v30, 0.0  ;;  %v851_v26 = vpack.c.bf16 %v6581_v46, %v6584_v47  ;;  %v6752_v30 = vld [vmem:[%s5889_s3 + $0x2c0] sm:$0xff] }
  0xa6   : > { %5345 = vmatprep.mubr.msk.f32.mxu0 %vm421_vm0, %v1070_v33  ;;  %5556 = vmatprep.mubr.msk.f32.mxu1 %vm421_vm0, %v944_v34  ;;  %v674_v34 = vsel %vm421_vm0, %v377_v5, 0.0 }
  0xa7   : > { %636 = vadd.xlane.f32.xlu1 %v635_v44  ;;  %633 = vadd.xlane.f32.xlu0 %v632_v41  ;;  %v656_v41 = vsel %vm421_vm0, %v371_v7, 0.0  ;;  %v950_v7 = vunpack.c.l.bf16 %v850_v28  ;;  %v953_v37 = vunpack.c.h.bf16 %v851_v26 }
  0xa8   : > { %v6593_v54 = vpop.xlane.xlu1 %432  ;;  %v6595_v55 = vpop.xlane.xlu0 %426 }
  0xa9   : > { %5346 = vmatmul.mubr.msk.f32.gmra.mxu0 %vm421_vm0, %v1071_v51  ;;  %5557 = vmatmul.mubr.msk.f32.gmra.mxu1 %vm421_vm0, %v945_v48  ;;  %v1078_v48 = vsub.f32 %v6560_v56, %v950_v7  ;;  %v952_v51 = vunpack.c.l.bf16 %v851_v26 }
  0xaa   : > { %5348 = vmatprep.mubr.msk.f32.mxu0 %vm421_vm0, %v1072_v52  ;;  %5559 = vmatprep.mubr.msk.f32.mxu1 %vm421_vm0, %v946_v53  ;;  %v852_v52 = vpack.c.bf16 %v6605_v61, %v6608_v62 }
  0xab   : > { %642 = vadd.xlane.f32.xlu1 %v641_v57  ;;  %639 = vadd.xlane.f32.xlu0 %v638_v20  ;;  %v849_v57 = vpack.c.bf16 %v6537_v36, %v6540_v49 }
  0xac   : > { %v6617_v32 = vpop.xlane.xlu1 %438  ;;  %v6619_v9 = vpop.xlane.xlu0 %435 }
  0xad   : > { %8953 = vst [vmem:[#allocation4_spill] sm:$0xff] %v6617_v32  ;;  %8954 = vst [vmem:[#allocation5_spill] sm:$0xff] %v6619_v9  ;;  %v949_v45 = vunpack.c.h.bf16 %v849_v57  ;;  %5349 = vmatmul.mubr.msk.f32.gmra.mxu0 %vm421_vm0, %v1073_v3  ;;  %5560 = vmatmul.mubr.msk.f32.gmra.mxu1 %vm421_vm0, %v947_v63 }
  0xaf   : > { %648 = vadd.xlane.f32.xlu1 %v647_v2  ;;  %645 = vadd.xlane.f32.xlu0 %v644_v10  ;;  %v1074_v2 = vsub.f32 %v6520_v43, %v946_v53  ;;  %v948_v10 = vunpack.c.l.bf16 %v849_v57  ;;  %v378_v43 = vmul.f32 %v6701_v0, %v6701_v0  ;;  %v1077_v8 = vsub.f32 %v6537_v36, %v949_v45 }
  0xb0   : > { %v6641_v21 = vpop.xlane.xlu1 %444  ;;  %v6643_v24 = vpop.xlane.xlu0 %441 }
  0xb1   : > { %8955 = vst [vmem:[#allocation6_spill] sm:$0xff] %v6641_v21  ;;  %8956 = vst [vmem:[#allocation7_spill] sm:$0xff] %v6643_v24  ;;  %v1076_v23 = vsub.f32 %v6540_v49, %v948_v10  ;;  %5351 = vmatprep.mubr.msk.f32.mxu0 %vm421_vm0, %v1074_v2  ;;  %v380_v49 = vmul.f32 %v6725_v19, %v6725_v19  ;;  %5562 = vmatprep.mubr.msk.f32.mxu1 %vm421_vm0, %v948_v10  ;;  %v954_v10 = vunpack.c.l.bf16 %v852_v52 }
  0xb2   : > { %5563 = vmatmul.mubr.msk.f32.gmra.mxu1 %vm421_vm0, %v949_v45  ;;  %v1080_v2 = vsub.f32 %v6584_v47, %v952_v51  ;;  %v384_v47 = vmul.f32 %v6773_v60, %v6773_v60  ;;  %v955_v45 = vunpack.c.h.bf16 %v852_v52  ;;  %v6824_v52 = vld [vmem:[%s5889_s3 + $0x2f0] sm:$0xff] }
  0xb3   : > { %654 = vadd.xlane.f32.xlu1 %v653_v11  ;;  %651 = vadd.xlane.f32.xlu0 %v650_v25  ;;  %v6728_v11 = vld [vmem:[%s5889_s3 + $0x2b0] sm:$0xff]  ;;  %v1075_v25 = vsub.f32 %v6517_v29, %v947_v63  ;;  %v677_v29 = vsel %vm421_vm0, %v378_v43, 0.0  ;;  %v683_v36 = vsel %vm421_vm0, %v380_v49, 0.0  ;;  %v1082_v26 = vsub.f32 %v6608_v62, %v954_v10 }
  0xb4   : > { %v6665_v38 = vpop.xlane.xlu1 %450  ;;  %v6667_v44 = vpop.xlane.xlu0 %447  ;;  %v379_v35 = vmul.f32 %v6728_v11, %v6728_v11  ;;  %5565 = vmatprep.mubr.msk.f32.mxu1 %vm421_vm0, %v950_v7  ;;  %v6776_v63 = vld [vmem:[%s5889_s3 + $0x2d0] sm:$0xff]  ;;  %v1081_v7 = vsub.f32 %v6581_v46, %v953_v37  ;;  %v695_v46 = vsel %vm421_vm0, %v384_v47, 0.0 }
  0xb5   : > { %8957 = vst [vmem:[#allocation8_spill] sm:$0xff] %v6665_v38  ;;  %8958 = vst [vmem:[#allocation9_spill] sm:$0xff] %v6667_v44  ;;  %5352 = vmatmul.mubr.msk.f32.gmra.mxu0 %vm421_vm0, %v1075_v25  ;;  %v383_v5 = vmul.f32 %v6776_v63, %v6776_v63  ;;  %v6797_v25 = vld [vmem:[%s5889_s3 + $0x2e8] sm:$0xff] }
  0xb6   : > { %5354 = vmatprep.mubr.msk.f32.mxu0 %vm421_vm0, %v1076_v23  ;;  %v6800_v23 = vld [vmem:[%s5889_s3 + $0x2e0] sm:$0xff]  ;;  %v386_v62 = vmul.f32 %v6797_v25, %v6797_v25 }
  0xb7   : > { %660 = vadd.xlane.f32.xlu1 %v659_v14  ;;  %657 = vadd.xlane.f32.xlu0 %v656_v41  ;;  %v951_v14 = vunpack.c.h.bf16 %v850_v28  ;;  %v6749_v41 = vld [vmem:[%s5889_s3 + $0x2c8] sm:$0xff]  ;;  %v853_v28 = vpack.c.bf16 %v6629_v16, %v6632_v6 }
  0xb8   : > { %v6689_v20 = vpop.xlane.xlu1 %456  ;;  %v6691_v18 = vpop.xlane.xlu0 %453  ;;  %v382_v56 = vmul.f32 %v6749_v41, %v6749_v41 }
  0xb9   : > { %8959 = vst [vmem:[#allocation10_spill] sm:$0xff] %v6689_v20  ;;  %8960 = vst [vmem:[#allocation11_spill] sm:$0xff] %v6691_v18  ;;  %5355 = vmatmul.mubr.msk.f32.gmra.mxu0 %vm421_vm0, %v1077_v8  ;;  %v1079_v3 = vsub.f32 %v6557_v42, %v951_v14  ;;  %5566 = vmatmul.mubr.msk.f32.gmra.mxu1 %vm421_vm0, %v951_v14  ;;  %v692_v14 = vsel %vm421_vm0, %v383_v5, 0.0  ;;  %v385_v8 = vmul.f32 %v6800_v23, %v6800_v23 }
  0xba   : > { %5357 = vmatprep.mubr.msk.f32.mxu0 %vm421_vm0, %v1078_v48  ;;  %v689_v42 = vsel %vm421_vm0, %v382_v56, 0.0  ;;  %5568 = vmatprep.mubr.msk.f32.mxu1 %vm421_vm0, %v952_v51  ;;  %v957_v48 = vunpack.c.h.bf16 %v853_v28  ;;  %v6821_v51 = vld [vmem:[%s5889_s3 + $0x2f8] sm:$0xff] }
  0xbb   : > { %666 = vadd.xlane.f32.xlu1 %v665_v13  ;;  %663 = vadd.xlane.f32.xlu0 %v662_v59  ;;  %v680_v13 = vsel %vm421_vm0, %v379_v35, 0.0  ;;  %v381_v59 = vmul.f32 %v6752_v30, %v6752_v30 }
  0xbc   : > { %v6713_v12 = vpop.xlane.xlu1 %462  ;;  %v6715_v15 = vpop.xlane.xlu0 %459  ;;  %v1085_v47 = vsub.f32 %v6629_v16, %v957_v48 }
  0xbd   : > { %8961 = vst [vmem:[#allocation12_spill] sm:$0xff] %v6713_v12  ;;  %8962 = vst [vmem:[#allocation13_spill] sm:$0xff] %v6715_v15  ;;  %v686_v43 = vsel %vm421_vm0, %v381_v59, 0.0  ;;  %5358 = vmatmul.mubr.msk.f32.gmra.mxu0 %vm421_vm0, %v1079_v3  ;;  %5569 = vmatmul.mubr.msk.f32.gmra.mxu1 %vm421_vm0, %v953_v37  ;;  %v855_v59 = vpack.c.bf16 %v6677_v4, %v6680_v50 }
  0xbe   : > { %5360 = vmatprep.mubr.msk.f32.mxu0 %vm421_vm0, %v1080_v2  ;;  %5571 = vmatprep.mubr.msk.f32.mxu1 %vm421_vm0, %v954_v10  ;;  %v698_v2 = vsel %vm421_vm0, %v385_v8, 0.0  ;;  %v387_v10 = vmul.f32 %v6824_v52, %v6824_v52  ;;  %v6872_v8 = vld [vmem:[%s5889_s3 + $0x310] sm:$0xff] }
  0xbf   : > { %672 = vadd.xlane.f32.xlu1 %v671_v22  ;;  %669 = vadd.xlane.f32.xlu0 %v668_v17 }
  0xc0   : > { %v6737_v58 = vpop.xlane.xlu1 %468  ;;  %v6739_v33 = vpop.xlane.xlu0 %465 }
  0xc1   : > { %8963 = vst [vmem:[#allocation14_spill] sm:$0xff] %v6737_v58  ;;  %8964 = vst [vmem:[#allocation15_spill] sm:$0xff] %v6739_v33  ;;  %5361 = vmatmul.mubr.msk.f32.gmra.mxu0 %vm421_vm0, %v1081_v7  ;;  %5572 = vmatmul.mubr.msk.f32.gmra.mxu1 %vm421_vm0, %v955_v45  ;;  %v856_v7 = vpack.c.bf16 %v6701_v0, %v6704_v1 }
  0xc2   : > { %5363 = vmatprep.mubr.msk.f32.mxu0 %vm421_vm0, %v1082_v26 }
  0xc3   : > { %678 = vadd.xlane.f32.xlu1 %v677_v29  ;;  %675 = vadd.xlane.f32.xlu0 %v674_v34  ;;  %v956_v29 = vunpack.c.l.bf16 %v853_v28  ;;  %v854_v34 = vpack.c.bf16 %v6653_v27, %v6656_v31 }
  0xc4   : > { %v6761_v53 = vpop.xlane.xlu1 %474  ;;  %v6763_v57 = vpop.xlane.xlu0 %471 }
  0xc5   : > { %8965 = vst [vmem:[#allocation16_spill] sm:$0xff] %v6761_v53  ;;  %8966 = vst [vmem:[#allocation17_spill] sm:$0xff] %v6763_v57  ;;  %v958_v56 = vunpack.c.l.bf16 %v854_v34  ;;  %5574 = vmatprep.mubr.msk.f32.mxu1 %vm421_vm0, %v956_v29  ;;  %v959_v28 = vunpack.c.h.bf16 %v854_v34  ;;  %v704_v34 = vsel %vm421_vm0, %v387_v10, 0.0  ;;  %v963_v10 = vunpack.c.h.bf16 %v856_v7 }
  0xc6   : > { %5575 = vmatmul.mubr.msk.f32.gmra.mxu1 %vm421_vm0, %v957_v48 }
  0xc7   : > { %684 = vadd.xlane.f32.xlu1 %v683_v36  ;;  %681 = vadd.xlane.f32.xlu0 %v680_v13  ;;  %v1083_v36 = vsub.f32 %v6605_v61, %v955_v45  ;;  %v1084_v13 = vsub.f32 %v6632_v6, %v956_v29  ;;  %v701_v61 = vsel %vm421_vm0, %v386_v62, 0.0  ;;  %v388_v6 = vmul.f32 %v6821_v51, %v6821_v51  ;;  %v6869_v62 = vld [vmem:[%s5889_s3 + $0x318] sm:$0xff] }
  0xc8   : > { %v6785_v22 = vpop.xlane.xlu1 %480  ;;  %v6787_v17 = vpop.xlane.xlu0 %477  ;;  %v1086_v5 = vsub.f32 %v6656_v31, %v958_v56  ;;  %v960_v45 = vunpack.c.l.bf16 %v855_v59  ;;  %5577 = vmatprep.mubr.msk.f32.mxu1 %vm421_vm0, %v958_v56  ;;  %v1087_v48 = vsub.f32 %v6653_v27, %v959_v28 }
  0xc9   : > { %8967 = vst [vmem:[#allocation18_spill] sm:$0xff] %v6785_v22  ;;  %8968 = vst [vmem:[#allocation19_spill] sm:$0xff] %v6787_v17  ;;  %5364 = vmatmul.mubr.msk.f32.gmra.mxu0 %vm421_vm0, %v1083_v36  ;;  %v707_v16 = vsel %vm421_vm0, %v388_v6, 0.0  ;;  %v391_v6 = vmul.f32 %v6872_v8, %v6872_v8 }
  0xca   : > { %5366 = vmatprep.mubr.msk.f32.mxu0 %vm421_vm0, %v1084_v13  ;;  %v1088_v36 = vsub.f32 %v6680_v50, %v960_v45  ;;  %v962_v13 = vunpack.c.l.bf16 %v856_v7  ;;  %5578 = vmatmul.mubr.msk.f32.gmra.mxu1 %vm421_vm0, %v959_v28  ;;  %v392_v50 = vmul.f32 %v6869_v62, %v6869_v62  ;;  %v6893_v28 = vld [vmem:[%s5889_s3 + $0x328] sm:$0xff] }
  0xcb   : > { %690 = vadd.xlane.f32.xlu1 %v689_v42  ;;  %687 = vadd.xlane.f32.xlu0 %v686_v43  ;;  %v6845_v42 = vld [vmem:[%s5889_s3 + $0x308] sm:$0xff]  ;;  %v6848_v43 = vld [vmem:[%s5889_s3 + $0x300] sm:$0xff] }
  0xcc   : > { %v6809_v49 = vpop.xlane.xlu1 %486  ;;  %v6811_v35 = vpop.xlane.xlu0 %483  ;;  %v390_v31 = vmul.f32 %v6845_v42, %v6845_v42  ;;  %5580 = vmatprep.mubr.msk.f32.mxu1 %vm421_vm0, %v960_v45 }
  0xcd   : > { %8969 = vst [vmem:[#allocation20_spill] sm:$0xff] %v6809_v49  ;;  %8970 = vst [vmem:[#allocation21_spill] sm:$0xff] %v6811_v35  ;;  %5367 = vmatmul.mubr.msk.f32.gmra.mxu0 %vm421_vm0, %v1085_v47  ;;  %v6896_v47 = vld [vmem:[%s5889_s3 + $0x320] sm:$0xff] }
  0xce   : > { %5369 = vmatprep.mubr.msk.f32.mxu0 %vm421_vm0, %v1086_v5  ;;  %v713_v27 = vsel %vm421_vm0, %v390_v31, 0.0  ;;  %v858_v31 = vpack.c.bf16 %v6749_v41, %v6752_v30 }
  0xcf   : > { %696 = vadd.xlane.f32.xlu1 %v695_v46  ;;  %693 = vadd.xlane.f32.xlu0 %v692_v14  ;;  %v389_v46 = vmul.f32 %v6848_v43, %v6848_v43  ;;  %v961_v14 = vunpack.c.h.bf16 %v855_v59 }
  0xd0   : > { %v6833_v37 = vpop.xlane.xlu1 %492  ;;  %v6835_v3 = vpop.xlane.xlu0 %489 }
  0xd1   : > { %8971 = vst [vmem:[#allocation22_spill] sm:$0xff] %v6833_v37  ;;  %8972 = vst [vmem:[#allocation23_spill] sm:$0xff] %v6835_v3  ;;  %5370 = vmatmul.mubr.msk.f32.gmra.mxu0 %vm421_vm0, %v1087_v48  ;;  %v1089_v5 = vsub.f32 %v6677_v4, %v961_v14  ;;  %5581 = vmatmul.mubr.msk.f32.gmra.mxu1 %vm421_vm0, %v961_v14  ;;  %v719_v4 = vsel %vm421_vm0, %v392_v50, 0.0  ;;  %v393_v48 = vmul.f32 %v6896_v47, %v6896_v47  ;;  %v6917_v14 = vld [vmem:[%s5889_s3 + $0x338] sm:$0xff] }
  0xd2   : > { %5372 = vmatprep.mubr.msk.f32.mxu0 %vm421_vm0, %v1088_v36  ;;  %5583 = vmatprep.mubr.msk.f32.mxu1 %vm421_vm0, %v962_v13 }
  0xd3   : > { %702 = vadd.xlane.f32.xlu1 %v701_v61  ;;  %699 = vadd.xlane.f32.xlu0 %v698_v2  ;;  %v857_v61 = vpack.c.bf16 %v6725_v19, %v6728_v11  ;;  %v710_v2 = vsel %vm421_vm0, %v389_v46, 0.0  ;;  %v716_v46 = vsel %vm421_vm0, %v391_v6, 0.0  ;;  %v966_v6 = vunpack.c.l.bf16 %v858_v31 }
  0xd4   : > { %v6857_v26 = vpop.xlane.xlu1 %498  ;;  %v6859_v29 = vpop.xlane.xlu0 %495 }
  0xd5   : > { %8973 = vst [vmem:[#allocation24_spill] sm:$0xff] %v6857_v26  ;;  %8974 = vst [vmem:[#allocation25_spill] sm:$0xff] %v6859_v29  ;;  %v965_v36 = vunpack.c.h.bf16 %v857_v61  ;;  %5373 = vmatmul.mubr.msk.f32.gmra.mxu0 %vm421_vm0, %v1089_v5  ;;  %5584 = vmatmul.mubr.msk.f32.gmra.mxu1 %vm421_vm0, %v963_v10  ;;  %v722_v5 = vsel %vm421_vm0, %v393_v48, 0.0 }
  0xd7   : > { %708 = vadd.xlane.f32.xlu1 %v707_v16  ;;  %705 = vadd.xlane.f32.xlu0 %v704_v34  ;;  %v1090_v16 = vsub.f32 %v6704_v1, %v962_v13  ;;  %v964_v34 = vunpack.c.l.bf16 %v857_v61  ;;  %v394_v1 = vmul.f32 %v6893_v28, %v6893_v28 }
  0xd8   : > { %v6881_v56 = vpop.xlane.xlu1 %504  ;;  %v6883_v59 = vpop.xlane.xlu0 %501 }
  0xd9   : > { %8975 = vst [vmem:[#allocation26_spill] sm:$0xff] %v6881_v56  ;;  %8976 = vst [vmem:[#allocation27_spill] sm:$0xff] %v6883_v59  ;;  %v1092_v50 = vsub.f32 %v6728_v11, %v964_v34  ;;  %5375 = vmatprep.mubr.msk.f32.mxu0 %vm421_vm0, %v1090_v16  ;;  %v396_v11 = vmul.f32 %v6917_v14, %v6917_v14  ;;  %5586 = vmatprep.mubr.msk.f32.mxu1 %vm421_vm0, %v964_v34  ;;  %v967_v16 = vunpack.c.h.bf16 %v858_v31 }
  0xda   : > { %5587 = vmatmul.mubr.msk.f32.gmra.mxu1 %vm421_vm0, %v965_v36 }
  0xdb   : > { %714 = vadd.xlane.f32.xlu1 %v713_v27  ;;  %711 = vadd.xlane.f32.xlu0 %v710_v2  ;;  %v6920_v27 = vld [vmem:[%s5889_s3 + $0x330] sm:$0xff]  ;;  %v1091_v2 = vsub.f32 %v6701_v0, %v963_v10  ;;  %v725_v0 = vsel %vm421_vm0, %v394_v1, 0.0  ;;  %v6941_v10 = vld [vmem:[%s5889_s3 + $0x348] sm:$0xff]  ;;  %v1094_v1 = vsub.f32 %v6752_v30, %v966_v6 }
  0xdc   : > { %v6905_v45 = vpop.xlane.xlu1 %510  ;;  %v6907_v7 = vpop.xlane.xlu0 %507  ;;  %v398_v30 = vmul.f32 %v6941_v10, %v6941_v10  ;;  %5589 = vmatprep.mubr.msk.f32.mxu1 %vm421_vm0, %v966_v6 }
  0xdd   : > { %8977 = vst [vmem:[#allocation28_spill] sm:$0xff] %v6905_v45  ;;  %8978 = vst [vmem:[#allocation29_spill] sm:$0xff] %v6907_v7  ;;  %v859_v7 = vpack.c.bf16 %v6773_v60, %v6776_v63  ;;  %v395_v45 = vmul.f32 %v6920_v27, %v6920_v27  ;;  %5376 = vmatmul.mubr.msk.f32.gmra.mxu0 %vm421_vm0, %v1091_v2 }
  0xde   : > { %5378 = vmatprep.mubr.msk.f32.mxu0 %vm421_vm0, %v1092_v50  ;;  %5590 = vmatmul.mubr.msk.f32.gmra.mxu1 %vm421_vm0, %v967_v16 }
  0xdf   : > { %720 = vadd.xlane.f32.xlu1 %v719_v4  ;;  %717 = vadd.xlane.f32.xlu0 %v716_v46  ;;  %v6944_v4 = vld [vmem:[%s5889_s3 + $0x340] sm:$0xff]  ;;  %v1093_v46 = vsub.f32 %v6725_v19, %v965_v36  ;;  %v968_v48 = vunpack.c.l.bf16 %v859_v7  ;;  %v731_v19 = vsel %vm421_vm0, %v396_v11, 0.0  ;;  %v728_v2 = vsel %vm421_vm0, %v395_v45, 0.0  ;;  %v6965_v36 = vld [vmem:[%s5889_s3 + $0x358] sm:$0xff] }
  0xe0   : > { %v6929_v13 = vpop.xlane.xlu1 %516  ;;  %v6931_v61 = vpop.xlane.xlu0 %513  ;;  %v969_v50 = vunpack.c.h.bf16 %v859_v7 }
  0xe1   : > { %8979 = vst [vmem:[#allocation30_spill] sm:$0xff] %v6929_v13  ;;  %8980 = vst [vmem:[#allocation31_spill] sm:$0xff] %v6931_v61  ;;  %v860_v61 = vpack.c.bf16 %v6797_v25, %v6800_v23  ;;  %v397_v13 = vmul.f32 %v6944_v4, %v6944_v4  ;;  %5379 = vmatmul.mubr.msk.f32.gmra.mxu0 %vm421_vm0, %v1093_v46  ;;  %v1096_v45 = vsub.f32 %v6776_v63, %v968_v48 }
  0xe2   : > { %5381 = vmatprep.mubr.msk.f32.mxu0 %vm421_vm0, %v1094_v1  ;;  %v400_v63 = vmul.f32 %v6965_v36, %v6965_v36  ;;  %5592 = vmatprep.mubr.msk.f32.mxu1 %vm421_vm0, %v968_v48 }
  0xe3   : > { %726 = vadd.xlane.f32.xlu1 %v725_v0  ;;  %723 = vadd.xlane.f32.xlu0 %v722_v5  ;;  %v6968_v0 = vld [vmem:[%s5889_s3 + $0x350] sm:$0xff]  ;;  %v1095_v5 = vsub.f32 %v6749_v41, %v967_v16  ;;  %v970_v11 = vunpack.c.l.bf16 %v860_v61  ;;  %v737_v41 = vsel %vm421_vm0, %v398_v30, 0.0  ;;  %v734_v46 = vsel %vm421_vm0, %v397_v13, 0.0  ;;  %v6989_v16 = vld [vmem:[%s5889_s3 + $0x368] sm:$0xff] }
  0xe4   : > { %v6953_v34 = vpop.xlane.xlu1 %522  ;;  %v6955_v31 = vpop.xlane.xlu0 %519  ;;  %v971_v1 = vunpack.c.h.bf16 %v860_v61  ;;  %5593 = vmatmul.mubr.msk.f32.gmra.mxu1 %vm421_vm0, %v969_v50 }
  0xe5   : > { %8981 = vst [vmem:[#allocation32_spill] sm:$0xff] %v6953_v34  ;;  %8982 = vst [vmem:[#allocation33_spill] sm:$0xff] %v6955_v31  ;;  %v861_v31 = vpack.c.bf16 %v6821_v51, %v6824_v52  ;;  %v399_v34 = vmul.f32 %v6968_v0, %v6968_v0  ;;  %5382 = vmatmul.mubr.msk.f32.gmra.mxu0 %vm421_vm0, %v1095_v5  ;;  %v1098_v13 = vsub.f32 %v6800_v23, %v970_v11 }
  0xe6   : > { %5384 = vmatprep.mubr.msk.f32.mxu0 %vm421_vm0, %v1096_v45  ;;  %v402_v23 = vmul.f32 %v6989_v16, %v6989_v16  ;;  %5595 = vmatprep.mubr.msk.f32.mxu1 %vm421_vm0, %v970_v11 }
  0xe7   : > { %732 = vadd.xlane.f32.xlu1 %v731_v19  ;;  %729 = vadd.xlane.f32.xlu0 %v728_v2  ;;  %v6992_v19 = vld [vmem:[%s5889_s3 + $0x360] sm:$0xff]  ;;  %v1097_v2 = vsub.f32 %v6773_v60, %v969_v50  ;;  %v972_v30 = vunpack.c.l.bf16 %v861_v31  ;;  %v743_v60 = vsel %vm421_vm0, %v400_v63, 0.0  ;;  %v740_v5 = vsel %vm421_vm0, %v399_v34, 0.0  ;;  %v7013_v50 = vld [vmem:[%s5889_s3 + $0x378] sm:$0xff] }
  0xe8   : > { %v6977_v7 = vpop.xlane.xlu1 %528  ;;  %v6979_v6 = vpop.xlane.xlu0 %525  ;;  %v973_v45 = vunpack.c.h.bf16 %v861_v31  ;;  %5596 = vmatmul.mubr.msk.f32.gmra.mxu1 %vm421_vm0, %v971_v1 }
  0xe9   : > { %8983 = vst [vmem:[#allocation34_spill] sm:$0xff] %v6977_v7  ;;  %8984 = vst [vmem:[#allocation35_spill] sm:$0xff] %v6979_v6  ;;  %v862_v6 = vpack.c.bf16 %v6845_v42, %v6848_v43  ;;  %v401_v7 = vmul.f32 %v6992_v19, %v6992_v19  ;;  %5385 = vmatmul.mubr.msk.f32.gmra.mxu0 %vm421_vm0, %v1097_v2  ;;  %v1100_v34 = vsub.f32 %v6824_v52, %v972_v30 }
  0xea   : > { %5387 = vmatprep.mubr.msk.f32.mxu0 %vm421_vm0, %v1098_v13  ;;  %v404_v52 = vmul.f32 %v7013_v50, %v7013_v50  ;;  %5598 = vmatprep.mubr.msk.f32.mxu1 %vm421_vm0, %v972_v30 }
  0xeb   : > { %738 = vadd.xlane.f32.xlu1 %v737_v41  ;;  %735 = vadd.xlane.f32.xlu0 %v734_v46  ;;  %v7016_v41 = vld [vmem:[%s5889_s3 + $0x370] sm:$0xff]  ;;  %v1099_v46 = vsub.f32 %v6797_v25, %v971_v1  ;;  %v974_v63 = vunpack.c.l.bf16 %v862_v6  ;;  %v749_v25 = vsel %vm421_vm0, %v402_v23, 0.0  ;;  %v746_v2 = vsel %vm421_vm0, %v401_v7, 0.0  ;;  %v7037_v1 = vld [vmem:[%s5889_s3 + $0x388] sm:$0xff] }
  0xec   : > { %v7001_v61 = vpop.xlane.xlu1 %534  ;;  %v7003_v48 = vpop.xlane.xlu0 %531  ;;  %v975_v13 = vunpack.c.h.bf16 %v862_v6  ;;  %v7047_v23 = vpack.c.bf16 %v6893_v28, %v6896_v47  ;;  %5599 = vmatmul.mubr.msk.f32.gmra.mxu1 %vm421_vm0, %v973_v45 }
  0xed   : > { %8985 = vst [vmem:[#allocation36_spill] sm:$0xff] %v7001_v61  ;;  %8986 = vst [vmem:[#allocation37_spill] sm:$0xff] %v7003_v48  ;;  %v863_v48 = vpack.c.bf16 %v6869_v62, %v6872_v8  ;;  %v403_v61 = vmul.f32 %v7016_v41, %v7016_v41  ;;  %5388 = vmatmul.mubr.msk.f32.gmra.mxu0 %vm421_vm0, %v1099_v46  ;;  %v1102_v7 = vsub.f32 %v6848_v43, %v974_v63 }
  0xee   : > { %5390 = vmatprep.mubr.msk.f32.mxu0 %vm421_vm0, %v1100_v34  ;;  %v406_v43 = vmul.f32 %v7037_v1, %v7037_v1  ;;  %5601 = vmatprep.mubr.msk.f32.mxu1 %vm421_vm0, %v974_v63  ;;  %v7066_v34 = vld [vmem:[%s5889_s3 + $0x390] sm:$0xff] }
  0xef   : > { %744 = vadd.xlane.f32.xlu1 %v743_v60  ;;  %741 = vadd.xlane.f32.xlu0 %v740_v5  ;;  %v7040_v60 = vld [vmem:[%s5889_s3 + $0x380] sm:$0xff]  ;;  %v1101_v5 = vsub.f32 %v6821_v51, %v973_v45  ;;  %v976_v6 = vunpack.c.l.bf16 %v863_v48  ;;  %v755_v51 = vsel %vm421_vm0, %v404_v52, 0.0  ;;  %v7063_v45 = vld [vmem:[%s5889_s3 + $0x398] sm:$0xff]  ;;  %v7075_v52 = vpop.f32.mrf.mxu1 }
  0xf0   : > { %v7025_v31 = vpop.xlane.xlu1 %540  ;;  %v7027_v11 = vpop.xlane.xlu0 %537  ;;  %5602 = vmatmul.mubr.msk.f32.gmra.mxu1 %vm421_vm0, %v975_v13 }
  0xf1   : > { %8987 = vst [vmem:[#allocation38_spill] sm:$0xff] %v7025_v31  ;;  %8988 = vst [vmem:[#allocation39_spill] sm:$0xff] %v7027_v11  ;;  %v752_v11 = vsel %vm421_vm0, %v403_v61, 0.0  ;;  %v405_v31 = vmul.f32 %v7040_v60, %v7040_v60  ;;  %5391 = vmatmul.mubr.msk.f32.gmra.mxu0 %vm421_vm0, %v1101_v5  ;;  %v7072_v61 = vpack.c.bf16 %v6917_v14, %v6920_v27  ;;  %v761_v5 = vsel %vm421_vm0, %v406_v43, 0.0 }
  0xf2   : > { %5393 = vmatprep.mubr.msk.f32.mxu0 %vm421_vm0, %v1102_v7  ;;  %v1104_v63 = vsub.f32 %v6872_v8, %v976_v6  ;;  %v408_v7 = vmul.f32 %v7063_v45, %v7063_v45  ;;  %5604 = vmatprep.mubr.msk.f32.mxu1 %vm421_vm0, %v976_v6  ;;  %v7092_v8 = vld [vmem:[%s5889_s3 + $0x3a8] sm:$0xff]  ;;  %v979_v43 = vunpack.c.h.bf16 %v7047_v23 }
  0xf3   : > { %750 = vadd.xlane.f32.xlu1 %v749_v25  ;;  %747 = vadd.xlane.f32.xlu0 %v746_v2  ;;  %v1103_v25 = vsub.f32 %v6845_v42, %v975_v13  ;;  %v977_v2 = vunpack.c.h.bf16 %v863_v48  ;;  %v407_v13 = vmul.f32 %v7066_v34, %v7066_v34 }
  0xf4   : > { %v7051_v30 = vpop.xlane.xlu1 %546  ;;  %v7053_v46 = vpop.xlane.xlu0 %543  ;;  %v767_v29 = vsel %vm421_vm0, %v408_v7, 0.0  ;;  %v1107_v7 = vsub.f32 %v6893_v28, %v979_v43 }
  0xf5   : > { %8989 = vst [vmem:[#allocation40_spill] sm:$0xff] %v7051_v30  ;;  %8990 = vst [vmem:[#allocation41_spill] sm:$0xff] %v7053_v46  ;;  %v978_v46 = vunpack.c.l.bf16 %v7047_v23  ;;  %v758_v30 = vsel %vm421_vm0, %v405_v31, 0.0  ;;  %5394 = vmatmul.mubr.msk.f32.gmra.mxu0 %vm421_vm0, %v1103_v25  ;;  %v1105_v31 = vsub.f32 %v6869_v62, %v977_v2  ;;  %5605 = vmatmul.mubr.msk.f32.gmra.mxu1 %vm421_vm0, %v977_v2  ;;  %v980_v25 = vunpack.c.l.bf16 %v7072_v61 }
  0xf6   : > { %5396 = vmatprep.mubr.msk.f32.mxu0 %vm421_vm0, %v1104_v63  ;;  %v764_v63 = vsel %vm421_vm0, %v407_v13, 0.0  ;;  %v410_v2 = vmul.f32 %v7092_v8, %v7092_v8  ;;  %v981_v13 = vunpack.c.h.bf16 %v7072_v61 }
  0xf7   : > { %756 = vadd.xlane.f32.xlu1 %v755_v51  ;;  %753 = vadd.xlane.f32.xlu0 %v752_v11  ;;  %v7095_v51 = vld [vmem:[%s5889_s3 + $0x3a0] sm:$0xff]  ;;  %v7097_v11 = vpop.f32.mrf.mxu0  ;;  %v1106_v6 = vsub.f32 %v6896_v47, %v978_v46 }
  0xf8   : > { %v7080_v42 = vpop.xlane.xlu1 %552  ;;  %v7082_v48 = vpop.xlane.xlu0 %549  ;;  %v409_v47 = vmul.f32 %v7095_v51, %v7095_v51  ;;  %5607 = vmatprep.mubr.msk.f32.mxu1 %vm421_vm0, %v978_v46  ;;  %v1108_v46 = vsub.f32 %v6920_v27, %v980_v25  ;;  %v773_v35 = vsel %vm421_vm0, %v410_v2, 0.0  ;;  %v1109_v2 = vsub.f32 %v6917_v14, %v981_v13 }
  0xf9   : > { %8991 = vst [vmem:[#allocation42_spill] sm:$0xff] %v7080_v42  ;;  %8992 = vst [vmem:[#allocation43_spill] sm:$0xff] %v7082_v48  ;;  %v7100_v48 = vpop.f32.mrf.mxu1  ;;  %v7106_v42 = vpack.c.bf16 %v6941_v10, %v6944_v4  ;;  %v7112_v59 = vpop.f32.mrf.mxu0  ;;  %5397 = vmatmul.mubr.msk.f32.gmra.mxu0 %vm421_vm0, %v1105_v31  ;;  %5608 = vmatmul.mubr.msk.f32.gmra.mxu1 %vm421_vm0, %v979_v43 }
  0xfa   : > { %5399 = vmatprep.mubr.msk.f32.mxu0 %vm421_vm0, %v1106_v6  ;;  %v770_v6 = vsel %vm421_vm0, %v409_v47, 0.0  ;;  %5610 = vmatprep.mubr.msk.f32.mxu1 %vm421_vm0, %v980_v25 }
  0xfb   : > { %762 = vadd.xlane.f32.xlu1 %v761_v5  ;;  %759 = vadd.xlane.f32.xlu0 %v758_v30  ;;  %v7114_v62 = vpop.f32.mrf.mxu1  ;;  %v7128_v30 = vld [vmem:[%s5889_s3 + $0x3b8] sm:$0xff]  ;;  %v7131_v5 = vld [vmem:[%s5889_s3 + $0x3b0] sm:$0xff]  ;;  %v7133_v26 = vpop.f32.mrf.mxu0  ;;  %v982_v31 = vunpack.c.l.bf16 %v7106_v42  ;;  %v983_v47 = vunpack.c.h.bf16 %v7106_v42 }
  0xfc   : > { %v7116_v23 = vpop.xlane.xlu1 %558  ;;  %v7118_v56 = vpop.xlane.xlu0 %555  ;;  %v412_v43 = vmul.f32 %v7128_v30, %v7128_v30  ;;  %v411_v27 = vmul.f32 %v7131_v5, %v7131_v5 }
  0xfd   : > { %8993 = vst [vmem:[#allocation44_spill] sm:$0xff] %v7116_v23  ;;  %8994 = vst [vmem:[#allocation45_spill] sm:$0xff] %v7118_v56  ;;  %v7136_v56 = vpop.f32.mrf.mxu1  ;;  %v7142_v23 = vpack.c.bf16 %v6965_v36, %v6968_v0  ;;  %v7148_v3 = vpop.f32.mrf.mxu0  ;;  %5400 = vmatmul.mubr.msk.f32.gmra.mxu0 %vm421_vm0, %v1107_v7  ;;  %5611 = vmatmul.mubr.msk.f32.gmra.mxu1 %vm421_vm0, %v981_v13  ;;  %v1110_v25 = vsub.f32 %v6944_v4, %v982_v31 }
  0xfe   : > { %5402 = vmatprep.mubr.msk.f32.mxu0 %vm421_vm0, %v1108_v46  ;;  %v779_v57 = vsel %vm421_vm0, %v412_v43, 0.0  ;;  %v776_v46 = vsel %vm421_vm0, %v411_v27, 0.0  ;;  %5613 = vmatprep.mubr.msk.f32.mxu1 %vm421_vm0, %v982_v31  ;;  %v1111_v43 = vsub.f32 %v6941_v10, %v983_v47 }
  0xff   : > { %768 = vadd.xlane.f32.xlu1 %v767_v29  ;;  %765 = vadd.xlane.f32.xlu0 %v764_v63  ;;  %v7150_v28 = vpop.f32.mrf.mxu1  ;;  %v7164_v29 = vld [vmem:[%s5889_s3 + $0x3c8] sm:$0xff]  ;;  %v7167_v63 = vld [vmem:[%s5889_s3 + $0x3c0] sm:$0xff]  ;;  %v7169_v49 = vpop.f32.mrf.mxu0  ;;  %v984_v7 = vunpack.c.l.bf16 %v7142_v23  ;;  %v985_v27 = vunpack.c.h.bf16 %v7142_v23 }
 0x100   : > { %v7152_v61 = vpop.xlane.xlu1 %564  ;;  %v7154_v37 = vpop.xlane.xlu0 %561  ;;  %v414_v13 = vmul.f32 %v7164_v29, %v7164_v29  ;;  %v413_v4 = vmul.f32 %v7167_v63, %v7167_v63 }
 0x101   : > { %8995 = vst [vmem:[#allocation46_spill] sm:$0xff] %v7152_v61  ;;  %8996 = vst [vmem:[#allocation47_spill] sm:$0xff] %v7154_v37  ;;  %v7172_v37 = vpop.f32.mrf.mxu1  ;;  %v7178_v61 = vpack.c.bf16 %v6989_v16, %v6992_v19  ;;  %v7184_v17 = vpop.f32.mrf.mxu0  ;;  %5403 = vmatmul.mubr.msk.f32.gmra.mxu0 %vm421_vm0, %v1109_v2  ;;  %5614 = vmatmul.mubr.msk.f32.gmra.mxu1 %vm421_vm0, %v983_v47  ;;  %v1112_v31 = vsub.f32 %v6968_v0, %v984_v7 }
 0x102   : > { %5405 = vmatprep.mubr.msk.f32.mxu0 %vm421_vm0, %v1110_v25  ;;  %v785_v15 = vsel %vm421_vm0, %v414_v13, 0.0  ;;  %v782_v25 = vsel %vm421_vm0, %v413_v4, 0.0  ;;  %5616 = vmatprep.mubr.msk.f32.mxu1 %vm421_vm0, %v984_v7  ;;  %v1113_v13 = vsub.f32 %v6965_v36, %v985_v27 }
 0x103   : > { %774 = vadd.xlane.f32.xlu1 %v773_v35  ;;  %771 = vadd.xlane.f32.xlu0 %v770_v6  ;;  %v7186_v14 = vpop.f32.mrf.mxu1  ;;  %v7200_v35 = vld [vmem:[%s5889_s3 + $0x3d8] sm:$0xff]  ;;  %v7203_v6 = vld [vmem:[%s5889_s3 + $0x3d0] sm:$0xff]  ;;  %v7205_v53 = vpop.f32.mrf.mxu0  ;;  %v986_v2 = vunpack.c.l.bf16 %v7178_v61  ;;  %v987_v4 = vunpack.c.h.bf16 %v7178_v61 }
 0x104   : > { %v7188_v42 = vpop.xlane.xlu1 %570  ;;  %v7190_v22 = vpop.xlane.xlu0 %567  ;;  %v416_v47 = vmul.f32 %v7200_v35, %v7200_v35  ;;  %v415_v0 = vmul.f32 %v7203_v6, %v7203_v6 }
 0x105   : > { %8997 = vst [vmem:[#allocation48_spill] sm:$0xff] %v7188_v42  ;;  %8998 = vst [vmem:[#allocation49_spill] sm:$0xff] %v7190_v22  ;;  %v7208_v22 = vpop.f32.mrf.mxu1  ;;  %v7214_v42 = vpack.c.bf16 %v7013_v50, %v7016_v41  ;;  %v7220_v33 = vpop.f32.mrf.mxu0  ;;  %5406 = vmatmul.mubr.msk.f32.gmra.mxu0 %vm421_vm0, %v1111_v43  ;;  %5617 = vmatmul.mubr.msk.f32.gmra.mxu1 %vm421_vm0, %v985_v27  ;;  %v1114_v7 = vsub.f32 %v6992_v19, %v986_v2 }
 0x106   : > { %5408 = vmatprep.mubr.msk.f32.mxu0 %vm421_vm0, %v1112_v31  ;;  %v791_v31 = vsel %vm421_vm0, %v416_v47, 0.0  ;;  %v788_v44 = vsel %vm421_vm0, %v415_v0, 0.0  ;;  %5619 = vmatprep.mubr.msk.f32.mxu1 %vm421_vm0, %v986_v2  ;;  %v1115_v0 = vsub.f32 %v6989_v16, %v987_v4 }
 0x107   : > { %780 = vadd.xlane.f32.xlu1 %v779_v57  ;;  %777 = vadd.xlane.f32.xlu0 %v776_v46  ;;  %v7222_v10 = vpop.f32.mrf.mxu1  ;;  %v7236_v57 = vld [vmem:[%s5889_s3 + $0x3e8] sm:$0xff]  ;;  %v7239_v46 = vld [vmem:[%s5889_s3 + $0x3e0] sm:$0xff]  ;;  %v7241_v12 = vpop.f32.mrf.mxu0  ;;  %v988_v43 = vunpack.c.l.bf16 %v7214_v42  ;;  %v989_v38 = vunpack.c.h.bf16 %v7214_v42 }
 0x108   : > { %v7224_v23 = vpop.xlane.xlu1 %576  ;;  %v7226_v58 = vpop.xlane.xlu0 %573  ;;  %v418_v27 = vmul.f32 %v7236_v57, %v7236_v57  ;;  %v417_v19 = vmul.f32 %v7239_v46, %v7239_v46 }
 0x109   : > { %8999 = vst [vmem:[#allocation50_spill] sm:$0xff] %v7224_v23  ;;  %9000 = vst [vmem:[#allocation51_spill] sm:$0xff] %v7226_v58  ;;  %v7244_v58 = vpop.f32.mrf.mxu1  ;;  %v7250_v23 = vpack.c.bf16 %v7037_v1, %v7040_v60  ;;  %v7256_v18 = vpop.f32.mrf.mxu0  ;;  %5409 = vmatmul.mubr.msk.f32.gmra.mxu0 %vm421_vm0, %v1113_v13  ;;  %5620 = vmatmul.mubr.msk.f32.gmra.mxu1 %vm421_vm0, %v987_v4  ;;  %v1116_v2 = vsub.f32 %v7016_v41, %v988_v43 }
 0x10a   : > { %5411 = vmatprep.mubr.msk.f32.mxu0 %vm421_vm0, %v1114_v7  ;;  %v797_v16 = vsel %vm421_vm0, %v418_v27, 0.0  ;;  %v794_v42 = vsel %vm421_vm0, %v417_v19, 0.0  ;;  %5622 = vmatprep.mubr.msk.f32.mxu1 %vm421_vm0, %v988_v43  ;;  %v7310_v7 = vpack.c.bf16 %v7092_v8, %v7095_v51  ;;  %v1117_v19 = vsub.f32 %v7013_v50, %v989_v38 }
 0x10b   : > { %786 = vadd.xlane.f32.xlu1 %v785_v15  ;;  %783 = vadd.xlane.f32.xlu0 %v782_v25  ;;  %v7258_v36 = vpop.f32.mrf.mxu1  ;;  %v7273_v15 = vpack.c.bf16 %v7063_v45, %v7066_v34  ;;  %v7276_v25 = vld [vmem:[%s5889_s3 + $0x3f8] sm:$0xff]  ;;  %v990_v24 = vunpack.c.l.bf16 %v7250_v23 }
 0x10c   : > { %v7260_v61 = vpop.xlane.xlu1 %582  ;;  %v7262_v20 = vpop.xlane.xlu0 %579  ;;  %v420_v4 = vmul.f32 %v7276_v25, %v7276_v25 }
 0x10d   : > { %9001 = vst [vmem:[#allocation52_spill] sm:$0xff] %v7260_v61  ;;  %9002 = vst [vmem:[#allocation53_spill] sm:$0xff] %v7262_v20  ;;  %v7279_v61 = vld [vmem:[%s5889_s3 + $0x3f0] sm:$0xff]  ;;  %v7281_v20 = vpop.f32.mrf.mxu0  ;;  %v7284_v47 = vpop.f32.mrf.mxu1  ;;  %5412 = vmatmul.mubr.msk.f32.gmra.mxu0 %vm421_vm0, %v1115_v0  ;;  %5623 = vmatmul.mubr.msk.f32.gmra.mxu1 %vm421_vm0, %v989_v38  ;;  %v1118_v43 = vsub.f32 %v7040_v60, %v990_v24  ;;  %v993_v50 = vunpack.c.h.bf16 %v7273_v15 }
 0x10e   : > { %v419_v41 = vmul.f32 %v7279_v61, %v7279_v61  ;;  %5414 = vmatprep.mubr.msk.f32.mxu0 %vm421_vm0, %v1116_v2  ;;  %v803_v38 = vsel %vm421_vm0, %v420_v4, 0.0  ;;  %5625 = vmatprep.mubr.msk.f32.mxu1 %vm421_vm0, %v990_v24  ;;  %v2684_v24 = vadd.f32 %v7136_v56, %v7148_v3 }
 0x10f   : > { %792 = vadd.xlane.f32.xlu1 %v791_v31  ;;  %789 = vadd.xlane.f32.xlu0 %v788_v44  ;;  %v7292_v21 = vpop.f32.mrf.mxu0  ;;  %v7294_v9 = vpop.f32.mrf.mxu1  ;;  %v991_v44 = vunpack.c.h.bf16 %v7250_v23  ;;  %v2674_v23 = vadd.f32 %v7100_v48, %v7112_v59  ;;  %v2689_v48 = vadd.f32 %v7114_v62, %v7133_v26  ;;  %v1121_v56 = vsub.f32 %v7063_v45, %v993_v50 }
 0x110   : > { %v7296_v13 = vpop.xlane.xlu1 %588  ;;  %v7298_v32 = vpop.xlane.xlu0 %585  ;;  %v800_v60 = vsel %vm421_vm0, %v419_v41, 0.0 }
 0x111   : > { %9003 = vst [vmem:[#allocation54_spill] sm:$0xff] %v7296_v13  ;;  %9004 = vst [vmem:[#allocation55_spill] sm:$0xff] %v7298_v32  ;;  %v7312_v31 = vpop.f32.mrf.mxu0  ;;  %v7315_v27 = vpop.f32.mrf.mxu1  ;;  %v992_v32 = vunpack.c.l.bf16 %v7273_v15  ;;  %v2679_v13 = vadd.f32 %v7075_v52, %v7097_v11  ;;  %v7333_v52 = vpack.c.bf16 %v7128_v30, %v7131_v5  ;;  %5415 = vmatmul.mubr.msk.f32.gmra.mxu0 %vm421_vm0, %v1117_v19  ;;  %5626 = vmatmul.mubr.msk.f32.gmra.mxu1 %vm421_vm0, %v991_v44 }
 0x112   : > { %5417 = vmatprep.mubr.msk.f32.mxu0 %vm421_vm0, %v1118_v43  ;;  %v3315_v41 = vmul.f32 %v2689_v48, %v2689_v48  ;;  %v7393_v48 = vpack.c.bf16 %v7200_v35, %v7203_v6 }
 0x113   : > { %798 = vadd.xlane.f32.xlu1 %v797_v16  ;;  %795 = vadd.xlane.f32.xlu0 %v794_v42  ;;  %v7326_v0 = vpop.f32.mrf.mxu0  ;;  %v7328_v39 = vpop.f32.mrf.mxu1  ;;  %v1119_v16 = vsub.f32 %v7037_v1, %v991_v44  ;;  %v1120_v42 = vsub.f32 %v7066_v34, %v992_v32  ;;  %v3313_v4 = vmul.f32 %v2679_v13, %v2679_v13  ;;  %v995_v1 = vunpack.c.h.bf16 %v7310_v7 }
 0x114   : > { %v7335_v11 = vpop.xlane.xlu1 %594  ;;  %v7337_v59 = vpop.xlane.xlu0 %591  ;;  %v7363_v34 = vpack.c.bf16 %v7164_v29, %v7167_v63  ;;  %5628 = vmatprep.mubr.msk.f32.mxu1 %vm421_vm0, %v992_v32  ;;  %v2699_v44 = vadd.f32 %v7150_v28, %v7169_v49  ;;  %v996_v43 = vunpack.c.l.bf16 %v7333_v52  ;;  %v2694_v32 = vadd.f32 %v7172_v37, %v7184_v17 }
 0x115   : > { %9005 = vst [vmem:[#allocation56_spill] sm:$0xff] %v7335_v11  ;;  %9006 = vst [vmem:[#allocation57_spill] sm:$0xff] %v7337_v59  ;;  %v7344_v2 = vpop.f32.mrf.mxu0  ;;  %v7347_v15 = vpop.f32.mrf.mxu1  ;;  %v994_v59 = vunpack.c.l.bf16 %v7310_v7  ;;  %v3312_v11 = vmul.f32 %v2674_v23, %v2674_v23  ;;  %5418 = vmatmul.mubr.msk.f32.gmra.mxu0 %vm421_vm0, %v1119_v16  ;;  %5629 = vmatmul.mubr.msk.f32.gmra.mxu1 %vm421_vm0, %v993_v50  ;;  %v1123_v37 = vsub.f32 %v7092_v8, %v995_v1 }
 0x116   : > { %5420 = vmatprep.mubr.msk.f32.mxu0 %vm421_vm0, %v1120_v42  ;;  %v3317_v50 = vmul.f32 %v2699_v44, %v2699_v44  ;;  %v2704_v8 = vadd.f32 %v7208_v22, %v7220_v33 }
 0x117   : > { %804 = vadd.xlane.f32.xlu1 %v803_v38  ;;  %801 = vadd.xlane.f32.xlu0 %v800_v60  ;;  %v7356_v26 = vpop.f32.mrf.mxu0  ;;  %v7358_v62 = vpop.f32.mrf.mxu1  ;;  %v1122_v23 = vsub.f32 %v7095_v51, %v994_v59  ;;  %v3314_v38 = vmul.f32 %v2684_v24, %v2684_v24  ;;  %v3444_v60 = vsel %vm3440_vm1, %v3313_v4, 0.0  ;;  %v3441_v45 = vsel %vm3440_vm1, %v3312_v11, 0.0 }
 0x118   : > { %v7365_v13 = vpop.xlane.xlu1 %600  ;;  %v7367_v3 = vpop.xlane.xlu0 %597  ;;  %v997_v51 = vunpack.c.h.bf16 %v7333_v52  ;;  %5631 = vmatprep.mubr.msk.f32.mxu1 %vm421_vm0, %v994_v59  ;;  %v3450_v11 = vsel %vm3440_vm1, %v3315_v41, 0.0  ;;  %v1124_v4 = vsub.f32 %v7131_v5, %v996_v43  ;;  %v998_v24 = vunpack.c.l.bf16 %v7363_v34 }
 0x119   : > { %v7373_v19 = vpop.f32.mrf.mxu0  ;;  %v7376_v7 = vpop.f32.mrf.mxu1  ;;  %5421 = vmatmul.mubr.msk.f32.gmra.mxu0 %vm421_vm0, %v1121_v56  ;;  %v3447_v59 = vsel %vm3440_vm1, %v3314_v38, 0.0  ;;  %5632 = vmatmul.mubr.msk.f32.gmra.mxu1 %vm421_vm0, %v995_v1  ;;  %v999_v41 = vunpack.c.h.bf16 %v7363_v34  ;;  %v2719_v1 = vadd.f32 %v7222_v10, %v7241_v12  ;;  %v3456_v44 = vsel %vm3440_vm1, %v3317_v50, 0.0 }
 0x11a   : > { %5423 = vmatprep.mubr.msk.f32.mxu0 %vm421_vm0, %v1122_v23  ;;  %5634 = vmatprep.mubr.msk.f32.mxu1 %vm421_vm0, %v996_v43  ;;  %v1125_v22 = vsub.f32 %v7128_v30, %v997_v51  ;;  %v1126_v38 = vsub.f32 %v7167_v63, %v998_v24  ;;  %v2714_v30 = vadd.f32 %v7244_v58, %v7256_v18  ;;  %v1001_v63 = vunpack.c.h.bf16 %v7393_v48 }
 0x11b   : > { %3445 = vadd.xlane.f32.xlu1 %v3444_v60  ;;  %3442 = vadd.xlane.f32.xlu0 %v3441_v45  ;;  %v7386_v49 = vpop.f32.mrf.mxu0  ;;  %v7388_v28 = vpop.f32.mrf.mxu1  ;;  %v3316_v60 = vmul.f32 %v2694_v32, %v2694_v32  ;;  %v2709_v45 = vadd.f32 %v7186_v14, %v7205_v53  ;;  %v7423_v53 = vpack.c.bf16 %v7236_v57, %v7239_v46  ;;  %v1000_v32 = vunpack.c.l.bf16 %v7393_v48 }
 0x11c   : > { %v7395_v16 = vpop.xlane.xlu1 %606  ;;  %v7397_v17 = vpop.xlane.xlu0 %603  ;;  %v1127_v58 = vsub.f32 %v7164_v29, %v999_v41  ;;  %v2724_v29 = vadd.f32 %v7284_v47, %v7292_v21  ;;  %v1129_v21 = vsub.f32 %v7200_v35, %v1001_v63  ;;  %v2734_v35 = vadd.f32 %v7315_v27, %v7326_v0 }
 0x11d   : > { %v7402_v42 = vpop.f32.mrf.mxu0  ;;  %v7405_v52 = vpop.f32.mrf.mxu1  ;;  %5424 = vmatmul.mubr.msk.f32.gmra.mxu0 %vm421_vm0, %v1123_v37  ;;  %v3453_v43 = vsel %vm3440_vm1, %v3316_v60, 0.0  ;;  %5635 = vmatmul.mubr.msk.f32.gmra.mxu1 %vm421_vm0, %v997_v51  ;;  %v7453_v37 = vpack.c.bf16 %v7276_v25, %v7279_v61  ;;  %v3321_v51 = vmul.f32 %v2719_v1, %v2719_v1 }
 0x11e   : > { %5426 = vmatprep.mubr.msk.f32.mxu0 %vm421_vm0, %v1124_v4  ;;  %5637 = vmatprep.mubr.msk.f32.mxu1 %vm421_vm0, %v998_v24  ;;  %v2729_v4 = vadd.f32 %v7258_v36, %v7281_v20 }
 0x11f   : > { %3451 = vadd.xlane.f32.xlu1 %v3450_v11  ;;  %3448 = vadd.xlane.f32.xlu0 %v3447_v59  ;;  %v7416_v56 = vpop.f32.mrf.mxu0  ;;  %v7418_v5 = vpop.f32.mrf.mxu1  ;;  %v3319_v11 = vmul.f32 %v2709_v45, %v2709_v45  ;;  %v3318_v59 = vmul.f32 %v2704_v8, %v2704_v8  ;;  %v1128_v45 = vsub.f32 %v7203_v6, %v1000_v32  ;;  %v1002_v8 = vunpack.c.l.bf16 %v7423_v53 }
 0x120   : > { %v7425_v14 = vpop.xlane.xlu1 %612  ;;  %v7427_v33 = vpop.xlane.xlu0 %609  ;;  %v1003_v6 = vunpack.c.h.bf16 %v7423_v53  ;;  %v3323_v47 = vmul.f32 %v2729_v4, %v2729_v4  ;;  %v1004_v53 = vunpack.c.l.bf16 %v7453_v37 }
 0x121   : > { %v7434_v23 = vpop.f32.mrf.mxu0  ;;  %v7437_v34 = vpop.f32.mrf.mxu1  ;;  %5427 = vmatmul.mubr.msk.f32.gmra.mxu0 %vm421_vm0, %v1125_v22  ;;  %v3459_v24 = vsel %vm3440_vm1, %v3318_v59, 0.0  ;;  %5638 = vmatmul.mubr.msk.f32.gmra.mxu1 %vm421_vm0, %v999_v41  ;;  %v1130_v59 = vsub.f32 %v7239_v46, %v1002_v8 }
 0x122   : > { %5429 = vmatprep.mubr.msk.f32.mxu0 %vm421_vm0, %v1126_v38  ;;  %5640 = vmatprep.mubr.msk.f32.mxu1 %vm421_vm0, %v1000_v32  ;;  %v3468_v38 = vsel %vm3440_vm1, %v3321_v51, 0.0  ;;  %v1005_v51 = vunpack.c.h.bf16 %v7453_v37  ;;  %v3474_v27 = vsel %vm3440_vm1, %v3323_v47, 0.0  ;;  %v1132_v37 = vsub.f32 %v7279_v61, %v1004_v53 }
 0x123   : > { %3457 = vadd.xlane.f32.xlu1 %v3456_v44  ;;  %3454 = vadd.xlane.f32.xlu0 %v3453_v43  ;;  %v7446_v12 = vpop.f32.mrf.mxu0  ;;  %v7448_v10 = vpop.f32.mrf.mxu1  ;;  %v3320_v44 = vmul.f32 %v2714_v30, %v2714_v30  ;;  %v3462_v43 = vsel %vm3440_vm1, %v3319_v11, 0.0  ;;  %v3322_v30 = vmul.f32 %v2724_v29, %v2724_v29  ;;  %v3324_v29 = vmul.f32 %v2734_v35, %v2734_v35 }
 0x124   : > { %v7455_v50 = vpop.xlane.xlu1 %618  ;;  %v7457_v18 = vpop.xlane.xlu0 %615  ;;  %v1133_v47 = vsub.f32 %v7276_v25, %v1005_v51 }
 0x125   : > { %v7463_v60 = vpop.f32.mrf.mxu0  ;;  %v7466_v48 = vpop.f32.mrf.mxu1  ;;  %5430 = vmatmul.mubr.msk.f32.gmra.mxu0 %vm421_vm0, %v1127_v58  ;;  %v3465_v32 = vsel %vm3440_vm1, %v3320_v44, 0.0  ;;  %5641 = vmatmul.mubr.msk.f32.gmra.mxu1 %vm421_vm0, %v1001_v63 }
 0x126   : > { %5432 = vmatprep.mubr.msk.f32.mxu0 %vm421_vm0, %v1128_v45  ;;  %5643 = vmatprep.mubr.msk.f32.mxu1 %vm421_vm0, %v1002_v8  ;;  %v1131_v45 = vsub.f32 %v7236_v57, %v1003_v6  ;;  %v2744_v8 = vadd.f32 %v7347_v15, %v7356_v26  ;;  %v2759_v15 = vadd.f32 %v7358_v62, %v7373_v19 }
 0x127   : > { %3463 = vadd.xlane.f32.xlu1 %v3462_v43  ;;  %3460 = vadd.xlane.f32.xlu0 %v3459_v24  ;;  %v7476_v20 = vpop.f32.mrf.mxu0  ;;  %v7478_v36 = vpop.f32.mrf.mxu1  ;;  %v2739_v43 = vadd.f32 %v7294_v9, %v7312_v31  ;;  %v2749_v31 = vadd.f32 %v7328_v39, %v7344_v2  ;;  %v3471_v24 = vsel %vm3440_vm1, %v3322_v30, 0.0  ;;  %v2754_v30 = vadd.f32 %v7376_v7, %v7386_v49 }
 0x128   : > { %v7481_v22 = vpop.xlane.xlu1 %624  ;;  %v7483_v1 = vpop.xlane.xlu0 %621  ;;  %v3329_v35 = vmul.f32 %v2759_v15, %v2759_v15  ;;  %v2774_v15 = vadd.f32 %v7437_v34, %v7446_v12 }
 0x129   : > { %v7488_v41 = vpop.f32.mrf.mxu0  ;;  %v7491_v11 = vpop.f32.mrf.mxu1  ;;  %5433 = vmatmul.mubr.msk.f32.gmra.mxu0 %vm421_vm0, %v1129_v21  ;;  %v3325_v44 = vmul.f32 %v2739_v43, %v2739_v43  ;;  %5644 = vmatmul.mubr.msk.f32.gmra.mxu1 %vm421_vm0, %v1003_v6  ;;  %v3327_v21 = vmul.f32 %v2749_v31, %v2749_v31  ;;  %v2769_v31 = vadd.f32 %v7388_v28, %v7402_v42 }
 0x12a   : > { %5435 = vmatprep.mubr.msk.f32.mxu0 %vm421_vm0, %v1130_v59  ;;  %5646 = vmatprep.mubr.msk.f32.mxu1 %vm421_vm0, %v1004_v53  ;;  %v3477_v53 = vsel %vm3440_vm1, %v3324_v29, 0.0  ;;  %v3492_v28 = vsel %vm3440_vm1, %v3329_v35, 0.0  ;;  %v3332_v34 = vmul.f32 %v2774_v15, %v2774_v15 }
 0x12b   : > { %3469 = vadd.xlane.f32.xlu1 %v3468_v38  ;;  %3466 = vadd.xlane.f32.xlu0 %v3465_v32  ;;  %v7502_v58 = vpop.f32.mrf.mxu0  ;;  %v7504_v46 = vpop.f32.mrf.mxu1  ;;  %v3326_v38 = vmul.f32 %v2744_v8, %v2744_v8  ;;  %v3480_v59 = vsel %vm3440_vm1, %v3325_v44, 0.0  ;;  %v3486_v32 = vsel %vm3440_vm1, %v3327_v21, 0.0 }
 0x12c   : > { %v7507_v4 = vpop.xlane.xlu1 %630  ;;  %v7509_v9 = vpop.xlane.xlu0 %627 }
 0x12d   : > { %v7515_v0 = vpop.f32.mrf.mxu0  ;;  %v7518_v63 = vpop.f32.mrf.mxu1  ;;  %5436 = vmatmul.mubr.msk.f32.gmra.mxu0 %vm421_vm0, %v1131_v45  ;;  %5647 = vmatmul.mubr.msk.f32.gmra.mxu1 %vm421_vm0, %v1005_v51  ;;  %v3328_v51 = vmul.f32 %v2754_v30, %v2754_v30  ;;  %v3483_v45 = vsel %vm3440_vm1, %v3326_v38, 0.0 }
 0x12e   : > { %5438 = vmatprep.mubr.msk.f32.mxu0 %vm421_vm0, %v1132_v37 }
 0x12f   : > { %3475 = vadd.xlane.f32.xlu1 %v3474_v27  ;;  %3472 = vadd.xlane.f32.xlu0 %v3471_v24  ;;  %v7527_v39 = vpop.f32.mrf.mxu0  ;;  %v7529_v2 = vpop.f32.mrf.mxu1  ;;  %v2764_v27 = vadd.f32 %v7405_v52, %v7416_v56  ;;  %v2779_v24 = vadd.f32 %v7418_v5, %v7434_v23  ;;  %v3331_v56 = vmul.f32 %v2769_v31, %v2769_v31 }
 0x130   : > { %v7531_v57 = vpop.xlane.xlu1 %636  ;;  %v7533_v61 = vpop.xlane.xlu0 %633 }
 0x131   : > { %v7538_v26 = vpop.f32.mrf.mxu0  ;;  %v7541_v6 = vpop.f32.mrf.mxu1  ;;  %5439 = vmatmul.mubr.msk.f32.gmra.mxu0 %vm421_vm0, %v1133_v47  ;;  %v3330_v21 = vmul.f32 %v2764_v27, %v2764_v27  ;;  %v3489_v47 = vsel %vm3440_vm1, %v3328_v51, 0.0  ;;  %v3333_v30 = vmul.f32 %v2779_v24, %v2779_v24  ;;  %v3498_v12 = vsel %vm3440_vm1, %v3331_v56, 0.0 }
 0x132   : > { %v2784_v51 = vadd.f32 %v7466_v48, %v7476_v20  ;;  %v2799_v20 = vadd.f32 %v7478_v36, %v7488_v41 }
 0x133   : > { %3481 = vadd.xlane.f32.xlu1 %v3480_v59  ;;  %3478 = vadd.xlane.f32.xlu0 %v3477_v53  ;;  %v7550_v62 = vpop.f32.mrf.mxu0  ;;  %v7552_v19 = vpop.f32.mrf.mxu1  ;;  %v2789_v53 = vadd.f32 %v7448_v10, %v7463_v60  ;;  %v3495_v31 = vsel %vm3440_vm1, %v3330_v21, 0.0  ;;  %v2794_v21 = vadd.f32 %v7491_v11, %v7502_v58 }
 0x134   : > { %v7554_v43 = vpop.xlane.xlu1 %642  ;;  %v7556_v25 = vpop.xlane.xlu0 %639  ;;  %v3334_v48 = vmul.f32 %v2784_v51, %v2784_v51  ;;  %v2809_v51 = vadd.f32 %v7504_v46, %v7515_v0  ;;  %v3337_v58 = vmul.f32 %v2799_v20, %v2799_v20  ;;  %v2819_v20 = vadd.f32 %v7529_v2, %v7538_v26 }
 0x135   : > { %v7559_v7 = vpop.f32.mrf.mxu0  ;;  %v7562_v49 = vpop.f32.mrf.mxu1  ;;  %v3335_v60 = vmul.f32 %v2789_v53, %v2789_v53 }
 0x136   : > { %v3341_v26 = vmul.f32 %v2819_v20, %v2819_v20 }
 0x137   : > { %3487 = vadd.xlane.f32.xlu1 %v3486_v32  ;;  %3484 = vadd.xlane.f32.xlu0 %v3483_v45  ;;  %v7569_v37 = vpop.f32.mrf.mxu0  ;;  %v7571_v44 = vpop.f32.mrf.mxu1  ;;  %v3510_v36 = vsel %vm3440_vm1, %v3335_v60, 0.0  ;;  %v3339_v60 = vmul.f32 %v2809_v51, %v2809_v51 }
 0x138   : > { %v7573_v29 = vpop.xlane.xlu1 %648  ;;  %v7575_v8 = vpop.xlane.xlu0 %645 }
 0x139   : > { %v7580_v42 = vpop.f32.mrf.mxu0  ;;  %v7582_v52 = vpop.f32.mrf.mxu1 }
 0x13b   : > { %3493 = vadd.xlane.f32.xlu1 %v3492_v28  ;;  %3490 = vadd.xlane.f32.xlu0 %v3489_v47  ;;  %v7587_v38 = vpop.f32.mrf.mxu0  ;;  %v7589_v59 = vpop.f32.mrf.mxu1  ;;  %v3504_v28 = vsel %vm3440_vm1, %v3333_v30, 0.0  ;;  %v3501_v47 = vsel %vm3440_vm1, %v3332_v34, 0.0  ;;  %v3336_v34 = vmul.f32 %v2794_v21, %v2794_v21 }
 0x13c   : > { %v7591_v5 = vpop.xlane.xlu1 %654  ;;  %v7593_v23 = vpop.xlane.xlu0 %651 }
 0x13d   : > { %9007 = vst [vmem:[#allocation58_spill] sm:$0xff] %v7593_v23  ;;  %v7597_v35 = vpop.f32.mrf.mxu0  ;;  %v7599_v32 = vpop.f32.mrf.mxu1 }
 0x13f   : > { %3499 = vadd.xlane.f32.xlu1 %v3498_v12  ;;  %3496 = vadd.xlane.f32.xlu0 %v3495_v31  ;;  %v7605_v27 = vpop.f32.mrf.mxu0  ;;  %v7607_v45 = vpop.f32.mrf.mxu1 }
 0x140   : > { %v7609_v24 = vpop.xlane.xlu1 %660  ;;  %v7611_v10 = vpop.xlane.xlu0 %657 }
 0x141   : > { %9008 = vst [vmem:[#allocation59_spill] sm:$0xff] %v7609_v24  ;;  %9009 = vst [vmem:[#allocation60_spill] sm:$0xff] %v7611_v10  ;;  %v7614_v15 = vpop.f32.mrf.mxu0  ;;  %v7616_v56 = vpop.f32.mrf.mxu1 }
 0x143   : > { %3505 = vadd.xlane.f32.xlu1 %v3504_v28  ;;  %3502 = vadd.xlane.f32.xlu0 %v3501_v47  ;;  %v7623_v12 = vpop.f32.mrf.mxu0  ;;  %v7625_v53 = vpop.f32.mrf.mxu1  ;;  %v2804_v28 = vadd.f32 %v7518_v63, %v7527_v39  ;;  %v3507_v47 = vsel %vm3440_vm1, %v3334_v48, 0.0  ;;  %v3516_v39 = vsel %vm3440_vm1, %v3337_v58, 0.0  ;;  %v2814_v48 = vadd.f32 %v7541_v6, %v7550_v62 }
 0x144   : > { %v7627_v30 = vpop.xlane.xlu1 %666  ;;  %v7629_v31 = vpop.xlane.xlu0 %663  ;;  %v2829_v62 = vadd.f32 %v7552_v19, %v7559_v7  ;;  %v3528_v19 = vsel %vm3440_vm1, %v3341_v26, 0.0 }
 0x145   : > { %9010 = vst [vmem:[#allocation61_spill] sm:$0xff] %v7627_v30  ;;  %9011 = vst [vmem:[#allocation62_spill] sm:$0xff] %v7629_v31  ;;  %v7634_v41 = vpop.f32.mrf.mxu0  ;;  %v7636_v11 = vpop.f32.mrf.mxu1  ;;  %v3338_v63 = vmul.f32 %v2804_v28, %v2804_v28  ;;  %v3522_v28 = vsel %vm3440_vm1, %v3339_v60, 0.0  ;;  %v3340_v6 = vmul.f32 %v2814_v48, %v2814_v48  ;;  %v2839_v48 = vadd.f32 %v7571_v44, %v7580_v42 }
 0x147   : > { %3511 = vadd.xlane.f32.xlu1 %v3510_v36  ;;  %3508 = vadd.xlane.f32.xlu0 %v3507_v47  ;;  %v7641_v30 = vpop.f32.mrf.mxu0  ;;  %v7643_v31 = vpop.f32.mrf.mxu1  ;;  %v3513_v36 = vsel %vm3440_vm1, %v3336_v34, 0.0  ;;  %v2824_v34 = vadd.f32 %v7562_v49, %v7569_v37  ;;  %v3343_v37 = vmul.f32 %v2829_v62, %v2829_v62  ;;  %v3345_v26 = vmul.f32 %v2839_v48, %v2839_v48 }
 0x148   : > { %v7645_v46 = vpop.xlane.xlu1 %672  ;;  %v7647_v0 = vpop.xlane.xlu0 %669  ;;  %v2849_v62 = vadd.f32 %v7589_v59, %v7597_v35 }
 0x149   : > { %9012 = vst [vmem:[#allocation63_spill] sm:$0xff] %v7645_v46  ;;  %9013 = vst [vmem:[#allocation64_spill] sm:$0xff] %v7647_v0  ;;  %v7651_v21 = vpop.f32.mrf.mxu0  ;;  %v7653_v10 = vpop.f32.mrf.mxu1 }
 0x14a   : > { %v3347_v35 = vmul.f32 %v2849_v62, %v2849_v62 }
 0x14b   : > { %3517 = vadd.xlane.f32.xlu1 %v3516_v39  ;;  %3514 = vadd.xlane.f32.xlu0 %v3513_v36  ;;  %v7659_v47 = vpop.f32.mrf.mxu0  ;;  %v7661_v51 = vpop.f32.mrf.mxu1  ;;  %v3519_v39 = vsel %vm3440_vm1, %v3338_v63, 0.0  ;;  %v3342_v63 = vmul.f32 %v2824_v34, %v2824_v34 }
 0x14c   : > { %v7663_v0 = vpop.xlane.xlu1 %678  ;;  %v7665_v2 = vpop.xlane.xlu0 %675 }
 0x14d   : > { %9014 = vst [vmem:[#allocation65_spill] sm:$0xff] %v7663_v0  ;;  %9015 = vst [vmem:[#allocation66_spill] sm:$0xff] %v7665_v2  ;;  %v7668_v46 = vpop.f32.mrf.mxu0  ;;  %v7670_v58 = vpop.f32.mrf.mxu1 }
 0x14f   : > { %3523 = vadd.xlane.f32.xlu1 %v3522_v28  ;;  %3520 = vadd.xlane.f32.xlu0 %v3519_v39  ;;  %v7677_v36 = vpop.f32.mrf.mxu0  ;;  %v7679_v20 = vpop.f32.mrf.mxu1  ;;  %v2834_v28 = vadd.f32 %v7582_v52, %v7587_v38  ;;  %v3525_v39 = vsel %vm3440_vm1, %v3340_v6, 0.0  ;;  %v3534_v38 = vsel %vm3440_vm1, %v3343_v37, 0.0  ;;  %v2844_v6 = vadd.f32 %v7599_v32, %v7605_v27 }
 0x150   : > { %v7681_v60 = vpop.xlane.xlu1 %684  ;;  %v7683_v2 = vpop.xlane.xlu0 %681  ;;  %v2859_v27 = vadd.f32 %v7607_v45, %v7614_v15  ;;  %v3546_v45 = vsel %vm3440_vm1, %v3347_v35, 0.0 }
 0x151   : > { %9016 = vst [vmem:[#allocation67_spill] sm:$0xff] %v7681_v60  ;;  %9017 = vst [vmem:[#allocation68_spill] sm:$0xff] %v7683_v2  ;;  %v7688_v7 = vpop.f32.mrf.mxu0  ;;  %v7690_v49 = vpop.f32.mrf.mxu1  ;;  %v3344_v52 = vmul.f32 %v2834_v28, %v2834_v28  ;;  %v3540_v28 = vsel %vm3440_vm1, %v3345_v26, 0.0  ;;  %v3346_v32 = vmul.f32 %v2844_v6, %v2844_v6  ;;  %v2869_v6 = vadd.f32 %v7625_v53, %v7634_v41 }
 0x153   : > { %3529 = vadd.xlane.f32.xlu1 %v3528_v19  ;;  %3526 = vadd.xlane.f32.xlu0 %v3525_v39  ;;  %v7695_v60 = vpop.f32.mrf.mxu0  ;;  %v7697_v2 = vpop.f32.mrf.mxu1  ;;  %v3531_v19 = vsel %vm3440_vm1, %v3342_v63, 0.0  ;;  %v2854_v63 = vadd.f32 %v7616_v56, %v7623_v12  ;;  %v3349_v12 = vmul.f32 %v2859_v27, %v2859_v27  ;;  %v3351_v35 = vmul.f32 %v2869_v6, %v2869_v6 }
 0x154   : > { %v7699_v44 = vpop.xlane.xlu1 %690  ;;  %v7701_v42 = vpop.xlane.xlu0 %687  ;;  %v2879_v27 = vadd.f32 %v7643_v31, %v7651_v21 }
 0x155   : > { %9018 = vst [vmem:[#allocation69_spill] sm:$0xff] %v7699_v44  ;;  %9019 = vst [vmem:[#allocation70_spill] sm:$0xff] %v7701_v42  ;;  %v7705_v34 = vpop.f32.mrf.mxu0  ;;  %v7707_v0 = vpop.f32.mrf.mxu1 }
 0x156   : > { %v3353_v21 = vmul.f32 %v2879_v27, %v2879_v27 }
 0x157   : > { %3535 = vadd.xlane.f32.xlu1 %v3534_v38  ;;  %3532 = vadd.xlane.f32.xlu0 %v3531_v19  ;;  %v7713_v39 = vpop.f32.mrf.mxu0  ;;  %v7715_v48 = vpop.f32.mrf.mxu1  ;;  %v3537_v38 = vsel %vm3440_vm1, %v3344_v52, 0.0  ;;  %v3348_v52 = vmul.f32 %v2854_v63, %v2854_v63 }
 0x158   : > { %v7717_v42 = vpop.xlane.xlu1 %696  ;;  %v7719_v59 = vpop.xlane.xlu0 %693 }
 0x159   : > { %9020 = vst [vmem:[#allocation71_spill] sm:$0xff] %v7717_v42  ;;  %9021 = vst [vmem:[#allocation72_spill] sm:$0xff] %v7719_v59  ;;  %v7722_v44 = vpop.f32.mrf.mxu0  ;;  %v7724_v37 = vpop.f32.mrf.mxu1 }
 0x15b   : > { %3541 = vadd.xlane.f32.xlu1 %v3540_v28  ;;  %3538 = vadd.xlane.f32.xlu0 %v3537_v38  ;;  %v7731_v19 = vpop.f32.mrf.mxu0  ;;  %v7733_v62 = vpop.f32.mrf.mxu1  ;;  %v2864_v28 = vadd.f32 %v7636_v11, %v7641_v30  ;;  %v3543_v38 = vsel %vm3440_vm1, %v3346_v32, 0.0  ;;  %v3552_v11 = vsel %vm3440_vm1, %v3349_v12, 0.0  ;;  %v2874_v32 = vadd.f32 %v7653_v10, %v7659_v47 }
 0x15c   : > { %v7735_v26 = vpop.xlane.xlu1 %702  ;;  %v7737_v59 = vpop.xlane.xlu0 %699  ;;  %v2889_v47 = vadd.f32 %v7661_v51, %v7668_v46  ;;  %v3564_v46 = vsel %vm3440_vm1, %v3353_v21, 0.0 }
 0x15d   : > { %9022 = vst [vmem:[#allocation73_spill] sm:$0xff] %v7735_v26  ;;  %9023 = vst [vmem:[#allocation74_spill] sm:$0xff] %v7737_v59  ;;  %v7742_v15 = vpop.f32.mrf.mxu0  ;;  %v7744_v56 = vpop.f32.mrf.mxu1  ;;  %v3350_v30 = vmul.f32 %v2864_v28, %v2864_v28  ;;  %v3558_v28 = vsel %vm3440_vm1, %v3351_v35, 0.0  ;;  %v3352_v10 = vmul.f32 %v2874_v32, %v2874_v32  ;;  %v2899_v32 = vadd.f32 %v7679_v20, %v7688_v7 }
 0x15f   : > { %3547 = vadd.xlane.f32.xlu1 %v3546_v45  ;;  %3544 = vadd.xlane.f32.xlu0 %v3543_v38  ;;  %v7749_v26 = vpop.f32.mrf.mxu0  ;;  %v7751_v59 = vpop.f32.mrf.mxu1  ;;  %v3549_v45 = vsel %vm3440_vm1, %v3348_v52, 0.0  ;;  %v2884_v52 = vadd.f32 %v7670_v58, %v7677_v36  ;;  %v3355_v36 = vmul.f32 %v2889_v47, %v2889_v47  ;;  %v3357_v21 = vmul.f32 %v2899_v32, %v2899_v32 }
 0x160   : > { %v7753_v53 = vpop.xlane.xlu1 %708  ;;  %v7755_v41 = vpop.xlane.xlu0 %705  ;;  %v2909_v47 = vadd.f32 %v7697_v2, %v7705_v34 }
 0x161   : > { %9024 = vst [vmem:[#allocation75_spill] sm:$0xff] %v7753_v53  ;;  %9025 = vst [vmem:[#allocation76_spill] sm:$0xff] %v7755_v41  ;;  %v7759_v63 = vpop.f32.mrf.mxu0  ;;  %v7761_v42 = vpop.f32.mrf.mxu1 }
 0x162   : > { %v3359_v34 = vmul.f32 %v2909_v47, %v2909_v47 }
 0x163   : > { %3553 = vadd.xlane.f32.xlu1 %v3552_v11  ;;  %3550 = vadd.xlane.f32.xlu0 %v3549_v45  ;;  %v7767_v38 = vpop.f32.mrf.mxu0  ;;  %v7769_v6 = vpop.f32.mrf.mxu1  ;;  %v3555_v11 = vsel %vm3440_vm1, %v3350_v30, 0.0  ;;  %v3354_v30 = vmul.f32 %v2884_v52, %v2884_v52 }
 0x164   : > { %v7771_v41 = vpop.xlane.xlu1 %714  ;;  %v7773_v31 = vpop.xlane.xlu0 %711 }
 0x165   : > { %9026 = vst [vmem:[#allocation77_spill] sm:$0xff] %v7771_v41  ;;  %9027 = vst [vmem:[#allocation78_spill] sm:$0xff] %v7773_v31  ;;  %v7776_v53 = vpop.f32.mrf.mxu0  ;;  %v7778_v12 = vpop.f32.mrf.mxu1 }
 0x167   : > { %3559 = vadd.xlane.f32.xlu1 %v3558_v28  ;;  %3556 = vadd.xlane.f32.xlu0 %v3555_v11  ;;  %v7785_v45 = vpop.f32.mrf.mxu0  ;;  %v7787_v27 = vpop.f32.mrf.mxu1  ;;  %v2894_v28 = vadd.f32 %v7690_v49, %v7695_v60  ;;  %v3561_v11 = vsel %vm3440_vm1, %v3352_v10, 0.0  ;;  %v3570_v49 = vsel %vm3440_vm1, %v3355_v36, 0.0  ;;  %v2904_v10 = vadd.f32 %v7707_v0, %v7713_v39 }
 0x168   : > { %v7789_v35 = vpop.xlane.xlu1 %720  ;;  %v7791_v31 = vpop.xlane.xlu0 %717  ;;  %v2919_v39 = vadd.f32 %v7715_v48, %v7722_v44  ;;  %v3582_v44 = vsel %vm3440_vm1, %v3359_v34, 0.0 }
 0x169   : > { %9028 = vst [vmem:[#allocation79_spill] sm:$0xff] %v7789_v35  ;;  %9029 = vst [vmem:[#allocation80_spill] sm:$0xff] %v7791_v31  ;;  %v7796_v51 = vpop.f32.mrf.mxu0  ;;  %v7798_v58 = vpop.f32.mrf.mxu1  ;;  %v3356_v60 = vmul.f32 %v2894_v28, %v2894_v28  ;;  %v3576_v28 = vsel %vm3440_vm1, %v3357_v21, 0.0  ;;  %v3358_v0 = vmul.f32 %v2904_v10, %v2904_v10  ;;  %v2929_v10 = vadd.f32 %v7733_v62, %v7742_v15 }
 0x16b   : > { %3565 = vadd.xlane.f32.xlu1 %v3564_v46  ;;  %3562 = vadd.xlane.f32.xlu0 %v3561_v11  ;;  %v7803_v35 = vpop.f32.mrf.mxu0  ;;  %v7805_v31 = vpop.f32.mrf.mxu1  ;;  %v3567_v46 = vsel %vm3440_vm1, %v3354_v30, 0.0  ;;  %v2914_v30 = vadd.f32 %v7724_v37, %v7731_v19  ;;  %v3361_v19 = vmul.f32 %v2919_v39, %v2919_v39  ;;  %v3363_v34 = vmul.f32 %v2929_v10, %v2929_v10 }
 0x16c   : > { %v7807_v20 = vpop.xlane.xlu1 %726  ;;  %v7809_v7 = vpop.xlane.xlu0 %723  ;;  %v2939_v39 = vadd.f32 %v7751_v59, %v7759_v63 }
 0x16d   : > { %9030 = vst [vmem:[#allocation81_spill] sm:$0xff] %v7807_v20  ;;  %9031 = vst [vmem:[#allocation82_spill] sm:$0xff] %v7809_v7  ;;  %v7813_v52 = vpop.f32.mrf.mxu0  ;;  %v7815_v41 = vpop.f32.mrf.mxu1 }
 0x16e   : > { %v3365_v63 = vmul.f32 %v2939_v39, %v2939_v39 }
 0x16f   : > { %3571 = vadd.xlane.f32.xlu1 %v3570_v49  ;;  %3568 = vadd.xlane.f32.xlu0 %v3567_v46  ;;  %v7821_v11 = vpop.f32.mrf.mxu0  ;;  %v7823_v32 = vpop.f32.mrf.mxu1  ;;  %v3573_v49 = vsel %vm3440_vm1, %v3356_v60, 0.0  ;;  %v3360_v60 = vmul.f32 %v2914_v30, %v2914_v30 }
 0x170   : > { %v7825_v7 = vpop.xlane.xlu1 %732  ;;  %v7827_v2 = vpop.xlane.xlu0 %729 }
 0x171   : > { %9032 = vst [vmem:[#allocation83_spill] sm:$0xff] %v7825_v7  ;;  %9033 = vst [vmem:[#allocation84_spill] sm:$0xff] %v7827_v2  ;;  %v7830_v20 = vpop.f32.mrf.mxu0  ;;  %v7832_v36 = vpop.f32.mrf.mxu1 }
 0x173   : > { %3577 = vadd.xlane.f32.xlu1 %v3576_v28  ;;  %3574 = vadd.xlane.f32.xlu0 %v3573_v49  ;;  %v7839_v46 = vpop.f32.mrf.mxu0  ;;  %v7841_v47 = vpop.f32.mrf.mxu1  ;;  %v2924_v28 = vadd.f32 %v7744_v56, %v7749_v26  ;;  %v3579_v49 = vsel %vm3440_vm1, %v3358_v0, 0.0  ;;  %v3588_v56 = vsel %vm3440_vm1, %v3361_v19, 0.0  ;;  %v2934_v0 = vadd.f32 %v7761_v42, %v7767_v38 }
 0x174   : > { %v7843_v21 = vpop.xlane.xlu1 %738  ;;  %v7845_v2 = vpop.xlane.xlu0 %735  ;;  %v2949_v38 = vadd.f32 %v7769_v6, %v7776_v53  ;;  %v3600_v53 = vsel %vm3440_vm1, %v3365_v63, 0.0 }
 0x175   : > { %9034 = vst [vmem:[#allocation85_spill] sm:$0xff] %v7843_v21  ;;  %9035 = vst [vmem:[#allocation86_spill] sm:$0xff] %v7845_v2  ;;  %v7850_v48 = vpop.f32.mrf.mxu0  ;;  %v7852_v37 = vpop.f32.mrf.mxu1  ;;  %v3362_v26 = vmul.f32 %v2924_v28, %v2924_v28  ;;  %v3594_v28 = vsel %vm3440_vm1, %v3363_v34, 0.0  ;;  %v3364_v42 = vmul.f32 %v2934_v0, %v2934_v0  ;;  %v2959_v0 = vadd.f32 %v7787_v27, %v7796_v51 }
 0x177   : > { %3583 = vadd.xlane.f32.xlu1 %v3582_v44  ;;  %3580 = vadd.xlane.f32.xlu0 %v3579_v49  ;;  %v7857_v21 = vpop.f32.mrf.mxu0  ;;  %v7859_v2 = vpop.f32.mrf.mxu1  ;;  %v3585_v44 = vsel %vm3440_vm1, %v3360_v60, 0.0  ;;  %v2944_v60 = vadd.f32 %v7778_v12, %v7785_v45  ;;  %v3367_v45 = vmul.f32 %v2949_v38, %v2949_v38  ;;  %v3369_v63 = vmul.f32 %v2959_v0, %v2959_v0 }
 0x178   : > { %v7861_v62 = vpop.xlane.xlu1 %744  ;;  %v7863_v15 = vpop.xlane.xlu0 %741  ;;  %v2969_v38 = vadd.f32 %v7805_v31, %v7813_v52 }
 0x179   : > { %9036 = vst [vmem:[#allocation87_spill] sm:$0xff] %v7861_v62  ;;  %9037 = vst [vmem:[#allocation88_spill] sm:$0xff] %v7863_v15  ;;  %v7867_v30 = vpop.f32.mrf.mxu0  ;;  %v7869_v7 = vpop.f32.mrf.mxu1 }
 0x17a   : > { %v3371_v52 = vmul.f32 %v2969_v38, %v2969_v38 }
 0x17b   : > { %3589 = vadd.xlane.f32.xlu1 %v3588_v56  ;;  %3586 = vadd.xlane.f32.xlu0 %v3585_v44  ;;  %v7875_v49 = vpop.f32.mrf.mxu0  ;;  %v7877_v10 = vpop.f32.mrf.mxu1  ;;  %v3591_v56 = vsel %vm3440_vm1, %v3362_v26, 0.0  ;;  %v3366_v26 = vmul.f32 %v2944_v60, %v2944_v60 }
 0x17c   : > { %v7879_v15 = vpop.xlane.xlu1 %750  ;;  %v7881_v59 = vpop.xlane.xlu0 %747 }
 0x17d   : > { %9038 = vst [vmem:[#allocation89_spill] sm:$0xff] %v7879_v15  ;;  %9039 = vst [vmem:[#allocation90_spill] sm:$0xff] %v7881_v59  ;;  %v7884_v62 = vpop.f32.mrf.mxu0  ;;  %v7886_v19 = vpop.f32.mrf.mxu1 }
 0x17f   : > { %3595 = vadd.xlane.f32.xlu1 %v3594_v28  ;;  %3592 = vadd.xlane.f32.xlu0 %v3591_v56  ;;  %v7893_v44 = vpop.f32.mrf.mxu0  ;;  %v7895_v39 = vpop.f32.mrf.mxu1  ;;  %v2954_v28 = vadd.f32 %v7798_v58, %v7803_v35  ;;  %v3597_v56 = vsel %vm3440_vm1, %v3364_v42, 0.0  ;;  %v3606_v58 = vsel %vm3440_vm1, %v3367_v45, 0.0  ;;  %v2964_v42 = vadd.f32 %v7815_v41, %v7821_v11 }
 0x180   : > { %v7897_v34 = vpop.xlane.xlu1 %756  ;;  %v7899_v59 = vpop.xlane.xlu0 %753  ;;  %v2979_v11 = vadd.f32 %v7823_v32, %v7830_v20  ;;  %v3618_v20 = vsel %vm3440_vm1, %v3371_v52, 0.0 }
 0x181   : > { %9040 = vst [vmem:[#allocation91_spill] sm:$0xff] %v7897_v34  ;;  %9041 = vst [vmem:[#allocation92_spill] sm:$0xff] %v7899_v59  ;;  %v7904_v6 = vpop.f32.mrf.mxu0  ;;  %v7906_v12 = vpop.f32.mrf.mxu1  ;;  %v3368_v35 = vmul.f32 %v2954_v28, %v2954_v28  ;;  %v3612_v28 = vsel %vm3440_vm1, %v3369_v63, 0.0  ;;  %v3370_v41 = vmul.f32 %v2964_v42, %v2964_v42  ;;  %v2989_v42 = vadd.f32 %v7841_v47, %v7850_v48 }
 0x183   : > { %3601 = vadd.xlane.f32.xlu1 %v3600_v53  ;;  %3598 = vadd.xlane.f32.xlu0 %v3597_v56  ;;  %v7911_v34 = vpop.f32.mrf.mxu0  ;;  %v7913_v59 = vpop.f32.mrf.mxu1  ;;  %v3603_v53 = vsel %vm3440_vm1, %v3366_v26, 0.0  ;;  %v2974_v26 = vadd.f32 %v7832_v36, %v7839_v46  ;;  %v3373_v46 = vmul.f32 %v2979_v11, %v2979_v11  ;;  %v3375_v52 = vmul.f32 %v2989_v42, %v2989_v42 }
 0x184   : > { %v7915_v27 = vpop.xlane.xlu1 %762  ;;  %v7917_v51 = vpop.xlane.xlu0 %759  ;;  %v2999_v11 = vadd.f32 %v7859_v2, %v7867_v30 }
 0x185   : > { %9042 = vst [vmem:[#allocation93_spill] sm:$0xff] %v7915_v27  ;;  %9043 = vst [vmem:[#allocation94_spill] sm:$0xff] %v7917_v51  ;;  %v7921_v60 = vpop.f32.mrf.mxu0  ;;  %v7923_v15 = vpop.f32.mrf.mxu1 }
 0x186   : > { %v3377_v30 = vmul.f32 %v2999_v11, %v2999_v11 }
 0x187   : > { %3607 = vadd.xlane.f32.xlu1 %v3606_v58  ;;  %3604 = vadd.xlane.f32.xlu0 %v3603_v53  ;;  %v7929_v56 = vpop.f32.mrf.mxu0  ;;  %v7931_v0 = vpop.f32.mrf.mxu1  ;;  %v3609_v58 = vsel %vm3440_vm1, %v3368_v35, 0.0  ;;  %v3372_v35 = vmul.f32 %v2974_v26, %v2974_v26 }
 0x188   : > { %v7933_v51 = vpop.xlane.xlu1 %768  ;;  %v7935_v31 = vpop.xlane.xlu0 %765 }
 0x189   : > { %9044 = vst [vmem:[#allocation95_spill] sm:$0xff] %v7933_v51  ;;  %9045 = vst [vmem:[#allocation96_spill] sm:$0xff] %v7935_v31  ;;  %v7938_v27 = vpop.f32.mrf.mxu0  ;;  %v7940_v45 = vpop.f32.mrf.mxu1 }
 0x18b   : > { %3613 = vadd.xlane.f32.xlu1 %v3612_v28  ;;  %3610 = vadd.xlane.f32.xlu0 %v3609_v58  ;;  %v7947_v53 = vpop.f32.mrf.mxu0  ;;  %v7949_v38 = vpop.f32.mrf.mxu1  ;;  %v2984_v28 = vadd.f32 %v7852_v37, %v7857_v21  ;;  %v3615_v58 = vsel %vm3440_vm1, %v3370_v41, 0.0  ;;  %v3624_v37 = vsel %vm3440_vm1, %v3373_v46, 0.0  ;;  %v2994_v41 = vadd.f32 %v7869_v7, %v7875_v49 }
 0x18c   : > { %v7951_v63 = vpop.xlane.xlu1 %774  ;;  %v7953_v31 = vpop.xlane.xlu0 %771  ;;  %v3009_v49 = vadd.f32 %v7877_v10, %v7884_v62  ;;  %v3636_v62 = vsel %vm3440_vm1, %v3377_v30, 0.0 }
 0x18d   : > { %9046 = vst [vmem:[#allocation97_spill] sm:$0xff] %v7951_v63  ;;  %9047 = vst [vmem:[#allocation98_spill] sm:$0xff] %v7953_v31  ;;  %v7958_v32 = vpop.f32.mrf.mxu0  ;;  %v7960_v36 = vpop.f32.mrf.mxu1  ;;  %v3374_v21 = vmul.f32 %v2984_v28, %v2984_v28  ;;  %v3630_v28 = vsel %vm3440_vm1, %v3375_v52, 0.0  ;;  %v3376_v7 = vmul.f32 %v2994_v41, %v2994_v41  ;;  %v3019_v41 = vadd.f32 %v7895_v39, %v7904_v6 }
 0x18f   : > { %3619 = vadd.xlane.f32.xlu1 %v3618_v20  ;;  %3616 = vadd.xlane.f32.xlu0 %v3615_v58  ;;  %v7965_v63 = vpop.f32.mrf.mxu0  ;;  %v7967_v31 = vpop.f32.mrf.mxu1  ;;  %v3621_v20 = vsel %vm3440_vm1, %v3372_v35, 0.0  ;;  %v3004_v35 = vadd.f32 %v7886_v19, %v7893_v44  ;;  %v3379_v44 = vmul.f32 %v3009_v49, %v3009_v49  ;;  %v3381_v30 = vmul.f32 %v3019_v41, %v3019_v41 }
 0x190   : > { %v7969_v47 = vpop.xlane.xlu1 %780  ;;  %v7971_v48 = vpop.xlane.xlu0 %777  ;;  %v3029_v49 = vadd.f32 %v7913_v59, %v7921_v60 }
 0x191   : > { %9048 = vst [vmem:[#allocation99_spill] sm:$0xff] %v7969_v47  ;;  %9049 = vst [vmem:[#allocation100_spill] sm:$0xff] %v7971_v48  ;;  %v7975_v26 = vpop.f32.mrf.mxu0  ;;  %v7977_v51 = vpop.f32.mrf.mxu1 }
 0x192   : > { %v3383_v60 = vmul.f32 %v3029_v49, %v3029_v49 }
 0x193   : > { %3625 = vadd.xlane.f32.xlu1 %v3624_v37  ;;  %3622 = vadd.xlane.f32.xlu0 %v3621_v20  ;;  %v7983_v58 = vpop.f32.mrf.mxu0  ;;  %v7985_v42 = vpop.f32.mrf.mxu1  ;;  %v3627_v37 = vsel %vm3440_vm1, %v3374_v21, 0.0  ;;  %v3378_v21 = vmul.f32 %v3004_v35, %v3004_v35 }
 0x194   : > { %v7987_v48 = vpop.xlane.xlu1 %786  ;;  %v7989_v2 = vpop.xlane.xlu0 %783 }
 0x195   : > { %9050 = vst [vmem:[#allocation101_spill] sm:$0xff] %v7987_v48  ;;  %9051 = vst [vmem:[#allocation102_spill] sm:$0xff] %v7989_v2  ;;  %v7992_v47 = vpop.f32.mrf.mxu0  ;;  %v7994_v46 = vpop.f32.mrf.mxu1 }
 0x197   : > { %3631 = vadd.xlane.f32.xlu1 %v3630_v28  ;;  %3628 = vadd.xlane.f32.xlu0 %v3627_v37  ;;  %v8001_v20 = vpop.f32.mrf.mxu0  ;;  %v8003_v11 = vpop.f32.mrf.mxu1  ;;  %v3014_v28 = vadd.f32 %v7906_v12, %v7911_v34  ;;  %v3633_v37 = vsel %vm3440_vm1, %v3376_v7, 0.0  ;;  %v3642_v7 = vsel %vm3440_vm1, %v3379_v44, 0.0 }
 0x198   : > { %v8005_v52 = vpop.xlane.xlu1 %792  ;;  %v8007_v2 = vpop.xlane.xlu0 %789 }
 0x199   : > { %9052 = vst [vmem:[#allocation103_spill] sm:$0xff] %v8005_v52  ;;  %9053 = vst [vmem:[#allocation104_spill] sm:$0xff] %v8007_v2  ;;  %v8012_v10 = vpop.f32.mrf.mxu0  ;;  %v8014_v19 = vpop.f32.mrf.mxu1  ;;  %v3380_v12 = vmul.f32 %v3014_v28, %v3014_v28  ;;  %v3648_v28 = vsel %vm3440_vm1, %v3381_v30, 0.0 }
 0x19b   : > { %3637 = vadd.xlane.f32.xlu1 %v3636_v62  ;;  %3634 = vadd.xlane.f32.xlu0 %v3633_v37  ;;  %v8019_v52 = vpop.f32.mrf.mxu0  ;;  %v8021_v2 = vpop.f32.mrf.mxu1  ;;  %v3024_v62 = vadd.f32 %v7923_v15, %v7929_v56  ;;  %v3639_v37 = vsel %vm3440_vm1, %v3378_v21, 0.0  ;;  %v3039_v56 = vadd.f32 %v7931_v0, %v7938_v27  ;;  %v3034_v21 = vadd.f32 %v7940_v45, %v7947_v53 }
 0x19c   : > { %v8023_v39 = vpop.xlane.xlu1 %798  ;;  %v8025_v6 = vpop.xlane.xlu0 %795  ;;  %v3049_v27 = vadd.f32 %v7949_v38, %v7958_v32  ;;  %v3654_v0 = vsel %vm3440_vm1, %v3383_v60, 0.0 }
 0x19d   : > { %9054 = vst [vmem:[#allocation105_spill] sm:$0xff] %v8023_v39  ;;  %9055 = vst [vmem:[#allocation106_spill] sm:$0xff] %v8025_v6  ;;  %v8029_v35 = vpop.f32.mrf.mxu0  ;;  %v8031_v34 = vpop.f32.mrf.mxu1  ;;  %v3382_v15 = vmul.f32 %v3024_v62, %v3024_v62 }
 0x19f   : > { %3643 = vadd.xlane.f32.xlu1 %v3642_v7  ;;  %3640 = vadd.xlane.f32.xlu0 %v3639_v37  ;;  %v8037_v39 = vpop.f32.mrf.mxu0  ;;  %v8039_v41 = vpop.f32.mrf.mxu1  ;;  %v3645_v7 = vsel %vm3440_vm1, %v3380_v12, 0.0  ;;  %v3385_v12 = vmul.f32 %v3039_v56, %v3039_v56  ;;  %v3651_v24 = vsel %vm3440_vm1, %v3382_v15, 0.0 }
 0x1a0   : > { %v8041_v6 = vpop.xlane.xlu1 %804  ;;  %v8043_v59 = vpop.xlane.xlu0 %801 }
 0x1a1   : > { %9056 = vst [vmem:[#allocation107_spill] sm:$0xff] %v8041_v6  ;;  %9057 = vst [vmem:[#allocation108_spill] sm:$0xff] %v8043_v59  ;;  %v8047_v44 = vpop.f32.mrf.mxu0  ;;  %v8049_v48 = vpop.f32.mrf.mxu1 }
 0x1a3   : > { %3649 = vadd.xlane.f32.xlu1 %v3648_v28  ;;  %3646 = vadd.xlane.f32.xlu0 %v3645_v7  ;;  %v8056_v37 = vpop.f32.mrf.mxu0  ;;  %v8058_v49 = vpop.f32.mrf.mxu1  ;;  %v3384_v28 = vmul.f32 %v3034_v21, %v3034_v21  ;;  %v3044_v7 = vadd.f32 %v7960_v36, %v7965_v63  ;;  %v3387_v63 = vmul.f32 %v3049_v27, %v3049_v27 }
 0x1a4   : > { %v3446_v30 = vpop.xlane.xlu1 %3445  ;;  %v3443_v59 = vpop.xlane.xlu0 %3442 }
 0x1a5   : > { %v3826_v62 = vsub.f32 %v3446_v30, %v6595_v55  ;;  %v3825_v6 = vsub.f32 %v3443_v59, %v6571_v40  ;;  %v8065_v45 = vpop.f32.mrf.mxu0  ;;  %v8067_v53 = vpop.f32.mrf.mxu1  ;;  %v3386_v21 = vmul.f32 %v3044_v7, %v3044_v7  ;;  %v3660_v30 = vsel %vm3440_vm1, %v3385_v12, 0.0  ;;  %v9059_v7 = vld [vmem:[#allocation4_spill] sm:$0xff] }
 0x1a7   : > { %v3954_v23 = vmul.f32 0.5, %v3826_v62  ;;  %v3953_v55 = vmul.f32 0.5, %v3825_v6  ;;  %3655 = vadd.xlane.f32.xlu1 %v3654_v0  ;;  %3652 = vadd.xlane.f32.xlu0 %v3651_v24  ;;  %v8072_v40 = vpop.f32.mrf.mxu0  ;;  %v8074_v38 = vpop.f32.mrf.mxu1  ;;  %v9058_v6 = vld [vmem:[#allocation3_spill] sm:$0xff]  ;;  %v3059_v24 = vadd.f32 %v7967_v31, %v7975_v26  ;;  %v3657_v62 = vsel %vm3440_vm1, %v3384_v28, 0.0 }
 0x1a8   : > { %v3452_v32 = vpop.xlane.xlu1 %3451  ;;  %v3449_v59 = vpop.xlane.xlu0 %3448  ;;  %v3666_v28 = vsel %vm3440_vm1, %v3387_v63, 0.0 }
 0x1a9   : > { %4083 = vst.msk [vmem:[%s8076_s9 + $0x8] sm:$0xff] %vm4081_vm2, %v3954_v23  ;;  %4082 = vst.msk [vmem:[%s8076_s9] sm:$0xff] %vm4081_vm2, %v3953_v55  ;;  %v3828_v36 = vsub.f32 %v3452_v32, %v6593_v54  ;;  %v3827_v60 = vsub.f32 %v3449_v59, %v9058_v6  ;;  %v8086_v15 = vpop.f32.mrf.mxu0  ;;  %v8088_v56 = vpop.f32.mrf.mxu1  ;;  %v3054_v23 = vadd.f32 %v7977_v51, %v7983_v58  ;;  %v9060_v51 = vld [vmem:[#allocation5_spill] sm:$0xff] }
 0x1aa   : > { %v3389_v12 = vmul.f32 %v3059_v24, %v3059_v24  ;;  %v3663_v24 = vsel %vm3440_vm1, %v3386_v21, 0.0 }
 0x1ab   : > { %v3956_v54 = vmul.f32 0.5, %v3828_v36  ;;  %v3955_v27 = vmul.f32 0.5, %v3827_v60  ;;  %3661 = vadd.xlane.f32.xlu1 %v3660_v30  ;;  %3658 = vadd.xlane.f32.xlu0 %v3657_v62  ;;  %v8094_v0 = vpop.f32.mrf.mxu0  ;;  %v8096_v31 = vpop.f32.mrf.mxu1  ;;  %v3388_v6 = vmul.f32 %v3054_v23, %v3054_v23  ;;  %v3069_v60 = vadd.f32 %v7985_v42, %v7992_v47  ;;  %v9061_v47 = vld [vmem:[#allocation6_spill] sm:$0xff]  ;;  %v9062_v23 = vld [vmem:[#allocation7_spill] sm:$0xff] }
 0x1ac   : > { %v3458_v26 = vpop.xlane.xlu1 %3457  ;;  %v3455_v55 = vpop.xlane.xlu0 %3454  ;;  %v3064_v30 = vadd.f32 %v7994_v46, %v8001_v20  ;;  %v3079_v20 = vadd.f32 %v8003_v11, %v8012_v10  ;;  %v3672_v21 = vsel %vm3440_vm1, %v3389_v12, 0.0 }
 0x1ad   : > { %4085 = vst.msk [vmem:[%s8076_s9 + $0x18] sm:$0xff] %vm4081_vm2, %v3956_v54  ;;  %4084 = vst.msk [vmem:[%s8076_s9 + $0x10] sm:$0xff] %vm4081_vm2, %v3955_v27  ;;  %v3830_v32 = vsub.f32 %v3458_v26, %v9059_v7  ;;  %v3829_v58 = vsub.f32 %v3455_v55, %v9060_v51  ;;  %v8105_v59 = vpop.f32.mrf.mxu0  ;;  %v8107_v36 = vpop.f32.mrf.mxu1  ;;  %v3391_v51 = vmul.f32 %v3069_v60, %v3069_v60 }
 0x1ae   : > { %v3393_v60 = vmul.f32 %v3079_v20, %v3079_v20 }
 0x1af   : > { %v3958_v62 = vmul.f32 0.5, %v3830_v32  ;;  %v3957_v54 = vmul.f32 0.5, %v3829_v58  ;;  %3667 = vadd.xlane.f32.xlu1 %v3666_v28  ;;  %3664 = vadd.xlane.f32.xlu0 %v3663_v24  ;;  %v8114_v27 = vpop.f32.mrf.mxu0  ;;  %v8116_v63 = vpop.f32.mrf.mxu1  ;;  %v3390_v58 = vmul.f32 %v3064_v30, %v3064_v30  ;;  %v3074_v28 = vadd.f32 %v8014_v19, %v8019_v52  ;;  %v9063_v30 = vld [vmem:[#allocation8_spill] sm:$0xff]  ;;  %v9064_v52 = vld [vmem:[#allocation9_spill] sm:$0xff] }
 0x1b0   : > { %v3464_v26 = vpop.xlane.xlu1 %3463  ;;  %v3461_v55 = vpop.xlane.xlu0 %3460  ;;  %v3669_v24 = vsel %vm3440_vm1, %v3388_v6, 0.0  ;;  %v3089_v6 = vadd.f32 %v8021_v2, %v8029_v35 }
 0x1b1   : > { %4087 = vst.msk [vmem:[%s8076_s9 + $0x28] sm:$0xff] %vm4081_vm2, %v3958_v62  ;;  %4086 = vst.msk [vmem:[%s8076_s9 + $0x20] sm:$0xff] %vm4081_vm2, %v3957_v54  ;;  %v3832_v42 = vsub.f32 %v3464_v26, %v9061_v47  ;;  %v3831_v46 = vsub.f32 %v3461_v55, %v9062_v23  ;;  %v8127_v7 = vpop.f32.mrf.mxu0  ;;  %v8129_v32 = vpop.f32.mrf.mxu1  ;;  %v3392_v23 = vmul.f32 %v3074_v28, %v3074_v28  ;;  %v3675_v20 = vsel %vm3440_vm1, %v3390_v58, 0.0  ;;  %v9065_v28 = vld [vmem:[#allocation10_spill] sm:$0xff] }
 0x1b2   : > { %v3684_v58 = vsel %vm3440_vm1, %v3393_v60, 0.0 }
 0x1b3   : > { %v3960_v62 = vmul.f32 0.5, %v3832_v42  ;;  %v3959_v54 = vmul.f32 0.5, %v3831_v46  ;;  %3673 = vadd.xlane.f32.xlu1 %v3672_v21  ;;  %3670 = vadd.xlane.f32.xlu0 %v3669_v24  ;;  %v8134_v11 = vpop.f32.mrf.mxu0  ;;  %v8136_v10 = vpop.f32.mrf.mxu1  ;;  %v3678_v46 = vsel %vm3440_vm1, %v3391_v51, 0.0  ;;  %v3084_v21 = vadd.f32 %v8031_v34, %v8037_v39  ;;  %v9066_v39 = vld [vmem:[#allocation11_spill] sm:$0xff] }
 0x1b4   : > { %v3470_v12 = vpop.xlane.xlu1 %3469  ;;  %v3467_v26 = vpop.xlane.xlu0 %3466  ;;  %v3395_v51 = vmul.f32 %v3089_v6, %v3089_v6  ;;  %v3681_v6 = vsel %vm3440_vm1, %v3392_v23, 0.0 }
 0x1b5   : > { %4089 = vst.msk [vmem:[%s8076_s9 + $0x38] sm:$0xff] %vm4081_vm2, %v3960_v62  ;;  %4088 = vst.msk [vmem:[%s8076_s9 + $0x30] sm:$0xff] %vm4081_vm2, %v3959_v54  ;;  %v3834_v55 = vsub.f32 %v3470_v12, %v9063_v30  ;;  %v3833_v19 = vsub.f32 %v3467_v26, %v9064_v52  ;;  %v8146_v47 = vpop.f32.mrf.mxu0  ;;  %v8148_v42 = vpop.f32.mrf.mxu1  ;;  %v3394_v52 = vmul.f32 %v3084_v21, %v3084_v21  ;;  %v9068_v21 = vld [vmem:[#allocation13_spill] sm:$0xff] }
 0x1b6   : > { %v3690_v23 = vsel %vm3440_vm1, %v3395_v51, 0.0 }
 0x1b7   : > { %v3962_v24 = vmul.f32 0.5, %v3834_v55  ;;  %v3961_v62 = vmul.f32 0.5, %v3833_v19  ;;  %3679 = vadd.xlane.f32.xlu1 %v3678_v46  ;;  %3676 = vadd.xlane.f32.xlu0 %v3675_v20  ;;  %v8154_v54 = vpop.f32.mrf.mxu0  ;;  %v8156_v2 = vpop.f32.mrf.mxu1  ;;  %v3099_v19 = vadd.f32 %v8039_v41, %v8047_v44  ;;  %v3094_v46 = vadd.f32 %v8049_v48, %v8056_v37  ;;  %v9067_v41 = vld [vmem:[#allocation12_spill] sm:$0xff] }
 0x1b8   : > { %v3476_v35 = vpop.xlane.xlu1 %3475  ;;  %v3473_v12 = vpop.xlane.xlu0 %3472  ;;  %v3109_v37 = vadd.f32 %v8058_v49, %v8065_v45 }
 0x1b9   : > { %4091 = vst.msk [vmem:[%s8076_s9 + $0x48] sm:$0xff] %vm4081_vm2, %v3962_v24  ;;  %4090 = vst.msk [vmem:[%s8076_s9 + $0x40] sm:$0xff] %vm4081_vm2, %v3961_v62  ;;  %v3836_v26 = vsub.f32 %v3476_v35, %v9065_v28  ;;  %v3835_v34 = vsub.f32 %v3473_v12, %v9066_v39  ;;  %v8165_v30 = vpop.f32.mrf.mxu0  ;;  %v8167_v55 = vpop.f32.mrf.mxu1  ;;  %v3397_v39 = vmul.f32 %v3099_v19, %v3099_v19 }
 0x1ba   : > { %v3399_v19 = vmul.f32 %v3109_v37, %v3109_v37 }
 0x1bb   : > { %v3964_v20 = vmul.f32 0.5, %v3836_v26  ;;  %v3963_v24 = vmul.f32 0.5, %v3835_v34  ;;  %3685 = vadd.xlane.f32.xlu1 %v3684_v58  ;;  %3682 = vadd.xlane.f32.xlu0 %v3681_v6  ;;  %v8174_v62 = vpop.f32.mrf.mxu0  ;;  %v8176_v60 = vpop.f32.mrf.mxu1  ;;  %v3396_v34 = vmul.f32 %v3094_v46, %v3094_v46  ;;  %v3104_v58 = vadd.f32 %v8067_v53, %v8072_v40  ;;  %v9069_v46 = vld [vmem:[#allocation14_spill] sm:$0xff]  ;;  %v9070_v53 = vld [vmem:[#allocation15_spill] sm:$0xff] }
 0x1bc   : > { %v3482_v35 = vpop.xlane.xlu1 %3481  ;;  %v3479_v12 = vpop.xlane.xlu0 %3478  ;;  %v3687_v6 = vsel %vm3440_vm1, %v3394_v52, 0.0  ;;  %v3119_v52 = vadd.f32 %v8074_v38, %v8086_v15 }
 0x1bd   : > { %4093 = vst.msk [vmem:[%s8076_s9 + $0x58] sm:$0xff] %vm4081_vm2, %v3964_v20  ;;  %4092 = vst.msk [vmem:[%s8076_s9 + $0x50] sm:$0xff] %vm4081_vm2, %v3963_v24  ;;  %v3838_v44 = vsub.f32 %v3482_v35, %v9067_v41  ;;  %v3837_v48 = vsub.f32 %v3479_v12, %v9068_v21  ;;  %v8187_v28 = vpop.f32.mrf.mxu0  ;;  %v8189_v26 = vpop.f32.mrf.mxu1  ;;  %v3398_v21 = vmul.f32 %v3104_v58, %v3104_v58  ;;  %v3693_v37 = vsel %vm3440_vm1, %v3396_v34, 0.0  ;;  %v9071_v58 = vld [vmem:[#allocation16_spill] sm:$0xff] }
 0x1be   : > { %v3702_v34 = vsel %vm3440_vm1, %v3399_v19, 0.0 }
 0x1bf   : > { %v3966_v20 = vmul.f32 0.5, %v3838_v44  ;;  %v3965_v24 = vmul.f32 0.5, %v3837_v48  ;;  %3691 = vadd.xlane.f32.xlu1 %v3690_v23  ;;  %3688 = vadd.xlane.f32.xlu0 %v3687_v6  ;;  %v8194_v49 = vpop.f32.mrf.mxu0  ;;  %v8196_v45 = vpop.f32.mrf.mxu1  ;;  %v3696_v48 = vsel %vm3440_vm1, %v3397_v39, 0.0  ;;  %v3114_v23 = vadd.f32 %v8088_v56, %v8094_v0  ;;  %v9072_v56 = vld [vmem:[#allocation17_spill] sm:$0xff] }
 0x1c0   : > { %v3488_v51 = vpop.xlane.xlu1 %3487  ;;  %v3485_v35 = vpop.xlane.xlu0 %3484  ;;  %v3401_v39 = vmul.f32 %v3119_v52, %v3119_v52  ;;  %v3699_v52 = vsel %vm3440_vm1, %v3398_v21, 0.0 }
 0x1c1   : > { %4095 = vst.msk [vmem:[%s8076_s9 + $0x68] sm:$0xff] %vm4081_vm2, %v3966_v20  ;;  %4094 = vst.msk [vmem:[%s8076_s9 + $0x60] sm:$0xff] %vm4081_vm2, %v3965_v24  ;;  %v3840_v12 = vsub.f32 %v3488_v51, %v9069_v46  ;;  %v3839_v40 = vsub.f32 %v3485_v35, %v9070_v53  ;;  %v8206_v41 = vpop.f32.mrf.mxu0  ;;  %v8208_v44 = vpop.f32.mrf.mxu1  ;;  %v3400_v53 = vmul.f32 %v3114_v23, %v3114_v23  ;;  %v9074_v23 = vld [vmem:[#allocation19_spill] sm:$0xff] }
 0x1c2   : > { %v3708_v21 = vsel %vm3440_vm1, %v3401_v39, 0.0 }
 0x1c3   : > { %v3968_v6 = vmul.f32 0.5, %v3840_v12  ;;  %v3967_v20 = vmul.f32 0.5, %v3839_v40  ;;  %3697 = vadd.xlane.f32.xlu1 %v3696_v48  ;;  %3694 = vadd.xlane.f32.xlu0 %v3693_v37  ;;  %v8214_v24 = vpop.f32.mrf.mxu0  ;;  %v8216_v38 = vpop.f32.mrf.mxu1  ;;  %v3129_v40 = vadd.f32 %v8096_v31, %v8105_v59  ;;  %v3124_v48 = vadd.f32 %v8107_v36, %v8114_v27  ;;  %v9073_v31 = vld [vmem:[#allocation18_spill] sm:$0xff] }
 0x1c4   : > { %v3494_v15 = vpop.xlane.xlu1 %3493  ;;  %v3491_v51 = vpop.xlane.xlu0 %3490  ;;  %v3139_v27 = vadd.f32 %v8116_v63, %v8127_v7 }
 0x1c5   : > { %4097 = vst.msk [vmem:[%s8076_s9 + $0x78] sm:$0xff] %vm4081_vm2, %v3968_v6  ;;  %4096 = vst.msk [vmem:[%s8076_s9 + $0x70] sm:$0xff] %vm4081_vm2, %v3967_v20  ;;  %v3842_v35 = vsub.f32 %v3494_v15, %v9071_v58  ;;  %v3841_v0 = vsub.f32 %v3491_v51, %v9072_v56  ;;  %v8225_v46 = vpop.f32.mrf.mxu0  ;;  %v8227_v12 = vpop.f32.mrf.mxu1  ;;  %v3403_v56 = vmul.f32 %v3129_v40, %v3129_v40 }
 0x1c6   : > { %v3405_v40 = vmul.f32 %v3139_v27, %v3139_v27 }
 0x1c7   : > { %v3970_v37 = vmul.f32 0.5, %v3842_v35  ;;  %v3969_v6 = vmul.f32 0.5, %v3841_v0  ;;  %3703 = vadd.xlane.f32.xlu1 %v3702_v34  ;;  %3700 = vadd.xlane.f32.xlu0 %v3699_v52  ;;  %v8234_v20 = vpop.f32.mrf.mxu0  ;;  %v8236_v19 = vpop.f32.mrf.mxu1  ;;  %v3402_v0 = vmul.f32 %v3124_v48, %v3124_v48  ;;  %v3134_v34 = vadd.f32 %v8129_v32, %v8134_v11  ;;  %v9075_v48 = vld [vmem:[#allocation20_spill] sm:$0xff]  ;;  %v9076_v32 = vld [vmem:[#allocation21_spill] sm:$0xff] }
 0x1c8   : > { %v3500_v15 = vpop.xlane.xlu1 %3499  ;;  %v3497_v51 = vpop.xlane.xlu0 %3496  ;;  %v3705_v52 = vsel %vm3440_vm1, %v3400_v53, 0.0  ;;  %v3149_v53 = vadd.f32 %v8136_v10, %v8146_v47 }
 0x1c9   : > { %4099 = vst.msk [vmem:[%s8076_s9 + $0x88] sm:$0xff] %vm4081_vm2, %v3970_v37  ;;  %4098 = vst.msk [vmem:[%s8076_s9 + $0x80] sm:$0xff] %vm4081_vm2, %v3969_v6  ;;  %v3844_v59 = vsub.f32 %v3500_v15, %v9073_v31  ;;  %v3843_v36 = vsub.f32 %v3497_v51, %v9074_v23  ;;  %v8247_v58 = vpop.f32.mrf.mxu0  ;;  %v8249_v35 = vpop.f32.mrf.mxu1  ;;  %v3404_v23 = vmul.f32 %v3134_v34, %v3134_v34  ;;  %v3711_v27 = vsel %vm3440_vm1, %v3402_v0, 0.0  ;;  %v9077_v34 = vld [vmem:[#allocation22_spill] sm:$0xff] }
 0x1ca   : > { %v3720_v0 = vsel %vm3440_vm1, %v3405_v40, 0.0 }
 0x1cb   : > { %v3972_v37 = vmul.f32 0.5, %v3844_v59  ;;  %v3971_v6 = vmul.f32 0.5, %v3843_v36  ;;  %3709 = vadd.xlane.f32.xlu1 %v3708_v21  ;;  %3706 = vadd.xlane.f32.xlu0 %v3705_v52  ;;  %v8254_v63 = vpop.f32.mrf.mxu0  ;;  %v8256_v7 = vpop.f32.mrf.mxu1  ;;  %v3714_v36 = vsel %vm3440_vm1, %v3403_v56, 0.0  ;;  %v3144_v21 = vadd.f32 %v8148_v42, %v8154_v54  ;;  %v9078_v42 = vld [vmem:[#allocation23_spill] sm:$0xff] }
 0x1cc   : > { %v3506_v39 = vpop.xlane.xlu1 %3505  ;;  %v3503_v15 = vpop.xlane.xlu0 %3502  ;;  %v3407_v56 = vmul.f32 %v3149_v53, %v3149_v53  ;;  %v3717_v53 = vsel %vm3440_vm1, %v3404_v23, 0.0 }
 0x1cd   : > { %4101 = vst.msk [vmem:[%s8076_s9 + $0x98] sm:$0xff] %vm4081_vm2, %v3972_v37  ;;  %4100 = vst.msk [vmem:[%s8076_s9 + $0x90] sm:$0xff] %vm4081_vm2, %v3971_v6  ;;  %v3846_v51 = vsub.f32 %v3506_v39, %v9075_v48  ;;  %v3845_v11 = vsub.f32 %v3503_v15, %v9076_v32  ;;  %v8266_v31 = vpop.f32.mrf.mxu0  ;;  %v8268_v59 = vpop.f32.mrf.mxu1  ;;  %v3406_v32 = vmul.f32 %v3144_v21, %v3144_v21  ;;  %v9080_v21 = vld [vmem:[#allocation25_spill] sm:$0xff] }
 0x1ce   : > { %v3726_v23 = vsel %vm3440_vm1, %v3407_v56, 0.0 }
 0x1cf   : > { %v3974_v52 = vmul.f32 0.5, %v3846_v51  ;;  %v3973_v37 = vmul.f32 0.5, %v3845_v11  ;;  %3715 = vadd.xlane.f32.xlu1 %v3714_v36  ;;  %3712 = vadd.xlane.f32.xlu0 %v3711_v27  ;;  %v8274_v6 = vpop.f32.mrf.mxu0  ;;  %v8276_v10 = vpop.f32.mrf.mxu1  ;;  %v3159_v11 = vadd.f32 %v8156_v2, %v8165_v30  ;;  %v3154_v36 = vadd.f32 %v8167_v55, %v8174_v62  ;;  %v9079_v2 = vld [vmem:[#allocation24_spill] sm:$0xff] }
 0x1d0   : > { %v3512_v47 = vpop.xlane.xlu1 %3511  ;;  %v3509_v39 = vpop.xlane.xlu0 %3508  ;;  %v3169_v62 = vadd.f32 %v8176_v60, %v8187_v28 }
 0x1d1   : > { %4103 = vst.msk [vmem:[%s8076_s9 + $0xa8] sm:$0xff] %vm4081_vm2, %v3974_v52  ;;  %4102 = vst.msk [vmem:[%s8076_s9 + $0xa0] sm:$0xff] %vm4081_vm2, %v3973_v37  ;;  %v3848_v15 = vsub.f32 %v3512_v47, %v9077_v34  ;;  %v3847_v54 = vsub.f32 %v3509_v39, %v9078_v42  ;;  %v8285_v48 = vpop.f32.mrf.mxu0  ;;  %v8287_v51 = vpop.f32.mrf.mxu1  ;;  %v3409_v42 = vmul.f32 %v3159_v11, %v3159_v11 }
 0x1d2   : > { %v3411_v11 = vmul.f32 %v3169_v62, %v3169_v62 }
 0x1d3   : > { %v3976_v27 = vmul.f32 0.5, %v3848_v15  ;;  %v3975_v52 = vmul.f32 0.5, %v3847_v54  ;;  %3721 = vadd.xlane.f32.xlu1 %v3720_v0  ;;  %3718 = vadd.xlane.f32.xlu0 %v3717_v53  ;;  %v8294_v37 = vpop.f32.mrf.mxu0  ;;  %v8296_v40 = vpop.f32.mrf.mxu1  ;;  %v3408_v54 = vmul.f32 %v3154_v36, %v3154_v36  ;;  %v3164_v0 = vadd.f32 %v8189_v26, %v8194_v49  ;;  %v9081_v36 = vld [vmem:[#allocation26_spill] sm:$0xff]  ;;  %v9082_v26 = vld [vmem:[#allocation27_spill] sm:$0xff] }
 0x1d4   : > { %v3518_v47 = vpop.xlane.xlu1 %3517  ;;  %v3515_v39 = vpop.xlane.xlu0 %3514  ;;  %v3723_v53 = vsel %vm3440_vm1, %v3406_v32, 0.0  ;;  %v3179_v32 = vadd.f32 %v8196_v45, %v8206_v41 }
 0x1d5   : > { %4105 = vst.msk [vmem:[%s8076_s9 + $0xb8] sm:$0xff] %vm4081_vm2, %v3976_v27  ;;  %4104 = vst.msk [vmem:[%s8076_s9 + $0xb0] sm:$0xff] %vm4081_vm2, %v3975_v52  ;;  %v3850_v30 = vsub.f32 %v3518_v47, %v9079_v2  ;;  %v3849_v55 = vsub.f32 %v3515_v39, %v9080_v21  ;;  %v8307_v34 = vpop.f32.mrf.mxu0  ;;  %v8309_v15 = vpop.f32.mrf.mxu1  ;;  %v3410_v21 = vmul.f32 %v3164_v0, %v3164_v0  ;;  %v3729_v62 = vsel %vm3440_vm1, %v3408_v54, 0.0  ;;  %v9083_v0 = vld [vmem:[#allocation28_spill] sm:$0xff] }
 0x1d6   : > { %v3738_v54 = vsel %vm3440_vm1, %v3411_v11, 0.0 }
 0x1d7   : > { %v3978_v27 = vmul.f32 0.5, %v3850_v30  ;;  %v3977_v52 = vmul.f32 0.5, %v3849_v55  ;;  %3727 = vadd.xlane.f32.xlu1 %v3726_v23  ;;  %3724 = vadd.xlane.f32.xlu0 %v3723_v53  ;;  %v8314_v60 = vpop.f32.mrf.mxu0  ;;  %v8316_v28 = vpop.f32.mrf.mxu1  ;;  %v3732_v55 = vsel %vm3440_vm1, %v3409_v42, 0.0  ;;  %v3174_v23 = vadd.f32 %v8208_v44, %v8214_v24  ;;  %v9084_v44 = vld [vmem:[#allocation29_spill] sm:$0xff] }
 0x1d8   : > { %v3524_v56 = vpop.xlane.xlu1 %3523  ;;  %v3521_v47 = vpop.xlane.xlu0 %3520  ;;  %v3413_v42 = vmul.f32 %v3179_v32, %v3179_v32  ;;  %v3735_v32 = vsel %vm3440_vm1, %v3410_v21, 0.0 }
 0x1d9   : > { %4107 = vst.msk [vmem:[%s8076_s9 + $0xc8] sm:$0xff] %vm4081_vm2, %v3978_v27  ;;  %4106 = vst.msk [vmem:[%s8076_s9 + $0xc0] sm:$0xff] %vm4081_vm2, %v3977_v52  ;;  %v3852_v39 = vsub.f32 %v3524_v56, %v9081_v36  ;;  %v3851_v49 = vsub.f32 %v3521_v47, %v9082_v26  ;;  %v8326_v2 = vpop.f32.mrf.mxu0  ;;  %v8328_v30 = vpop.f32.mrf.mxu1  ;;  %v3412_v26 = vmul.f32 %v3174_v23, %v3174_v23  ;;  %v9086_v23 = vld [vmem:[#allocation31_spill] sm:$0xff] }
 0x1da   : > { %v3744_v21 = vsel %vm3440_vm1, %v3413_v42, 0.0 }
 0x1db   : > { %v3980_v53 = vmul.f32 0.5, %v3852_v39  ;;  %v3979_v27 = vmul.f32 0.5, %v3851_v49  ;;  %3733 = vadd.xlane.f32.xlu1 %v3732_v55  ;;  %3730 = vadd.xlane.f32.xlu0 %v3729_v62  ;;  %v8334_v52 = vpop.f32.mrf.mxu0  ;;  %v8336_v45 = vpop.f32.mrf.mxu1  ;;  %v3189_v49 = vadd.f32 %v8216_v38, %v8225_v46  ;;  %v3184_v55 = vadd.f32 %v8227_v12, %v8234_v20  ;;  %v9085_v38 = vld [vmem:[#allocation30_spill] sm:$0xff] }
 0x1dc   : > { %v3530_v41 = vpop.xlane.xlu1 %3529  ;;  %v3527_v56 = vpop.xlane.xlu0 %3526  ;;  %v3199_v20 = vadd.f32 %v8236_v19, %v8247_v58 }
 0x1dd   : > { %4109 = vst.msk [vmem:[%s8076_s9 + $0xd8] sm:$0xff] %vm4081_vm2, %v3980_v53  ;;  %4108 = vst.msk [vmem:[%s8076_s9 + $0xd0] sm:$0xff] %vm4081_vm2, %v3979_v27  ;;  %v3854_v47 = vsub.f32 %v3530_v41, %v9083_v0  ;;  %v3853_v24 = vsub.f32 %v3527_v56, %v9084_v44  ;;  %v8345_v36 = vpop.f32.mrf.mxu0  ;;  %v8347_v39 = vpop.f32.mrf.mxu1  ;;  %v3414_v44 = vmul.f32 %v3184_v55, %v3184_v55 }
 0x1de   : > { %v3417_v42 = vmul.f32 %v3199_v20, %v3199_v20  ;;  %v3209_v55 = vadd.f32 %v8256_v7, %v8266_v31  ;;  %v9089_v31 = vld [vmem:[#allocation34_spill] sm:$0xff] }
 0x1df   : > { %v3982_v62 = vmul.f32 0.5, %v3854_v47  ;;  %v3981_v53 = vmul.f32 0.5, %v3853_v24  ;;  %3739 = vadd.xlane.f32.xlu1 %v3738_v54  ;;  %3736 = vadd.xlane.f32.xlu0 %v3735_v32  ;;  %v8354_v27 = vpop.f32.mrf.mxu0  ;;  %v8356_v11 = vpop.f32.mrf.mxu1  ;;  %v3415_v47 = vmul.f32 %v3189_v49, %v3189_v49  ;;  %v3194_v24 = vadd.f32 %v8249_v35, %v8254_v63  ;;  %v9087_v49 = vld [vmem:[#allocation32_spill] sm:$0xff]  ;;  %v9088_v63 = vld [vmem:[#allocation33_spill] sm:$0xff] }
 0x1e0   : > { %v3536_v41 = vpop.xlane.xlu1 %3535  ;;  %v3533_v56 = vpop.xlane.xlu0 %3532  ;;  %v3741_v54 = vsel %vm3440_vm1, %v3412_v26, 0.0  ;;  %v3419_v7 = vmul.f32 %v3209_v55, %v3209_v55 }
 0x1e1   : > { %4111 = vst.msk [vmem:[%s8076_s9 + $0xe8] sm:$0xff] %vm4081_vm2, %v3982_v62  ;;  %4110 = vst.msk [vmem:[%s8076_s9 + $0xe0] sm:$0xff] %vm4081_vm2, %v3981_v53  ;;  %v3856_v46 = vsub.f32 %v3536_v41, %v9085_v38  ;;  %v3855_v12 = vsub.f32 %v3533_v56, %v9086_v23  ;;  %v8367_v0 = vpop.f32.mrf.mxu0  ;;  %v8372_v53 = vpop.f32.mrf.mxu1  ;;  %v3416_v56 = vmul.f32 %v3194_v24, %v3194_v24  ;;  %v3750_v38 = vsel %vm3440_vm1, %v3415_v47, 0.0 }
 0x1e2   : > { %v3747_v23 = vsel %vm3440_vm1, %v3414_v44, 0.0  ;;  %v3756_v44 = vsel %vm3440_vm1, %v3417_v42, 0.0  ;;  %v9092_v42 = vld [vmem:[#allocation37_spill] sm:$0xff] }
 0x1e3   : > { %v3984_v32 = vmul.f32 0.5, %v3856_v46  ;;  %v3983_v62 = vmul.f32 0.5, %v3855_v12  ;;  %3745 = vadd.xlane.f32.xlu1 %v3744_v21  ;;  %3742 = vadd.xlane.f32.xlu0 %v3741_v54  ;;  %v8374_v41 = vpop.f32.mrf.mxu0  ;;  %v3204_v46 = vadd.f32 %v8268_v59, %v8274_v6  ;;  %v8390_v54 = vpop.f32.mrf.mxu1  ;;  %v9090_v6 = vld [vmem:[#allocation35_spill] sm:$0xff] }
 0x1e4   : > { %v3542_v19 = vpop.xlane.xlu1 %3541  ;;  %v3539_v58 = vpop.xlane.xlu0 %3538 }
 0x1e5   : > { %4113 = vst.msk [vmem:[%s8076_s9 + $0xf8] sm:$0xff] %vm4081_vm2, %v3984_v32  ;;  %4112 = vst.msk [vmem:[%s8076_s9 + $0xf0] sm:$0xff] %vm4081_vm2, %v3983_v62  ;;  %v3858_v35 = vsub.f32 %v3542_v19, %v9087_v49  ;;  %v3857_v26 = vsub.f32 %v3539_v58, %v9088_v63  ;;  %v8388_v20 = vpop.f32.mrf.mxu0  ;;  %v3418_v24 = vmul.f32 %v3204_v46, %v3204_v46  ;;  %v3753_v49 = vsel %vm3440_vm1, %v3416_v56, 0.0 }
 0x1e6   : > { %v3219_v19 = vadd.f32 %v8276_v10, %v8285_v48  ;;  %v3214_v58 = vadd.f32 %v8287_v51, %v8294_v37  ;;  %v9091_v10 = vld [vmem:[#allocation36_spill] sm:$0xff]  ;;  %v3229_v37 = vadd.f32 %v8296_v40, %v8307_v34  ;;  %v3762_v56 = vsel %vm3440_vm1, %v3419_v7, 0.0  ;;  %v9093_v34 = vld [vmem:[#allocation38_spill] sm:$0xff] }
 0x1e7   : > { %v3986_v12 = vmul.f32 0.5, %v3858_v35  ;;  %v3985_v21 = vmul.f32 0.5, %v3857_v26  ;;  %3751 = vadd.xlane.f32.xlu1 %v3750_v38  ;;  %3748 = vadd.xlane.f32.xlu0 %v3747_v23  ;;  %v8404_v26 = vpop.f32.mrf.mxu1  ;;  %v8406_v55 = vpop.f32.mrf.mxu0 }
 0x1e8   : > { %v3548_v32 = vpop.xlane.xlu1 %3547  ;;  %v3545_v62 = vpop.xlane.xlu0 %3544  ;;  %v3421_v46 = vmul.f32 %v3219_v19, %v3219_v19  ;;  %v3423_v40 = vmul.f32 %v3229_v37, %v3229_v37 }
 0x1e9   : > { %4115 = vst.msk [vmem:[%s8076_s9 + $0x108] sm:$0xff] %vm4081_vm2, %v3986_v12  ;;  %4114 = vst.msk [vmem:[%s8076_s9 + $0x100] sm:$0xff] %vm4081_vm2, %v3985_v21  ;;  %v3860_v59 = vsub.f32 %v3548_v32, %v9089_v31  ;;  %v3859_v47 = vsub.f32 %v3545_v62, %v9090_v6  ;;  %v3420_v12 = vmul.f32 %v3214_v58, %v3214_v58  ;;  %v3759_v32 = vsel %vm3440_vm1, %v3418_v24, 0.0  ;;  %v8422_v6 = vpop.f32.mrf.mxu1 }
 0x1ea   : > { %v3224_v21 = vadd.f32 %v8309_v15, %v8314_v60  ;;  %v9094_v60 = vld [vmem:[#allocation39_spill] sm:$0xff]  ;;  %v3239_v24 = vadd.f32 %v8316_v28, %v8326_v2  ;;  %v3768_v58 = vsel %vm3440_vm1, %v3421_v46, 0.0  ;;  %v9095_v2 = vld [vmem:[#allocation40_spill] sm:$0xff]  ;;  %v3774_v37 = vsel %vm3440_vm1, %v3423_v40, 0.0  ;;  %v9097_v40 = vld [vmem:[#allocation42_spill] sm:$0xff] }
 0x1eb   : > { %v3988_v35 = vmul.f32 0.5, %v3860_v59  ;;  %v3987_v63 = vmul.f32 0.5, %v3859_v47  ;;  %3757 = vadd.xlane.f32.xlu1 %v3756_v44  ;;  %3754 = vadd.xlane.f32.xlu0 %v3753_v49  ;;  %v8420_v59 = vpop.f32.mrf.mxu0  ;;  %v3234_v49 = vadd.f32 %v8328_v30, %v8334_v52  ;;  %v9096_v52 = vld [vmem:[#allocation41_spill] sm:$0xff]  ;;  %v3249_v46 = vadd.f32 %v8336_v45, %v8345_v36  ;;  %v9098_v45 = vld [vmem:[#allocation43_spill] sm:$0xff] }
 0x1ec   : > { %v3554_v38 = vpop.xlane.xlu1 %3553  ;;  %v3551_v23 = vpop.xlane.xlu0 %3550  ;;  %v3422_v19 = vmul.f32 %v3224_v21, %v3224_v21  ;;  %v3425_v28 = vmul.f32 %v3239_v24, %v3239_v24  ;;  %v3254_v24 = vadd.f32 %v8372_v53, %v8374_v41  ;;  %v3269_v41 = vadd.f32 %v8390_v54, %v8388_v20  ;;  %v9101_v54 = vld [vmem:[#allocation46_spill] sm:$0xff] }
 0x1ed   : > { %4117 = vst.msk [vmem:[%s8076_s9 + $0x118] sm:$0xff] %vm4081_vm2, %v3988_v35  ;;  %4116 = vst.msk [vmem:[%s8076_s9 + $0x110] sm:$0xff] %vm4081_vm2, %v3987_v63  ;;  %v3862_v48 = vsub.f32 %v3554_v38, %v9091_v10  ;;  %v3861_v51 = vsub.f32 %v3551_v23, %v9092_v42  ;;  %v3765_v35 = vsel %vm3440_vm1, %v3420_v12, 0.0  ;;  %v8436_v23 = vpop.f32.mrf.mxu1  ;;  %v8438_v10 = vpop.f32.mrf.mxu0  ;;  %v3244_v12 = vadd.f32 %v8347_v39, %v8354_v27 }
 0x1ee   : > { %v3771_v21 = vsel %vm3440_vm1, %v3422_v19, 0.0  ;;  %v3259_v39 = vadd.f32 %v8356_v11, %v8367_v0  ;;  %v3780_v27 = vsel %vm3440_vm1, %v3425_v28, 0.0  ;;  %v9099_v0 = vld [vmem:[#allocation44_spill] sm:$0xff]  ;;  %v9100_v28 = vld [vmem:[#allocation45_spill] sm:$0xff]  ;;  %v3431_v20 = vmul.f32 %v3269_v41, %v3269_v41 }
 0x1ef   : > { %v3990_v62 = vmul.f32 0.5, %v3862_v48  ;;  %v3989_v31 = vmul.f32 0.5, %v3861_v51  ;;  %3763 = vadd.xlane.f32.xlu1 %v3762_v56  ;;  %3760 = vadd.xlane.f32.xlu0 %v3759_v32  ;;  %v3424_v56 = vmul.f32 %v3234_v49, %v3234_v49 }
 0x1f0   : > { %v3560_v47 = vpop.xlane.xlu1 %3559  ;;  %v3557_v44 = vpop.xlane.xlu0 %3556  ;;  %v3429_v11 = vmul.f32 %v3259_v39, %v3259_v39 }
 0x1f1   : > { %4119 = vst.msk [vmem:[%s8076_s9 + $0x128] sm:$0xff] %vm4081_vm2, %v3990_v62  ;;  %4118 = vst.msk [vmem:[%s8076_s9 + $0x120] sm:$0xff] %vm4081_vm2, %v3989_v31  ;;  %v3864_v15 = vsub.f32 %v3560_v47, %v9093_v34  ;;  %v3863_v7 = vsub.f32 %v3557_v44, %v9094_v60  ;;  %v5434_v31 = vpop.f32.mrf.mxu0  ;;  %v5642_v47 = vpop.f32.mrf.mxu1  ;;  %v3427_v60 = vmul.f32 %v3249_v46, %v3249_v46  ;;  %v3777_v19 = vsel %vm3440_vm1, %v3424_v56, 0.0 }
 0x1f3   : > { %v3992_v63 = vmul.f32 0.5, %v3864_v15  ;;  %v3991_v38 = vmul.f32 0.5, %v3863_v7  ;;  %3769 = vadd.xlane.f32.xlu1 %v3768_v58  ;;  %3766 = vadd.xlane.f32.xlu0 %v3765_v35  ;;  %v3426_v7 = vmul.f32 %v3244_v12, %v3244_v12  ;;  %v3283_v35 = vpop.f32.mrf.mxu1 }
 0x1f4   : > { %v3566_v48 = vpop.xlane.xlu1 %3565  ;;  %v3563_v42 = vpop.xlane.xlu0 %3562 }
 0x1f5   : > { %4121 = vst.msk [vmem:[%s8076_s9 + $0x138] sm:$0xff] %vm4081_vm2, %v3992_v63  ;;  %4120 = vst.msk [vmem:[%s8076_s9 + $0x130] sm:$0xff] %vm4081_vm2, %v3991_v38  ;;  %v3866_v30 = vsub.f32 %v3566_v48, %v9095_v2  ;;  %v3865_v51 = vsub.f32 %v3563_v42, %v9096_v52  ;;  %v2194_v63 = vpop.f32.mrf.mxu0  ;;  %v3428_v2 = vmul.f32 %v3254_v24, %v3254_v24  ;;  %v5645_v12 = vpop.f32.mrf.mxu1 }
 0x1f6   : > { %v3264_v52 = vadd.f32 %v8404_v26, %v8406_v55  ;;  %v3792_v55 = vsel %vm3440_vm1, %v3429_v11, 0.0 }
 0x1f7   : > { %v3994_v32 = vmul.f32 0.5, %v3866_v30  ;;  %v3993_v62 = vmul.f32 0.5, %v3865_v51  ;;  %3775 = vadd.xlane.f32.xlu1 %v3774_v37  ;;  %3772 = vadd.xlane.f32.xlu0 %v3771_v21  ;;  %v3786_v30 = vsel %vm3440_vm1, %v3427_v60, 0.0  ;;  %v3783_v51 = vsel %vm3440_vm1, %v3426_v7, 0.0  ;;  %v5437_v46 = vpop.f32.mrf.mxu0 }
 0x1f8   : > { %v3572_v44 = vpop.xlane.xlu1 %3571  ;;  %v3569_v34 = vpop.xlane.xlu0 %3568 }
 0x1f9   : > { %4123 = vst.msk [vmem:[%s8076_s9 + $0x148] sm:$0xff] %vm4081_vm2, %v3994_v32  ;;  %4122 = vst.msk [vmem:[%s8076_s9 + $0x140] sm:$0xff] %vm4081_vm2, %v3993_v62  ;;  %v3868_v15 = vsub.f32 %v3572_v44, %v9097_v40  ;;  %v3867_v36 = vsub.f32 %v3569_v34, %v9098_v45  ;;  %v9102_v44 = vld [vmem:[#allocation47_spill] sm:$0xff]  ;;  %v3430_v34 = vmul.f32 %v3264_v52, %v3264_v52  ;;  %v3789_v45 = vsel %vm3440_vm1, %v3428_v2, 0.0  ;;  %v2204_v60 = vpop.f32.mrf.mxu0 }
 0x1fa   : > { %v3279_v40 = vadd.f32 %v8422_v6, %v8420_v59  ;;  %v9104_v59 = vld [vmem:[#allocation49_spill] sm:$0xff]  ;;  %v9106_v52 = vld [vmem:[#allocation51_spill] sm:$0xff] }
 0x1fb   : > { %v3996_v58 = vmul.f32 0.5, %v3868_v15  ;;  %v3995_v49 = vmul.f32 0.5, %v3867_v36  ;;  %3781 = vadd.xlane.f32.xlu1 %v3780_v27  ;;  %3778 = vadd.xlane.f32.xlu0 %v3777_v19  ;;  %v3274_v15 = vadd.f32 %v8436_v23, %v8438_v10  ;;  %v3293_v27 = vpop.f32.mrf.mxu1  ;;  %v9103_v19 = vld [vmem:[#allocation48_spill] sm:$0xff]  ;;  %v3289_v23 = vadd.f32 %v5642_v47, %v5434_v31  ;;  %v9105_v47 = vld [vmem:[#allocation50_spill] sm:$0xff] }
 0x1fc   : > { %v3578_v38 = vpop.xlane.xlu1 %3577  ;;  %v3575_v48 = vpop.xlane.xlu0 %3574  ;;  %v3798_v10 = vsel %vm3440_vm1, %v3431_v20, 0.0  ;;  %v3795_v11 = vsel %vm3440_vm1, %v3430_v34, 0.0  ;;  %v9108_v34 = vld [vmem:[#allocation53_spill] sm:$0xff] }
 0x1fd   : > { %4125 = vst.msk [vmem:[%s8076_s9 + $0x158] sm:$0xff] %vm4081_vm2, %v3996_v58  ;;  %4124 = vst.msk [vmem:[%s8076_s9 + $0x150] sm:$0xff] %vm4081_vm2, %v3995_v49  ;;  %v3870_v42 = vsub.f32 %v3578_v38, %v9099_v0  ;;  %v3869_v53 = vsub.f32 %v3575_v48, %v9100_v28  ;;  %v3433_v49 = vmul.f32 %v3279_v40, %v3279_v40  ;;  %v5440_v28 = vpop.f32.mrf.mxu0 }
 0x1fe   : > { %v3432_v38 = vmul.f32 %v3274_v15, %v3274_v15  ;;  %v3284_v48 = vadd.f32 %v3283_v35, %v2194_v63  ;;  %v3435_v31 = vmul.f32 %v3289_v23, %v3289_v23  ;;  %v3299_v63 = vadd.f32 %v5645_v12, %v5437_v46  ;;  %v9107_v12 = vld [vmem:[#allocation52_spill] sm:$0xff] }
 0x1ff   : > { %v3998_v37 = vmul.f32 0.5, %v3870_v42  ;;  %v3997_v56 = vmul.f32 0.5, %v3869_v53  ;;  %3787 = vadd.xlane.f32.xlu1 %v3786_v30  ;;  %3784 = vadd.xlane.f32.xlu0 %v3783_v51  ;;  %v5648_v53 = vpop.f32.mrf.mxu1 }
 0x200   : > { %v3584_v21 = vpop.xlane.xlu1 %3583  ;;  %v3581_v32 = vpop.xlane.xlu0 %3580  ;;  %v3434_v51 = vmul.f32 %v3284_v48, %v3284_v48  ;;  %v3437_v46 = vmul.f32 %v3299_v63, %v3299_v63  ;;  %v3810_v15 = vsel %vm3440_vm1, %v3435_v31, 0.0 }
 0x201   : > { %4127 = vst.msk [vmem:[%s8076_s9 + $0x168] sm:$0xff] %vm4081_vm2, %v3998_v37  ;;  %4126 = vst.msk [vmem:[%s8076_s9 + $0x160] sm:$0xff] %vm4081_vm2, %v3997_v56  ;;  %v3872_v62 = vsub.f32 %v3584_v21, %v9101_v54  ;;  %v3871_v26 = vsub.f32 %v3581_v32, %v9102_v44  ;;  %v3804_v37 = vsel %vm3440_vm1, %v3433_v49, 0.0  ;;  %v3294_v56 = vadd.f32 %v3293_v27, %v2204_v60  ;;  %v3303_v54 = vpop.f32.mrf.mxu1 }
 0x202   : > { %v3801_v21 = vsel %vm3440_vm1, %v3432_v38, 0.0  ;;  %v3807_v27 = vsel %vm3440_vm1, %v3434_v51, 0.0  ;;  %v3816_v38 = vsel %vm3440_vm1, %v3437_v46, 0.0 }
 0x203   : > { %v4000_v36 = vmul.f32 0.5, %v3872_v62  ;;  %v3999_v39 = vmul.f32 0.5, %v3871_v26  ;;  %3793 = vadd.xlane.f32.xlu1 %v3792_v55  ;;  %3790 = vadd.xlane.f32.xlu0 %v3789_v45  ;;  %v2214_v62 = vpop.f32.mrf.mxu0  ;;  %v3436_v45 = vmul.f32 %v3294_v56, %v3294_v56 }
 0x204   : > { %v3590_v7 = vpop.xlane.xlu1 %3589  ;;  %v3587_v24 = vpop.xlane.xlu0 %3586 }
 0x205   : > { %4129 = vst.msk [vmem:[%s8076_s9 + $0x178] sm:$0xff] %vm4081_vm2, %v4000_v36  ;;  %4128 = vst.msk [vmem:[%s8076_s9 + $0x170] sm:$0xff] %vm4081_vm2, %v3999_v39  ;;  %v3874_v58 = vsub.f32 %v3590_v7, %v9103_v19  ;;  %v3873_v6 = vsub.f32 %v3587_v24, %v9104_v59  ;;  %v3309_v36 = vadd.f32 %v5648_v53, %v5440_v28  ;;  %v3813_v48 = vsel %vm3440_vm1, %v3436_v45, 0.0  ;;  %v9111_v53 = vld [vmem:[#allocation56_spill] sm:$0xff] }
 0x206   : > { %v3304_v39 = vadd.f32 %v3303_v54, %v2214_v62 }
 0x207   : > { %v4002_v0 = vmul.f32 0.5, %v3874_v58  ;;  %v4001_v42 = vmul.f32 0.5, %v3873_v6  ;;  %3799 = vadd.xlane.f32.xlu1 %v3798_v10  ;;  %3796 = vadd.xlane.f32.xlu0 %v3795_v11  ;;  %v9109_v58 = vld [vmem:[#allocation54_spill] sm:$0xff]  ;;  %v9110_v6 = vld [vmem:[#allocation55_spill] sm:$0xff]  ;;  %v3439_v10 = vmul.f32 %v3309_v36, %v3309_v36 }
 0x208   : > { %v3596_v41 = vpop.xlane.xlu1 %3595  ;;  %v3593_v2 = vpop.xlane.xlu0 %3592  ;;  %v3438_v49 = vmul.f32 %v3304_v39, %v3304_v39 }
 0x209   : > { %4131 = vst.msk [vmem:[%s8076_s9 + $0x188] sm:$0xff] %vm4081_vm2, %v4002_v0  ;;  %4130 = vst.msk [vmem:[%s8076_s9 + $0x180] sm:$0xff] %vm4081_vm2, %v4001_v42  ;;  %v3876_v30 = vsub.f32 %v3596_v41, %v9105_v47  ;;  %v3875_v35 = vsub.f32 %v3593_v2, %v9106_v52  ;;  %v9112_v2 = vld [vmem:[#allocation57_spill] sm:$0xff]  ;;  %v3822_v47 = vsel %vm3440_vm1, %v3439_v10, 0.0 }
 0x20b   : > { %v4004_v32 = vmul.f32 0.5, %v3876_v30  ;;  %v4003_v20 = vmul.f32 0.5, %v3875_v35  ;;  %3805 = vadd.xlane.f32.xlu1 %v3804_v37  ;;  %3802 = vadd.xlane.f32.xlu0 %v3801_v21  ;;  %v3819_v30 = vsel %vm3440_vm1, %v3438_v49, 0.0 }
 0x20c   : > { %v3602_v44 = vpop.xlane.xlu1 %3601  ;;  %v3599_v26 = vpop.xlane.xlu0 %3598 }
 0x20d   : > { %4133 = vst.msk [vmem:[%s8076_s9 + $0x198] sm:$0xff] %vm4081_vm2, %v4004_v32  ;;  %4132 = vst.msk [vmem:[%s8076_s9 + $0x190] sm:$0xff] %vm4081_vm2, %v4003_v20  ;;  %v3878_v55 = vsub.f32 %v3602_v44, %v9107_v12  ;;  %v3877_v40 = vsub.f32 %v3599_v26, %v9108_v34 }
 0x20f   : > { %v4006_v60 = vmul.f32 0.5, %v3878_v55  ;;  %v4005_v7 = vmul.f32 0.5, %v3877_v40  ;;  %3811 = vadd.xlane.f32.xlu1 %v3810_v15  ;;  %3808 = vadd.xlane.f32.xlu0 %v3807_v27 }
 0x210   : > { %v3608_v24 = vpop.xlane.xlu1 %3607  ;;  %v3605_v19 = vpop.xlane.xlu0 %3604 }
 0x211   : > { %4135 = vst.msk [vmem:[%s8076_s9 + $0x1a8] sm:$0xff] %vm4081_vm2, %v4006_v60  ;;  %4134 = vst.msk [vmem:[%s8076_s9 + $0x1a0] sm:$0xff] %vm4081_vm2, %v4005_v7  ;;  %v3880_v59 = vsub.f32 %v3608_v24, %v9109_v58  ;;  %v3879_v23 = vsub.f32 %v3605_v19, %v9110_v6 }
 0x213   : > { %v4008_v11 = vmul.f32 0.5, %v3880_v59  ;;  %v4007_v0 = vmul.f32 0.5, %v3879_v23  ;;  %3817 = vadd.xlane.f32.xlu1 %v3816_v38  ;;  %3814 = vadd.xlane.f32.xlu0 %v3813_v48 }
 0x214   : > { %v3614_v42 = vpop.xlane.xlu1 %3613  ;;  %v3611_v28 = vpop.xlane.xlu0 %3610 }
 0x215   : > { %4137 = vst.msk [vmem:[%s8076_s9 + $0x1b8] sm:$0xff] %vm4081_vm2, %v4008_v11  ;;  %4136 = vst.msk [vmem:[%s8076_s9 + $0x1b0] sm:$0xff] %vm4081_vm2, %v4007_v0  ;;  %v3882_v41 = vsub.f32 %v3614_v42, %v9111_v53  ;;  %v3881_v31 = vsub.f32 %v3611_v28, %v9112_v2 }
 0x217   : > { %v4010_v52 = vmul.f32 0.5, %v3882_v41  ;;  %v4009_v35 = vmul.f32 0.5, %v3881_v31  ;;  %3823 = vadd.xlane.f32.xlu1 %v3822_v47  ;;  %3820 = vadd.xlane.f32.xlu0 %v3819_v30  ;;  %v9113_v47 = vld [vmem:[#allocation58_spill] sm:$0xff] }
 0x218   : > { %v3620_v63 = vpop.xlane.xlu1 %3619  ;;  %v3617_v51 = vpop.xlane.xlu0 %3616 }
 0x219   : > { %4139 = vst.msk [vmem:[%s8076_s9 + $0x1c8] sm:$0xff] %vm4081_vm2, %v4010_v52  ;;  %4138 = vst.msk [vmem:[%s8076_s9 + $0x1c0] sm:$0xff] %vm4081_vm2, %v4009_v35  ;;  %v3884_v37 = vsub.f32 %v3620_v63, %v7365_v13  ;;  %v3883_v56 = vsub.f32 %v3617_v51, %v7367_v3 }
 0x21b   : > { %v4012_v21 = vmul.f32 0.5, %v3884_v37  ;;  %v4011_v32 = vmul.f32 0.5, %v3883_v56  ;;  %v9115_v37 = vld [vmem:[#allocation60_spill] sm:$0xff] }
 0x21c   : > { %v3626_v20 = vpop.xlane.xlu1 %3625  ;;  %v3623_v54 = vpop.xlane.xlu0 %3622 }
 0x21d   : > { %4141 = vst.msk [vmem:[%s8076_s9 + $0x1d8] sm:$0xff] %vm4081_vm2, %v4012_v21  ;;  %4140 = vst.msk [vmem:[%s8076_s9 + $0x1d0] sm:$0xff] %vm4081_vm2, %v4011_v32  ;;  %v3886_v62 = vsub.f32 %v3626_v20, %v7395_v16  ;;  %v3885_v44 = vsub.f32 %v3623_v54, %v7397_v17  ;;  %v9116_v54 = vld [vmem:[#allocation61_spill] sm:$0xff] }
 0x21f   : > { %v4014_v26 = vmul.f32 0.5, %v3886_v62  ;;  %v4013_v46 = vmul.f32 0.5, %v3885_v44  ;;  %v9117_v44 = vld [vmem:[#allocation62_spill] sm:$0xff] }
 0x220   : > { %v3632_v12 = vpop.xlane.xlu1 %3631  ;;  %v3629_v13 = vpop.xlane.xlu0 %3628 }
 0x221   : > { %4143 = vst.msk [vmem:[%s8076_s9 + $0x1e8] sm:$0xff] %vm4081_vm2, %v4014_v26  ;;  %4142 = vst.msk [vmem:[%s8076_s9 + $0x1e0] sm:$0xff] %vm4081_vm2, %v4013_v46  ;;  %v3888_v3 = vsub.f32 %v3632_v12, %v7425_v14  ;;  %v3887_v55 = vsub.f32 %v3629_v13, %v7427_v33 }
 0x223   : > { %v4016_v34 = vmul.f32 0.5, %v3888_v3  ;;  %v4015_v40 = vmul.f32 0.5, %v3887_v55  ;;  %v9118_v55 = vld [vmem:[#allocation63_spill] sm:$0xff] }
 0x224   : > { %v3638_v15 = vpop.xlane.xlu1 %3637  ;;  %v3635_v16 = vpop.xlane.xlu0 %3634 }
 0x225   : > { %4145 = vst.msk [vmem:[%s8076_s9 + $0x1f8] sm:$0xff] %vm4081_vm2, %v4016_v34  ;;  %4144 = vst.msk [vmem:[%s8076_s9 + $0x1f0] sm:$0xff] %vm4081_vm2, %v4015_v40  ;;  %v3890_v17 = vsub.f32 %v3638_v15, %v7455_v50  ;;  %v3889_v45 = vsub.f32 %v3635_v16, %v7457_v18  ;;  %v9119_v40 = vld [vmem:[#allocation64_spill] sm:$0xff] }
 0x227   : > { %v4018_v36 = vmul.f32 0.5, %v3890_v17  ;;  %v4017_v39 = vmul.f32 0.5, %v3889_v45 }
 0x228   : > { %v3644_v27 = vpop.xlane.xlu1 %3643  ;;  %v3641_v14 = vpop.xlane.xlu0 %3640 }
 0x229   : > { %4147 = vst.msk [vmem:[%s8076_s9 + $0x208] sm:$0xff] %vm4081_vm2, %v4018_v36  ;;  %4146 = vst.msk [vmem:[%s8076_s9 + $0x200] sm:$0xff] %vm4081_vm2, %v4017_v39  ;;  %v3892_v33 = vsub.f32 %v3644_v27, %v7481_v22  ;;  %v3891_v60 = vsub.f32 %v3641_v14, %v7483_v1  ;;  %v9120_v39 = vld [vmem:[#allocation65_spill] sm:$0xff]  ;;  %v9121_v14 = vld [vmem:[#allocation66_spill] sm:$0xff] }
 0x22b   : > { %v4020_v7 = vmul.f32 0.5, %v3892_v33  ;;  %v4019_v24 = vmul.f32 0.5, %v3891_v60 }
 0x22c   : > { %v3650_v19 = vpop.xlane.xlu1 %3649  ;;  %v3647_v50 = vpop.xlane.xlu0 %3646 }
 0x22d   : > { %4149 = vst.msk [vmem:[%s8076_s9 + $0x218] sm:$0xff] %vm4081_vm2, %v4020_v7  ;;  %4148 = vst.msk [vmem:[%s8076_s9 + $0x210] sm:$0xff] %vm4081_vm2, %v4019_v24  ;;  %v3894_v18 = vsub.f32 %v3650_v19, %v7507_v4  ;;  %v3893_v58 = vsub.f32 %v3647_v50, %v7509_v9  ;;  %v9122_v50 = vld [vmem:[#allocation67_spill] sm:$0xff] }
 0x22f   : > { %v4022_v59 = vmul.f32 0.5, %v3894_v18  ;;  %v4021_v6 = vmul.f32 0.5, %v3893_v58  ;;  %v9123_v58 = vld [vmem:[#allocation68_spill] sm:$0xff] }
 0x230   : > { %v3656_v23 = vpop.xlane.xlu1 %3655  ;;  %v3653_v22 = vpop.xlane.xlu0 %3652 }
 0x231   : > { %4151 = vst.msk [vmem:[%s8076_s9 + $0x228] sm:$0xff] %vm4081_vm2, %v4022_v59  ;;  %4150 = vst.msk [vmem:[%s8076_s9 + $0x220] sm:$0xff] %vm4081_vm2, %v4021_v6  ;;  %v3896_v1 = vsub.f32 %v3656_v23, %v7531_v57  ;;  %v3895_v10 = vsub.f32 %v3653_v22, %v7533_v61 }
 0x233   : > { %v4024_v49 = vmul.f32 0.5, %v3896_v1  ;;  %v4023_v38 = vmul.f32 0.5, %v3895_v10  ;;  %v9124_v10 = vld [vmem:[#allocation69_spill] sm:$0xff] }
 0x234   : > { %v3662_v48 = vpop.xlane.xlu1 %3661  ;;  %v3659_v4 = vpop.xlane.xlu0 %3658 }
 0x235   : > { %4153 = vst.msk [vmem:[%s8076_s9 + $0x238] sm:$0xff] %vm4081_vm2, %v4024_v49  ;;  %4152 = vst.msk [vmem:[%s8076_s9 + $0x230] sm:$0xff] %vm4081_vm2, %v4023_v38  ;;  %v3898_v9 = vsub.f32 %v3662_v48, %v7554_v43  ;;  %v3897_v11 = vsub.f32 %v3659_v4, %v7556_v25  ;;  %v9125_v38 = vld [vmem:[#allocation70_spill] sm:$0xff] }
 0x237   : > { %v4026_v0 = vmul.f32 0.5, %v3898_v9  ;;  %v4025_v42 = vmul.f32 0.5, %v3897_v11 }
 0x238   : > { %v3668_v28 = vpop.xlane.xlu1 %3667  ;;  %v3665_v57 = vpop.xlane.xlu0 %3664 }
 0x239   : > { %4155 = vst.msk [vmem:[%s8076_s9 + $0x248] sm:$0xff] %vm4081_vm2, %v4026_v0  ;;  %4154 = vst.msk [vmem:[%s8076_s9 + $0x240] sm:$0xff] %vm4081_vm2, %v4025_v42  ;;  %v3900_v61 = vsub.f32 %v3668_v28, %v7573_v29  ;;  %v3899_v53 = vsub.f32 %v3665_v57, %v7575_v8  ;;  %v9114_v8 = vld [vmem:[#allocation59_spill] sm:$0xff]  ;;  %v9127_v57 = vld [vmem:[#allocation72_spill] sm:$0xff] }
 0x23a   : > { %v9126_v42 = vld [vmem:[#allocation71_spill] sm:$0xff] }
 0x23b   : > { %v4028_v41 = vmul.f32 0.5, %v3900_v61  ;;  %v4027_v2 = vmul.f32 0.5, %v3899_v53 }
 0x23c   : > { %v3674_v31 = vpop.xlane.xlu1 %3673  ;;  %v3671_v43 = vpop.xlane.xlu0 %3670 }
 0x23d   : > { %4157 = vst.msk [vmem:[%s8076_s9 + $0x258] sm:$0xff] %vm4081_vm2, %v4028_v41  ;;  %4156 = vst.msk [vmem:[%s8076_s9 + $0x250] sm:$0xff] %vm4081_vm2, %v4027_v2  ;;  %v3902_v25 = vsub.f32 %v3674_v31, %v7591_v5  ;;  %v3901_v30 = vsub.f32 %v3671_v43, %v9113_v47  ;;  %v9128_v43 = vld [vmem:[#allocation73_spill] sm:$0xff]  ;;  %v9129_v47 = vld [vmem:[#allocation74_spill] sm:$0xff] }
 0x23f   : > { %v4030_v52 = vmul.f32 0.5, %v3902_v25  ;;  %v4029_v35 = vmul.f32 0.5, %v3901_v30 }
 0x240   : > { %v3680_v63 = vpop.xlane.xlu1 %3679  ;;  %v3677_v29 = vpop.xlane.xlu0 %3676 }
 0x241   : > { %4159 = vst.msk [vmem:[%s8076_s9 + $0x268] sm:$0xff] %vm4081_vm2, %v4030_v52  ;;  %4158 = vst.msk [vmem:[%s8076_s9 + $0x260] sm:$0xff] %vm4081_vm2, %v4029_v35  ;;  %v3904_v51 = vsub.f32 %v3680_v63, %v9114_v8  ;;  %v3903_v56 = vsub.f32 %v3677_v29, %v9115_v37  ;;  %v9130_v8 = vld [vmem:[#allocation75_spill] sm:$0xff]  ;;  %v9131_v37 = vld [vmem:[#allocation76_spill] sm:$0xff] }
 0x243   : > { %v4032_v21 = vmul.f32 0.5, %v3904_v51  ;;  %v4031_v32 = vmul.f32 0.5, %v3903_v56 }
 0x244   : > { %v3686_v20 = vpop.xlane.xlu1 %3685  ;;  %v3683_v5 = vpop.xlane.xlu0 %3682 }
 0x245   : > { %4161 = vst.msk [vmem:[%s8076_s9 + $0x278] sm:$0xff] %vm4081_vm2, %v4032_v21  ;;  %4160 = vst.msk [vmem:[%s8076_s9 + $0x270] sm:$0xff] %vm4081_vm2, %v4031_v32  ;;  %v3906_v62 = vsub.f32 %v3686_v20, %v9116_v54  ;;  %v3905_v26 = vsub.f32 %v3683_v5, %v9117_v44  ;;  %v9132_v54 = vld [vmem:[#allocation77_spill] sm:$0xff]  ;;  %v9133_v44 = vld [vmem:[#allocation78_spill] sm:$0xff] }
 0x247   : > { %v4034_v46 = vmul.f32 0.5, %v3906_v62  ;;  %v4033_v12 = vmul.f32 0.5, %v3905_v26 }
 0x248   : > { %v3692_v13 = vpop.xlane.xlu1 %3691  ;;  %v3689_v3 = vpop.xlane.xlu0 %3688 }
 0x249   : > { %4163 = vst.msk [vmem:[%s8076_s9 + $0x288] sm:$0xff] %vm4081_vm2, %v4034_v46  ;;  %4162 = vst.msk [vmem:[%s8076_s9 + $0x280] sm:$0xff] %vm4081_vm2, %v4033_v12  ;;  %v3908_v34 = vsub.f32 %v3692_v13, %v9118_v55  ;;  %v3907_v15 = vsub.f32 %v3689_v3, %v9119_v40  ;;  %v9134_v55 = vld [vmem:[#allocation79_spill] sm:$0xff]  ;;  %v9135_v40 = vld [vmem:[#allocation80_spill] sm:$0xff] }
 0x24b   : > { %v4036_v16 = vmul.f32 0.5, %v3908_v34  ;;  %v4035_v17 = vmul.f32 0.5, %v3907_v15 }
 0x24c   : > { %v3698_v45 = vpop.xlane.xlu1 %3697  ;;  %v3695_v36 = vpop.xlane.xlu0 %3694 }
 0x24d   : > { %4165 = vst.msk [vmem:[%s8076_s9 + $0x298] sm:$0xff] %vm4081_vm2, %v4036_v16  ;;  %4164 = vst.msk [vmem:[%s8076_s9 + $0x290] sm:$0xff] %vm4081_vm2, %v4035_v17  ;;  %v3910_v27 = vsub.f32 %v3698_v45, %v9120_v39  ;;  %v3909_v33 = vsub.f32 %v3695_v36, %v9121_v14  ;;  %v9136_v39 = vld [vmem:[#allocation81_spill] sm:$0xff]  ;;  %v9137_v14 = vld [vmem:[#allocation82_spill] sm:$0xff] }
 0x24f   : > { %v4038_v60 = vmul.f32 0.5, %v3910_v27  ;;  %v4037_v7 = vmul.f32 0.5, %v3909_v33 }
 0x250   : > { %v3704_v24 = vpop.xlane.xlu1 %3703  ;;  %v3701_v19 = vpop.xlane.xlu0 %3700 }
 0x251   : > { %4167 = vst.msk [vmem:[%s8076_s9 + $0x2a8] sm:$0xff] %vm4081_vm2, %v4038_v60  ;;  %4166 = vst.msk [vmem:[%s8076_s9 + $0x2a0] sm:$0xff] %vm4081_vm2, %v4037_v7  ;;  %v3912_v18 = vsub.f32 %v3704_v24, %v9122_v50  ;;  %v3911_v59 = vsub.f32 %v3701_v19, %v9123_v58  ;;  %v9138_v50 = vld [vmem:[#allocation83_spill] sm:$0xff]  ;;  %v9139_v58 = vld [vmem:[#allocation84_spill] sm:$0xff] }
 0x253   : > { %v4040_v6 = vmul.f32 0.5, %v3912_v18  ;;  %v4039_v23 = vmul.f32 0.5, %v3911_v59 }
 0x254   : > { %v3710_v22 = vpop.xlane.xlu1 %3709  ;;  %v3707_v1 = vpop.xlane.xlu0 %3706 }
 0x255   : > { %4169 = vst.msk [vmem:[%s8076_s9 + $0x2b8] sm:$0xff] %vm4081_vm2, %v4040_v6  ;;  %4168 = vst.msk [vmem:[%s8076_s9 + $0x2b0] sm:$0xff] %vm4081_vm2, %v4039_v23  ;;  %v3914_v49 = vsub.f32 %v3710_v22, %v9124_v10  ;;  %v3913_v48 = vsub.f32 %v3707_v1, %v9125_v38  ;;  %v9140_v10 = vld [vmem:[#allocation85_spill] sm:$0xff]  ;;  %v9141_v38 = vld [vmem:[#allocation86_spill] sm:$0xff] }
 0x257   : > { %v4042_v4 = vmul.f32 0.5, %v3914_v49  ;;  %v4041_v9 = vmul.f32 0.5, %v3913_v48 }
 0x258   : > { %v3716_v11 = vpop.xlane.xlu1 %3715  ;;  %v3713_v0 = vpop.xlane.xlu0 %3712 }
 0x259   : > { %4171 = vst.msk [vmem:[%s8076_s9 + $0x2c8] sm:$0xff] %vm4081_vm2, %v4042_v4  ;;  %4170 = vst.msk [vmem:[%s8076_s9 + $0x2c0] sm:$0xff] %vm4081_vm2, %v4041_v9  ;;  %v3916_v28 = vsub.f32 %v3716_v11, %v9126_v42  ;;  %v3915_v61 = vsub.f32 %v3713_v0, %v9127_v57  ;;  %v9142_v42 = vld [vmem:[#allocation87_spill] sm:$0xff]  ;;  %v9143_v57 = vld [vmem:[#allocation88_spill] sm:$0xff] }
 0x25b   : > { %v4044_v53 = vmul.f32 0.5, %v3916_v28  ;;  %v4043_v41 = vmul.f32 0.5, %v3915_v61 }
 0x25c   : > { %v3722_v2 = vpop.xlane.xlu1 %3721  ;;  %v3719_v31 = vpop.xlane.xlu0 %3718 }
 0x25d   : > { %4173 = vst.msk [vmem:[%s8076_s9 + $0x2d8] sm:$0xff] %vm4081_vm2, %v4044_v53  ;;  %4172 = vst.msk [vmem:[%s8076_s9 + $0x2d0] sm:$0xff] %vm4081_vm2, %v4043_v41  ;;  %v3918_v25 = vsub.f32 %v3722_v2, %v9128_v43  ;;  %v3917_v30 = vsub.f32 %v3719_v31, %v9129_v47  ;;  %v9144_v43 = vld [vmem:[#allocation89_spill] sm:$0xff]  ;;  %v9145_v47 = vld [vmem:[#allocation90_spill] sm:$0xff] }
 0x25f   : > { %v4046_v52 = vmul.f32 0.5, %v3918_v25  ;;  %v4045_v35 = vmul.f32 0.5, %v3917_v30 }
 0x260   : > { %v3728_v63 = vpop.xlane.xlu1 %3727  ;;  %v3725_v29 = vpop.xlane.xlu0 %3724 }
 0x261   : > { %4175 = vst.msk [vmem:[%s8076_s9 + $0x2e8] sm:$0xff] %vm4081_vm2, %v4046_v52  ;;  %4174 = vst.msk [vmem:[%s8076_s9 + $0x2e0] sm:$0xff] %vm4081_vm2, %v4045_v35  ;;  %v3920_v51 = vsub.f32 %v3728_v63, %v9130_v8  ;;  %v3919_v56 = vsub.f32 %v3725_v29, %v9131_v37  ;;  %v9146_v8 = vld [vmem:[#allocation91_spill] sm:$0xff]  ;;  %v9147_v37 = vld [vmem:[#allocation92_spill] sm:$0xff] }
 0x263   : > { %v4048_v21 = vmul.f32 0.5, %v3920_v51  ;;  %v4047_v32 = vmul.f32 0.5, %v3919_v56 }
 0x264   : > { %v3734_v20 = vpop.xlane.xlu1 %3733  ;;  %v3731_v5 = vpop.xlane.xlu0 %3730 }
 0x265   : > { %4177 = vst.msk [vmem:[%s8076_s9 + $0x2f8] sm:$0xff] %vm4081_vm2, %v4048_v21  ;;  %4176 = vst.msk [vmem:[%s8076_s9 + $0x2f0] sm:$0xff] %vm4081_vm2, %v4047_v32  ;;  %v3922_v62 = vsub.f32 %v3734_v20, %v9132_v54  ;;  %v3921_v26 = vsub.f32 %v3731_v5, %v9133_v44  ;;  %v9148_v54 = vld [vmem:[#allocation93_spill] sm:$0xff]  ;;  %v9149_v44 = vld [vmem:[#allocation94_spill] sm:$0xff] }
 0x267   : > { %v4050_v46 = vmul.f32 0.5, %v3922_v62  ;;  %v4049_v12 = vmul.f32 0.5, %v3921_v26 }
 0x268   : > { %v3740_v13 = vpop.xlane.xlu1 %3739  ;;  %v3737_v3 = vpop.xlane.xlu0 %3736 }
 0x269   : > { %4179 = vst.msk [vmem:[%s8076_s9 + $0x308] sm:$0xff] %vm4081_vm2, %v4050_v46  ;;  %4178 = vst.msk [vmem:[%s8076_s9 + $0x300] sm:$0xff] %vm4081_vm2, %v4049_v12  ;;  %v3924_v34 = vsub.f32 %v3740_v13, %v9134_v55  ;;  %v3923_v15 = vsub.f32 %v3737_v3, %v9135_v40  ;;  %v9150_v55 = vld [vmem:[#allocation95_spill] sm:$0xff]  ;;  %v9151_v40 = vld [vmem:[#allocation96_spill] sm:$0xff] }
 0x26b   : > { %v4052_v16 = vmul.f32 0.5, %v3924_v34  ;;  %v4051_v17 = vmul.f32 0.5, %v3923_v15 }
 0x26c   : > { %v3746_v45 = vpop.xlane.xlu1 %3745  ;;  %v3743_v36 = vpop.xlane.xlu0 %3742 }
 0x26d   : > { %4181 = vst.msk [vmem:[%s8076_s9 + $0x318] sm:$0xff] %vm4081_vm2, %v4052_v16  ;;  %4180 = vst.msk [vmem:[%s8076_s9 + $0x310] sm:$0xff] %vm4081_vm2, %v4051_v17  ;;  %v3926_v27 = vsub.f32 %v3746_v45, %v9136_v39  ;;  %v3925_v33 = vsub.f32 %v3743_v36, %v9137_v14  ;;  %v9152_v39 = vld [vmem:[#allocation97_spill] sm:$0xff]  ;;  %v9153_v14 = vld [vmem:[#allocation98_spill] sm:$0xff] }
 0x26f   : > { %v4054_v60 = vmul.f32 0.5, %v3926_v27  ;;  %v4053_v7 = vmul.f32 0.5, %v3925_v33 }
 0x270   : > { %v3752_v24 = vpop.xlane.xlu1 %3751  ;;  %v3749_v19 = vpop.xlane.xlu0 %3748 }
 0x271   : > { %4183 = vst.msk [vmem:[%s8076_s9 + $0x328] sm:$0xff] %vm4081_vm2, %v4054_v60  ;;  %4182 = vst.msk [vmem:[%s8076_s9 + $0x320] sm:$0xff] %vm4081_vm2, %v4053_v7  ;;  %v3928_v18 = vsub.f32 %v3752_v24, %v9138_v50  ;;  %v3927_v59 = vsub.f32 %v3749_v19, %v9139_v58  ;;  %v9154_v50 = vld [vmem:[#allocation99_spill] sm:$0xff]  ;;  %v9155_v58 = vld [vmem:[#allocation100_spill] sm:$0xff] }
 0x273   : > { %v4056_v6 = vmul.f32 0.5, %v3928_v18  ;;  %v4055_v23 = vmul.f32 0.5, %v3927_v59 }
 0x274   : > { %v3758_v22 = vpop.xlane.xlu1 %3757  ;;  %v3755_v1 = vpop.xlane.xlu0 %3754 }
 0x275   : > { %4185 = vst.msk [vmem:[%s8076_s9 + $0x338] sm:$0xff] %vm4081_vm2, %v4056_v6  ;;  %4184 = vst.msk [vmem:[%s8076_s9 + $0x330] sm:$0xff] %vm4081_vm2, %v4055_v23  ;;  %v3930_v49 = vsub.f32 %v3758_v22, %v9140_v10  ;;  %v3929_v48 = vsub.f32 %v3755_v1, %v9141_v38  ;;  %v9156_v10 = vld [vmem:[#allocation101_spill] sm:$0xff]  ;;  %v9157_v38 = vld [vmem:[#allocation102_spill] sm:$0xff] }
 0x277   : > { %v4058_v4 = vmul.f32 0.5, %v3930_v49  ;;  %v4057_v9 = vmul.f32 0.5, %v3929_v48 }
 0x278   : > { %v3764_v11 = vpop.xlane.xlu1 %3763  ;;  %v3761_v0 = vpop.xlane.xlu0 %3760 }
 0x279   : > { %4187 = vst.msk [vmem:[%s8076_s9 + $0x348] sm:$0xff] %vm4081_vm2, %v4058_v4  ;;  %4186 = vst.msk [vmem:[%s8076_s9 + $0x340] sm:$0xff] %vm4081_vm2, %v4057_v9  ;;  %v3932_v28 = vsub.f32 %v3764_v11, %v9142_v42  ;;  %v3931_v61 = vsub.f32 %v3761_v0, %v9143_v57  ;;  %v9158_v42 = vld [vmem:[#allocation103_spill] sm:$0xff]  ;;  %v9159_v57 = vld [vmem:[#allocation104_spill] sm:$0xff] }
 0x27b   : > { %v4060_v53 = vmul.f32 0.5, %v3932_v28  ;;  %v4059_v41 = vmul.f32 0.5, %v3931_v61 }
 0x27c   : > { %v3770_v2 = vpop.xlane.xlu1 %3769  ;;  %v3767_v31 = vpop.xlane.xlu0 %3766 }
 0x27d   : > { %4189 = vst.msk [vmem:[%s8076_s9 + $0x358] sm:$0xff] %vm4081_vm2, %v4060_v53  ;;  %4188 = vst.msk [vmem:[%s8076_s9 + $0x350] sm:$0xff] %vm4081_vm2, %v4059_v41  ;;  %v3934_v25 = vsub.f32 %v3770_v2, %v9144_v43  ;;  %v3933_v30 = vsub.f32 %v3767_v31, %v9145_v47  ;;  %v9160_v43 = vld [vmem:[#allocation105_spill] sm:$0xff]  ;;  %v9161_v47 = vld [vmem:[#allocation106_spill] sm:$0xff] }
 0x27f   : > { %v4062_v52 = vmul.f32 0.5, %v3934_v25  ;;  %v4061_v35 = vmul.f32 0.5, %v3933_v30 }
 0x280   : > { %v3776_v63 = vpop.xlane.xlu1 %3775  ;;  %v3773_v29 = vpop.xlane.xlu0 %3772 }
 0x281   : > { %4191 = vst.msk [vmem:[%s8076_s9 + $0x368] sm:$0xff] %vm4081_vm2, %v4062_v52  ;;  %4190 = vst.msk [vmem:[%s8076_s9 + $0x360] sm:$0xff] %vm4081_vm2, %v4061_v35  ;;  %v3936_v51 = vsub.f32 %v3776_v63, %v9146_v8  ;;  %v3935_v56 = vsub.f32 %v3773_v29, %v9147_v37  ;;  %v9162_v8 = vld [vmem:[#allocation107_spill] sm:$0xff]  ;;  %v9163_v37 = vld [vmem:[#allocation108_spill] sm:$0xff] }
 0x283   : > { %v4064_v21 = vmul.f32 0.5, %v3936_v51  ;;  %v4063_v32 = vmul.f32 0.5, %v3935_v56 }
 0x284   : > { %v3782_v20 = vpop.xlane.xlu1 %3781  ;;  %v3779_v5 = vpop.xlane.xlu0 %3778 }
 0x285   : > { %4193 = vst.msk [vmem:[%s8076_s9 + $0x378] sm:$0xff] %vm4081_vm2, %v4064_v21  ;;  %4192 = vst.msk [vmem:[%s8076_s9 + $0x370] sm:$0xff] %vm4081_vm2, %v4063_v32  ;;  %v3938_v62 = vsub.f32 %v3782_v20, %v9148_v54  ;;  %v3937_v26 = vsub.f32 %v3779_v5, %v9149_v44 }
 0x287   : > { %v4066_v46 = vmul.f32 0.5, %v3938_v62  ;;  %v4065_v12 = vmul.f32 0.5, %v3937_v26 }
 0x288   : > { %v3788_v13 = vpop.xlane.xlu1 %3787  ;;  %v3785_v3 = vpop.xlane.xlu0 %3784 }
 0x289   : > { %4195 = vst.msk [vmem:[%s8076_s9 + $0x388] sm:$0xff] %vm4081_vm2, %v4066_v46  ;;  %4194 = vst.msk [vmem:[%s8076_s9 + $0x380] sm:$0xff] %vm4081_vm2, %v4065_v12  ;;  %v3940_v34 = vsub.f32 %v3788_v13, %v9150_v55  ;;  %v3939_v15 = vsub.f32 %v3785_v3, %v9151_v40 }
 0x28b   : > { %v4068_v16 = vmul.f32 0.5, %v3940_v34  ;;  %v4067_v17 = vmul.f32 0.5, %v3939_v15 }
 0x28c   : > { %v3794_v45 = vpop.xlane.xlu1 %3793  ;;  %v3791_v36 = vpop.xlane.xlu0 %3790 }
 0x28d   : > { %4197 = vst.msk [vmem:[%s8076_s9 + $0x398] sm:$0xff] %vm4081_vm2, %v4068_v16  ;;  %4196 = vst.msk [vmem:[%s8076_s9 + $0x390] sm:$0xff] %vm4081_vm2, %v4067_v17  ;;  %v3942_v27 = vsub.f32 %v3794_v45, %v9152_v39  ;;  %v3941_v33 = vsub.f32 %v3791_v36, %v9153_v14 }
 0x28f   : > { %v4070_v60 = vmul.f32 0.5, %v3942_v27  ;;  %v4069_v7 = vmul.f32 0.5, %v3941_v33 }
 0x290   : > { %v3800_v24 = vpop.xlane.xlu1 %3799  ;;  %v3797_v19 = vpop.xlane.xlu0 %3796 }
 0x291   : > { %4199 = vst.msk [vmem:[%s8076_s9 + $0x3a8] sm:$0xff] %vm4081_vm2, %v4070_v60  ;;  %4198 = vst.msk [vmem:[%s8076_s9 + $0x3a0] sm:$0xff] %vm4081_vm2, %v4069_v7  ;;  %v3944_v18 = vsub.f32 %v3800_v24, %v9154_v50  ;;  %v3943_v59 = vsub.f32 %v3797_v19, %v9155_v58 }
 0x293   : > { %v4072_v6 = vmul.f32 0.5, %v3944_v18  ;;  %v4071_v23 = vmul.f32 0.5, %v3943_v59 }
 0x294   : > { %v3806_v22 = vpop.xlane.xlu1 %3805  ;;  %v3803_v1 = vpop.xlane.xlu0 %3802 }
 0x295   : > { %4201 = vst.msk [vmem:[%s8076_s9 + $0x3b8] sm:$0xff] %vm4081_vm2, %v4072_v6  ;;  %4200 = vst.msk [vmem:[%s8076_s9 + $0x3b0] sm:$0xff] %vm4081_vm2, %v4071_v23  ;;  %v3946_v49 = vsub.f32 %v3806_v22, %v9156_v10  ;;  %v3945_v48 = vsub.f32 %v3803_v1, %v9157_v38 }
 0x297   : > { %v4074_v4 = vmul.f32 0.5, %v3946_v49  ;;  %v4073_v9 = vmul.f32 0.5, %v3945_v48 }
 0x298   : > { %v3812_v11 = vpop.xlane.xlu1 %3811  ;;  %v3809_v0 = vpop.xlane.xlu0 %3808 }
 0x299   : > { %4203 = vst.msk [vmem:[%s8076_s9 + $0x3c8] sm:$0xff] %vm4081_vm2, %v4074_v4  ;;  %4202 = vst.msk [vmem:[%s8076_s9 + $0x3c0] sm:$0xff] %vm4081_vm2, %v4073_v9  ;;  %v3948_v28 = vsub.f32 %v3812_v11, %v9158_v42  ;;  %v3947_v61 = vsub.f32 %v3809_v0, %v9159_v57 }
 0x29b   : > { %v4076_v53 = vmul.f32 0.5, %v3948_v28  ;;  %v4075_v41 = vmul.f32 0.5, %v3947_v61 }
 0x29c   : > { %v3818_v2 = vpop.xlane.xlu1 %3817  ;;  %v3815_v31 = vpop.xlane.xlu0 %3814 }
 0x29d   : > { %4205 = vst.msk [vmem:[%s8076_s9 + $0x3d8] sm:$0xff] %vm4081_vm2, %v4076_v53  ;;  %4204 = vst.msk [vmem:[%s8076_s9 + $0x3d0] sm:$0xff] %vm4081_vm2, %v4075_v41  ;;  %v3950_v25 = vsub.f32 %v3818_v2, %v9160_v43  ;;  %v3949_v30 = vsub.f32 %v3815_v31, %v9161_v47 }
 0x29f   : > { %v4078_v52 = vmul.f32 0.5, %v3950_v25  ;;  %v4077_v35 = vmul.f32 0.5, %v3949_v30 }
 0x2a0   : > { %v3824_v63 = vpop.xlane.xlu1 %3823  ;;  %v3821_v29 = vpop.xlane.xlu0 %3820 }
 0x2a1   : > { %4207 = vst.msk [vmem:[%s8076_s9 + $0x3e8] sm:$0xff] %vm4081_vm2, %v4078_v52  ;;  %4206 = vst.msk [vmem:[%s8076_s9 + $0x3e0] sm:$0xff] %vm4081_vm2, %v4077_v35  ;;  %v3952_v51 = vsub.f32 %v3824_v63, %v9162_v8  ;;  %v3951_v56 = vsub.f32 %v3821_v29, %v9163_v37  ;;  %4216 = sbr.rel (!%p5865_p4) target bundleno = 742 (0x2e6), region = 32 }
 0x2a3   : > { %v4080_v21 = vmul.f32 0.5, %v3952_v51  ;;  %v4079_v32 = vmul.f32 0.5, %v3951_v56 }
 0x2a5   : > { %4209 = vst.msk [vmem:[%s8076_s9 + $0x3f8] sm:$0xff] %vm4081_vm2, %v4080_v21  ;;  %4208 = vst.msk [vmem:[%s8076_s9 + $0x3f0] sm:$0xff] %vm4081_vm2, %v4079_v32 }
 0x2a6   : > { %s9173_s21 = smov (!%p4219_p8, %s4218_s21), 128 }
 0x2a7   : > { %s4943_s26 = sshll.u32 %s9173_s21, 7 }
 0x2a8   : > { %p4946_p9 = scmp.eq.s32.totalorder %s4943_s26, 0 }
 0x2a9   : > { %s8755_s27 = sshrl.u32 (!%p4946_p9), %s9173_s21, 6 }
 0x2aa   : > { %4227 = sbr.rel (%p4946_p9) target bundleno = 742 (0x2e6), region = 36  ;;  %p4947_p10 = scmp.le.s32.totalorder (!%p4946_p9), %s8755_s27, 0 }
 0x2af   : > { %4634 = sbr.rel (%p4947_p10) target bundleno = 725 (0x2d5), region = 112  ;;  %s9164_s12 = smov (!%p4947_p10), %s8749_s25 }
 0x2b0   : > { %s9165_s17 = smov (!%p4947_p10), %s8076_s9  ;;  %s8764_s18 = smov (!%p4947_p10), 0  }
 0x2b1   : > { %s8766_s28 = smov (!%p4947_p10), 0  }
 0x2b4 LB: >> { %v4416_v20 = vld [vmem:[%s5799_s17] sm:$0xff]  ;;  %v4418_v5 = vld [vmem:[%s5799_s17 + $0x8] sm:$0xff]  ;;  %v4420_v54 = vld [vmem:[%s5799_s17 + $0x10] sm:$0xff]  ;;  %s4544_s29 = sadd.s32 1, %s5803_s18  ;;  %s4410_s28 = sadd.s32 1, %s5807_s28   ;;  %s5807_s28 = sphi %s8766_s28, %s4410_s28   ;;  %s5803_s18 = sphi %s8764_s18, %s9168_s18   ;;  %s5799_s17 = sphi %s9165_s17, %s9167_s17   ;;  %s5795_s12 = sphi %s9164_s12, %s9166_s12  }
 0x2b5   : >> { %4417 = vst [vmem:[%s5795_s12] sm:$0xff] %v4416_v20  ;;  %4419 = vst [vmem:[%s5795_s12 + $0x8] sm:$0xff] %v4418_v5  ;;  %v4422_v62 = vld [vmem:[%s5799_s17 + $0x18] sm:$0xff]  ;;  %v4424_v44 = vld [vmem:[%s5799_s17 + $0x20] sm:$0xff]  ;;  %p4545_p11 = scmp.ge.s32.totalorder %s4544_s29, %s8755_s27  ;;  %p4409_p12 = scmp.ge.s32.totalorder %s4410_s28, %s8755_s27 }
 0x2b6   : >> { %4421 = vst [vmem:[%s5795_s12 + $0x10] sm:$0xff] %v4420_v54  ;;  %v4426_v26 = vld [vmem:[%s5799_s17 + $0x28] sm:$0xff]  ;;  %4423 = vst [vmem:[%s5795_s12 + $0x18] sm:$0xff] %v4422_v62  ;;  %v4428_v46 = vld [vmem:[%s5799_s17 + $0x30] sm:$0xff] }
 0x2b7   : >> { %4425 = vst [vmem:[%s5795_s12 + $0x20] sm:$0xff] %v4424_v44  ;;  %4427 = vst [vmem:[%s5795_s12 + $0x28] sm:$0xff] %v4426_v26  ;;  %v4430_v12 = vld [vmem:[%s5799_s17 + $0x38] sm:$0xff]  ;;  %v4432_v13 = vld [vmem:[%s5799_s17 + $0x40] sm:$0xff]  ;;  %s9175_s29 = smov (%p4545_p11, %s4544_s29), 0 }
 0x2b8   : >> { %4429 = vst [vmem:[%s5795_s12 + $0x30] sm:$0xff] %v4428_v46  ;;  %4431 = vst [vmem:[%s5795_s12 + $0x38] sm:$0xff] %v4430_v12  ;;  %v4434_v3 = vld [vmem:[%s5799_s17 + $0x48] sm:$0xff]  ;;  %v4436_v55 = vld [vmem:[%s5799_s17 + $0x50] sm:$0xff]  ;;  %s4948_s30 = sshll.u32 %s9175_s29, 9  ;;  %s9168_s18 = smov %s9175_s29 }
 0x2b9   : >> { %4433 = vst [vmem:[%s5795_s12 + $0x40] sm:$0xff] %v4432_v13  ;;  %v4438_v34 = vld [vmem:[%s5799_s17 + $0x58] sm:$0xff]  ;;  %4435 = vst [vmem:[%s5795_s12 + $0x48] sm:$0xff] %v4434_v3  ;;  %v4440_v40 = vld [vmem:[%s5799_s17 + $0x60] sm:$0xff]  ;;  %s8822_s3 = scalar_lea.vmem %s8076_s9, %s4948_s30 [#allocation2]   ;;  %s8825_s4 = scalar_lea.vmem %s8749_s25, %s4948_s30  }
 0x2ba   : >> { %4437 = vst [vmem:[%s5795_s12 + $0x50] sm:$0xff] %v4436_v55  ;;  %4439 = vst [vmem:[%s5795_s12 + $0x58] sm:$0xff] %v4438_v34  ;;  %v4442_v15 = vld [vmem:[%s5799_s17 + $0x68] sm:$0xff]  ;;  %v4444_v16 = vld [vmem:[%s5799_s17 + $0x70] sm:$0xff] }
 0x2bb   : >> { %4441 = vst [vmem:[%s5795_s12 + $0x60] sm:$0xff] %v4440_v40  ;;  %4443 = vst [vmem:[%s5795_s12 + $0x68] sm:$0xff] %v4442_v15  ;;  %v4446_v17 = vld [vmem:[%s5799_s17 + $0x78] sm:$0xff]  ;;  %v4448_v45 = vld [vmem:[%s5799_s17 + $0x80] sm:$0xff] }
 0x2bc   : >> { %4445 = vst [vmem:[%s5795_s12 + $0x70] sm:$0xff] %v4444_v16  ;;  %v4450_v36 = vld [vmem:[%s5799_s17 + $0x88] sm:$0xff]  ;;  %4447 = vst [vmem:[%s5795_s12 + $0x78] sm:$0xff] %v4446_v17  ;;  %v4452_v39 = vld [vmem:[%s5799_s17 + $0x90] sm:$0xff] }
 0x2bd   : >> { %4449 = vst [vmem:[%s5795_s12 + $0x80] sm:$0xff] %v4448_v45  ;;  %4451 = vst [vmem:[%s5795_s12 + $0x88] sm:$0xff] %v4450_v36  ;;  %v4454_v27 = vld [vmem:[%s5799_s17 + $0x98] sm:$0xff]  ;;  %v4456_v14 = vld [vmem:[%s5799_s17 + $0xa0] sm:$0xff] }
 0x2be   : >> { %4453 = vst [vmem:[%s5795_s12 + $0x90] sm:$0xff] %v4452_v39  ;;  %4455 = vst [vmem:[%s5795_s12 + $0x98] sm:$0xff] %v4454_v27  ;;  %v4458_v33 = vld [vmem:[%s5799_s17 + $0xa8] sm:$0xff]  ;;  %v4460_v60 = vld [vmem:[%s5799_s17 + $0xb0] sm:$0xff] }
 0x2bf   : >> { %4457 = vst [vmem:[%s5795_s12 + $0xa0] sm:$0xff] %v4456_v14  ;;  %v4462_v7 = vld [vmem:[%s5799_s17 + $0xb8] sm:$0xff]  ;;  %4459 = vst [vmem:[%s5795_s12 + $0xa8] sm:$0xff] %v4458_v33  ;;  %v4464_v24 = vld [vmem:[%s5799_s17 + $0xc0] sm:$0xff] }
 0x2c0   : >> { %4461 = vst [vmem:[%s5795_s12 + $0xb0] sm:$0xff] %v4460_v60  ;;  %4463 = vst [vmem:[%s5795_s12 + $0xb8] sm:$0xff] %v4462_v7  ;;  %v4466_v19 = vld [vmem:[%s5799_s17 + $0xc8] sm:$0xff]  ;;  %v4468_v50 = vld [vmem:[%s5799_s17 + $0xd0] sm:$0xff] }
 0x2c1   : >> { %4465 = vst [vmem:[%s5795_s12 + $0xc0] sm:$0xff] %v4464_v24  ;;  %4467 = vst [vmem:[%s5795_s12 + $0xc8] sm:$0xff] %v4466_v19  ;;  %v4470_v18 = vld [vmem:[%s5799_s17 + $0xd8] sm:$0xff]  ;;  %v4472_v58 = vld [vmem:[%s5799_s17 + $0xe0] sm:$0xff] }
 0x2c2   : >> { %4469 = vst [vmem:[%s5795_s12 + $0xd0] sm:$0xff] %v4468_v50  ;;  %v4474_v59 = vld [vmem:[%s5799_s17 + $0xe8] sm:$0xff]  ;;  %4471 = vst [vmem:[%s5795_s12 + $0xd8] sm:$0xff] %v4470_v18  ;;  %v4476_v6 = vld [vmem:[%s5799_s17 + $0xf0] sm:$0xff] }
 0x2c3   : >> { %4473 = vst [vmem:[%s5795_s12 + $0xe0] sm:$0xff] %v4472_v58  ;;  %4475 = vst [vmem:[%s5795_s12 + $0xe8] sm:$0xff] %v4474_v59  ;;  %v4478_v23 = vld [vmem:[%s5799_s17 + $0xf8] sm:$0xff]  ;;  %v4480_v22 = vld [vmem:[%s5799_s17 + $0x100] sm:$0xff] }
 0x2c4   : >> { %4477 = vst [vmem:[%s5795_s12 + $0xf0] sm:$0xff] %v4476_v6  ;;  %4479 = vst [vmem:[%s5795_s12 + $0xf8] sm:$0xff] %v4478_v23  ;;  %v4482_v1 = vld [vmem:[%s5799_s17 + $0x108] sm:$0xff]  ;;  %v4484_v10 = vld [vmem:[%s5799_s17 + $0x110] sm:$0xff] }
 0x2c5   : >> { %4481 = vst [vmem:[%s5795_s12 + $0x100] sm:$0xff] %v4480_v22  ;;  %v4486_v49 = vld [vmem:[%s5799_s17 + $0x118] sm:$0xff]  ;;  %4483 = vst [vmem:[%s5795_s12 + $0x108] sm:$0xff] %v4482_v1  ;;  %v4488_v38 = vld [vmem:[%s5799_s17 + $0x120] sm:$0xff] }
 0x2c6   : >> { %4485 = vst [vmem:[%s5795_s12 + $0x110] sm:$0xff] %v4484_v10  ;;  %4487 = vst [vmem:[%s5795_s12 + $0x118] sm:$0xff] %v4486_v49  ;;  %v4490_v48 = vld [vmem:[%s5799_s17 + $0x128] sm:$0xff]  ;;  %v4492_v4 = vld [vmem:[%s5799_s17 + $0x130] sm:$0xff] }
 0x2c7   : >> { %4489 = vst [vmem:[%s5795_s12 + $0x120] sm:$0xff] %v4488_v38  ;;  %4491 = vst [vmem:[%s5795_s12 + $0x128] sm:$0xff] %v4490_v48  ;;  %v4494_v9 = vld [vmem:[%s5799_s17 + $0x138] sm:$0xff]  ;;  %v4496_v11 = vld [vmem:[%s5799_s17 + $0x140] sm:$0xff] }
 0x2c8   : >> { %4493 = vst [vmem:[%s5795_s12 + $0x130] sm:$0xff] %v4492_v4  ;;  %v4498_v0 = vld [vmem:[%s5799_s17 + $0x148] sm:$0xff]  ;;  %4495 = vst [vmem:[%s5795_s12 + $0x138] sm:$0xff] %v4494_v9  ;;  %v4500_v42 = vld [vmem:[%s5799_s17 + $0x150] sm:$0xff] }
 0x2c9   : >> { %4497 = vst [vmem:[%s5795_s12 + $0x140] sm:$0xff] %v4496_v11  ;;  %4499 = vst [vmem:[%s5795_s12 + $0x148] sm:$0xff] %v4498_v0  ;;  %v4502_v28 = vld [vmem:[%s5799_s17 + $0x158] sm:$0xff]  ;;  %v4504_v57 = vld [vmem:[%s5799_s17 + $0x160] sm:$0xff] }
 0x2ca   : >> { %4501 = vst [vmem:[%s5795_s12 + $0x150] sm:$0xff] %v4500_v42  ;;  %4503 = vst [vmem:[%s5795_s12 + $0x158] sm:$0xff] %v4502_v28  ;;  %v4506_v61 = vld [vmem:[%s5799_s17 + $0x168] sm:$0xff]  ;;  %v4508_v53 = vld [vmem:[%s5799_s17 + $0x170] sm:$0xff] }
 0x2cb   : >> { %4505 = vst [vmem:[%s5795_s12 + $0x160] sm:$0xff] %v4504_v57  ;;  %v4510_v41 = vld [vmem:[%s5799_s17 + $0x178] sm:$0xff]  ;;  %4507 = vst [vmem:[%s5795_s12 + $0x168] sm:$0xff] %v4506_v61  ;;  %v4512_v2 = vld [vmem:[%s5799_s17 + $0x180] sm:$0xff] }
 0x2cc   : >> { %4509 = vst [vmem:[%s5795_s12 + $0x170] sm:$0xff] %v4508_v53  ;;  %4511 = vst [vmem:[%s5795_s12 + $0x178] sm:$0xff] %v4510_v41  ;;  %v4514_v31 = vld [vmem:[%s5799_s17 + $0x188] sm:$0xff]  ;;  %v4516_v43 = vld [vmem:[%s5799_s17 + $0x190] sm:$0xff] }
 0x2cd   : >> { %4513 = vst [vmem:[%s5795_s12 + $0x180] sm:$0xff] %v4512_v2  ;;  %4515 = vst [vmem:[%s5795_s12 + $0x188] sm:$0xff] %v4514_v31  ;;  %v4518_v25 = vld [vmem:[%s5799_s17 + $0x198] sm:$0xff]  ;;  %v4520_v47 = vld [vmem:[%s5799_s17 + $0x1a0] sm:$0xff] }
 0x2ce   : >> { %4517 = vst [vmem:[%s5795_s12 + $0x190] sm:$0xff] %v4516_v43  ;;  %v4522_v30 = vld [vmem:[%s5799_s17 + $0x1a8] sm:$0xff]  ;;  %4519 = vst [vmem:[%s5795_s12 + $0x198] sm:$0xff] %v4518_v25  ;;  %v4524_v52 = vld [vmem:[%s5799_s17 + $0x1b0] sm:$0xff] }
 0x2cf   : >> { %4521 = vst [vmem:[%s5795_s12 + $0x1a0] sm:$0xff] %v4520_v47  ;;  %4523 = vst [vmem:[%s5795_s12 + $0x1a8] sm:$0xff] %v4522_v30  ;;  %v4526_v35 = vld [vmem:[%s5799_s17 + $0x1b8] sm:$0xff]  ;;  %v4528_v63 = vld [vmem:[%s5799_s17 + $0x1c0] sm:$0xff] }
 0x2d0   : >> { %4525 = vst [vmem:[%s5795_s12 + $0x1b0] sm:$0xff] %v4524_v52  ;;  %4527 = vst [vmem:[%s5795_s12 + $0x1b8] sm:$0xff] %v4526_v35  ;;  %v4530_v29 = vld [vmem:[%s5799_s17 + $0x1c8] sm:$0xff]  ;;  %v4532_v8 = vld [vmem:[%s5799_s17 + $0x1d0] sm:$0xff]  ;;  %4412 = sbr.rel (!%p4409_p12) target bundleno = 692 (0x2b4), region = 118 }
 0x2d1   : >> { %4529 = vst [vmem:[%s5795_s12 + $0x1c0] sm:$0xff] %v4528_v63  ;;  %v4534_v51 = vld [vmem:[%s5799_s17 + $0x1d8] sm:$0xff]  ;;  %4531 = vst [vmem:[%s5795_s12 + $0x1c8] sm:$0xff] %v4530_v29  ;;  %v4536_v37 = vld [vmem:[%s5799_s17 + $0x1e0] sm:$0xff] }
 0x2d2   : >> { %4533 = vst [vmem:[%s5795_s12 + $0x1d0] sm:$0xff] %v4532_v8  ;;  %4535 = vst [vmem:[%s5795_s12 + $0x1d8] sm:$0xff] %v4534_v51  ;;  %v4538_v56 = vld [vmem:[%s5799_s17 + $0x1e8] sm:$0xff]  ;;  %v4540_v21 = vld [vmem:[%s5799_s17 + $0x1f0] sm:$0xff] }
 0x2d3   : >> { %4537 = vst [vmem:[%s5795_s12 + $0x1e0] sm:$0xff] %v4536_v37  ;;  %4539 = vst [vmem:[%s5795_s12 + $0x1e8] sm:$0xff] %v4538_v56  ;;  %v4542_v32 = vld [vmem:[%s5799_s17 + $0x1f8] sm:$0xff]  ;;  %s9167_s17 = smov %s8822_s3 }
 0x2d4   : >> { %4541 = vst [vmem:[%s5795_s12 + $0x1f0] sm:$0xff] %v4540_v21  ;;  %4543 = vst [vmem:[%s5795_s12 + $0x1f8] sm:$0xff] %v4542_v32  ;;  %s9166_s12 = smov %s8825_s4 }
 0x2d5 PF: > { %s8930_s5 = sand.u32 63, %s9173_s21   ;;  %s4959_s6 = sshll.u32 %s8755_s27, 9 }
 0x2d6   : > { %s4555_s7 = scalar_lea.vmem %s8076_s9, %s4959_s6 [#allocation2]   ;;  %s4557_s8 = scalar_lea.vmem %s8749_s25, %s4959_s6  }
 0x2d7   : > { %p4953_p13 = scmp.le.s32.totalorder %s8930_s5, 0 }
 0x2d8   : > { %s5809_s11 = smov (!%p4953_p13), %s4557_s8   ;;  %s5813_s14 = smov (!%p4953_p13), %s4555_s7  }
 0x2d9   : > { %4648 = sbr.rel (%p4953_p13) target bundleno = 742 (0x2e6), region = 123  ;;  %s5817_s15 = smov (!%p4953_p13), 0  }
 0x2da   : > { %s5821_s19 = smov (!%p4953_p13), 0  }
 0x2de LB: >> { %v4567_v20 = vld [vmem:[%s5815_s14] sm:$0xff]  ;;  %s4569_s20 = sadd.s32 1, %s5819_s15  ;;  %s4561_s19 = sadd.s32 1, %s5823_s19   ;;  %s5823_s19 = sphi %s5821_s19, %s4561_s19   ;;  %s5819_s15 = sphi %s5817_s15, %s5818_s15   ;;  %s5815_s14 = sphi %s5813_s14, %s4574_s14   ;;  %s5811_s11 = sphi %s5809_s11, %s4575_s11  }
 0x2df   : >> { %4568 = vst [vmem:[%s5811_s11] sm:$0xff] %v4567_v20  ;;  %p4570_p0 = scmp.ge.s32.totalorder %s4569_s20, %s8930_s5  ;;  %p4560_p1 = scmp.ge.s32.totalorder %s4561_s19, %s8930_s5 }
 0x2e1   : >> { %s9177_s20 = smov (%p4570_p0, %s4569_s20), 0  ;;  %4563 = sbr.rel (!%p4560_p1) target bundleno = 734 (0x2de), region = 129 }
 0x2e2   : >> { %s4954_s9 = sshll.u32 %s9177_s20, 3  ;;  %s5818_s15 = smov %s9177_s20  }
 0x2e3   : >> { %s4574_s14 = scalar_lea.vmem %s4555_s7, %s4954_s9 [#allocation2]   ;;  %s4575_s11 = scalar_lea.vmem %s4557_s8, %s4954_s9  }
 0x2e6 PF: > { %p9_p2 = scmp.ge.s32.totalorder %s5855_s13, 5   ;;  %s9169_s9 = smov %s5787_s10 }
 0x2e7   : > { %s9170_s10 = smov %s5863_s16  ;;  %s9171_s11 = smov %s5855_s13 }
 0x2e8   :  { %11 = sbr.rel (!%p9_p2) target bundleno = 2 (0x2), region = 140 }

</bundles_post_ra>
